<compile_context>
chip_gen: v6e
topology: v6e:2x2x1
jax: 0.10.0
libtpu: 0.0.40
codegen_flags: <defaults>
</compile_context>

<pallas_src>
import functools

import jax
import jax.numpy as jnp
from jax import lax
from jax.experimental import pallas as pl
from jax.experimental.pallas import tpu as pltpu

# ----------------------------- small config ---------------------------------
VOCAB = 100
TYPE_VOCAB = 2
MAX_POS = 32
HIDDEN = 32            # bert_config.hidden_size (small stand-in)
N_HEADS = 2
HEAD_DIM = HIDDEN // N_HEADS
INTERMEDIATE = 64
N_LAYERS = 2
VIS_DIM = 64           # TODO(synk): stand-in for visual_embedding_dim=2048
N_CLASSES = 4          # config.num_class
N_CLS_HEADS = 13
CLS_H1 = 512
CLS_H2 = 256
LN_EPS_BERT = 1e-12
LN_EPS_CLS = 1e-5      # torch nn.LayerNorm default
LEAKY_SLOPE = 0.01     # torch nn.LeakyReLU default
DTYPE = jnp.float32

B = 2                  # batch
L_TXT = 8              # text tokens
S_PAD = 16             # (L_TXT text + 1 visual) padded to a sublane multiple
BS = B * S_PAD

# packed trunk slabs ----------------------------------------------------------
VEC_ROWS = 4 + 8 * N_LAYERS                      # 20 rows x 96 lanes
W_LAYER0 = VIS_DIM + HIDDEN                      # 96
W_LAYER_STRIDE = 3 * HIDDEN + INTERMEDIATE       # 160 rows per layer
W_ROWS = W_LAYER0 + N_LAYERS * W_LAYER_STRIDE    # 416 rows x 96 lanes

# packed per-head classifier slab (512 lanes) ---------------------------------
CS_W1 = 0                       # rows 0..31  : w1 [32, 512]
CS_B1 = HIDDEN                  # 32
CS_G1 = HIDDEN + 1              # 33
CS_BE1 = HIDDEN + 2             # 34
CS_B2 = HIDDEN + 3              # 35  (lanes 0..255)
CS_G2 = HIDDEN + 4              # 36
CS_BE2 = HIDDEN + 5             # 37
CS_B3 = HIDDEN + 6              # 38  (lanes 0..3)
CS_W3T = HIDDEN + 7             # rows 39..42 : w3^T [C, 256]
CS_ROWS = CS_W3T + N_CLASSES    # 43


# ----------------------------- helpers ---------------------------------------
def _ln(x, g, b, eps):
    m = jnp.mean(x, axis=-1, keepdims=True)
    v = jnp.mean(jnp.square(x - m), axis=-1, keepdims=True)
    return (x - m) * lax.rsqrt(v + eps) * g + b


# ----------------------------- fused kernel ----------------------------------
def _fused_kernel(x0_ref, mask_ref, feat_ref, vecs_ref, wslab_ref,
                  cslab_ref, w2_ref, out_ref, x_s, pooled_s):
    step = pl.program_id(0)
    f32 = jnp.float32
    H, d = HIDDEN, HEAD_DIM

    def vec(r, w=H):
        return vecs_ref[pl.ds(r, 1), :w]                   # [1, w]

    # -------------------- step 0: the whole VisualBERT trunk ------------------
    @pl.when(step == 0)
    def _trunk():
        # embedding slab: text rows precomputed in glue; project + insert the
        # visual token row (visual pos id 0 / type id 1 folded into its bias).
        x_s[...] = x0_ref[...]
        vis = (jnp.dot(feat_ref[...], wslab_ref[pl.ds(0, VIS_DIM), :H],
                       preferred_element_type=f32) + vec(0))            # [B, H]
        for b in range(B):
            x_s[pl.ds(b * S_PAD + L_TXT, 1), :] = vis[b:b + 1, :]
        x = _ln(x_s[...], vec(1), vec(2), LN_EPS_BERT)                  # [BS, H]
        bias = mask_ref[...]                                            # [BS, BS]
        scale = 1.0 / float(d) ** 0.5

        for l in range(N_LAYERS):
            wr = W_LAYER0 + l * W_LAYER_STRIDE
            vr = 4 + 8 * l
            qkv = (jnp.dot(x, wslab_ref[pl.ds(wr, H), :],
                           preferred_element_type=f32)
                   + vecs_ref[pl.ds(vr, 1), :])                         # [BS, 3H]
            heads = []
            for h in range(N_HEADS):
                q = qkv[:, h * d:(h + 1) * d] * scale
                k = qkv[:, H + h * d:H + (h + 1) * d]
                v = qkv[:, 2 * H + h * d:2 * H + (h + 1) * d]
                # all batches at once; cross-batch / padded keys killed by bias
                s = lax.dot_general(q, k, (((1,), (1,)), ((), ())),
                                    preferred_element_type=f32) + bias
                s = s - jnp.max(s, axis=-1, keepdims=True)
                p = jnp.exp(s)
                p = p * pl.reciprocal(jnp.sum(p, axis=-1, keepdims=True),
                                      approx=True)
                heads.append(jnp.dot(p, v, preferred_element_type=f32))
            ctx = jnp.concatenate(heads, axis=-1)                       # [BS, H]
            attn = (jnp.dot(ctx, wslab_ref[pl.ds(wr + H, H), :H],
                            preferred_element_type=f32) + vec(vr + 1))
            x = _ln(attn + x, vec(vr + 2), vec(vr + 3), LN_EPS_BERT)
            inter = (jnp.dot(x, wslab_ref[pl.ds(wr + 2 * H, H), :INTERMEDIATE],
                             preferred_element_type=f32)
                     + vec(vr + 4, INTERMEDIATE))
            # TODO(synk): exact erf GELU approximated by tanh form (see header).
            inter = jax.nn.gelu(inter, approximate=True)
            ff = (jnp.dot(inter,
                          wslab_ref[pl.ds(wr + 3 * H, INTERMEDIATE), :H],
                          preferred_element_type=f32) + vec(vr + 5))
            x = _ln(ff + x, vec(vr + 6), vec(vr + 7), LN_EPS_BERT)

        # pooler: dense + tanh on the first text token of each batch
        cls = jnp.concatenate(
            [x[b * S_PAD:b * S_PAD + 1, :] for b in range(B)], axis=0)   # [B, H]
        pooled_s[...] = jnp.tanh(
            jnp.dot(cls, wslab_ref[pl.ds(VIS_DIM, H), :H],
                    preferred_element_type=f32) + vec(3))

    # ------------- every step: classifier head `step` (eval-mode dropout) -----
    w1 = cslab_ref[pl.ds(CS_W1, H), :]                                   # [H, 512]
    h1 = (jnp.dot(pooled_s[...], w1, preferred_element_type=f32)
          + cslab_ref[pl.ds(CS_B1, 1), :])
    h1 = _ln(h1, cslab_ref[pl.ds(CS_G1, 1), :],
             cslab_ref[pl.ds(CS_BE1, 1), :], LN_EPS_CLS)
    h1 = jnp.where(h1 > 0, h1, LEAKY_SLOPE * h1)
    h2 = (jnp.dot(h1, w2_ref[...], preferred_element_type=f32)
          + cslab_ref[pl.ds(CS_B2, 1), :CLS_H2])
    h2 = _ln(h2, cslab_ref[pl.ds(CS_G2, 1), :CLS_H2],
             cslab_ref[pl.ds(CS_BE2, 1), :CLS_H2], LN_EPS_CLS)
    h2 = jnp.where(h2 > 0, h2, LEAKY_SLOPE * h2)
    w3t = cslab_ref[pl.ds(CS_W3T, N_CLASSES), :CLS_H2]                   # [C, 256]
    y = (lax.dot_general(h2, w3t, (((1,), (1,)), ((), ())),
                         preferred_element_type=f32)
         + cslab_ref[pl.ds(CS_B3, 1), :N_CLASSES])                       # [B, C]
    out_ref[pl.ds(step * B, B), :] = y.astype(out_ref.dtype)


def _run_fused(x0, mask_bias, features, vecs, wslab, cslab, w2):
    return pl.pallas_call(
        _fused_kernel,
        out_shape=jax.ShapeDtypeStruct((N_CLS_HEADS * B, N_CLASSES), DTYPE),
        grid=(N_CLS_HEADS,),
        in_specs=[
            pl.BlockSpec((BS, HIDDEN), lambda i: (0, 0)),            # x0 slab
            pl.BlockSpec((BS, BS), lambda i: (0, 0)),                # attn bias
            pl.BlockSpec((B, VIS_DIM), lambda i: (0, 0)),            # features
            pl.BlockSpec((VEC_ROWS, 3 * HIDDEN), lambda i: (0, 0)),  # vec slab
            pl.BlockSpec((W_ROWS, 3 * HIDDEN), lambda i: (0, 0)),    # weight slab
            pl.BlockSpec((None, CS_ROWS, CLS_H1), lambda i: (i, 0, 0)),   # per-head
            pl.BlockSpec((None, CLS_H1, CLS_H2), lambda i: (i, 0, 0)),    # per-head w2
        ],
        out_specs=pl.BlockSpec((N_CLS_HEADS * B, N_CLASSES), lambda i: (0, 0)),
        scratch_shapes=[
            pltpu.VMEM((BS, HIDDEN), jnp.float32),   # embedding slab
            pltpu.VMEM((B, HIDDEN), jnp.float32),    # pooled [CLS], carried across steps
        ],
        compiler_params=pltpu.CompilerParams(
            dimension_semantics=("arbitrary",)),
        cost_estimate=pl.CostEstimate(flops=8_000_000, transcendentals=10_000,
                                      bytes_accessed=9_000_000),
    )(x0, mask_bias, features, vecs, wslab, cslab, w2)


# ----------------------------- parameter init / packing -----------------------
def init_params(key):
    keys = iter(jax.random.split(key, 48))

    def w(shape, scale=0.02):
        return (scale * jax.random.normal(next(keys), shape)).astype(DTYPE)

    p = {
        "word_emb": w((VOCAB, HIDDEN)),
        "pos_emb": w((MAX_POS, HIDDEN)),
        "type_emb": w((TYPE_VOCAB, HIDDEN)),
        "vis_proj_w": w((VIS_DIM, HIDDEN)),
        "vis_proj_b": jnp.zeros((HIDDEN,), DTYPE),
        "emb_ln_g": jnp.ones((HIDDEN,), DTYPE),
        "emb_ln_b": jnp.zeros((HIDDEN,), DTYPE),
        "qkv_w": w((N_LAYERS, HIDDEN, 3 * HIDDEN)),
        "qkv_b": jnp.zeros((N_LAYERS, 3 * HIDDEN), DTYPE),
        "o_w": w((N_LAYERS, HIDDEN, HIDDEN)),
        "o_b": jnp.zeros((N_LAYERS, HIDDEN), DTYPE),
        "ln1_g": jnp.ones((N_LAYERS, HIDDEN), DTYPE),
        "ln1_b": jnp.zeros((N_LAYERS, HIDDEN), DTYPE),
        "i_w": w((N_LAYERS, HIDDEN, INTERMEDIATE)),
        "i_b": jnp.zeros((N_LAYERS, INTERMEDIATE), DTYPE),
        "f_w": w((N_LAYERS, INTERMEDIATE, HIDDEN)),
        "f_b": jnp.zeros((N_LAYERS, HIDDEN), DTYPE),
        "ln2_g": jnp.ones((N_LAYERS, HIDDEN), DTYPE),
        "ln2_b": jnp.zeros((N_LAYERS, HIDDEN), DTYPE),
        "pool_w": w((HIDDEN, HIDDEN)),
        "pool_b": jnp.zeros((HIDDEN,), DTYPE),
    }
    cp = {
        "w1": w((N_CLS_HEADS, HIDDEN, CLS_H1)),
        "b1": jnp.zeros((N_CLS_HEADS, CLS_H1), DTYPE),
        "g1": jnp.ones((N_CLS_HEADS, CLS_H1), DTYPE),
        "be1": jnp.zeros((N_CLS_HEADS, CLS_H1), DTYPE),
        "w2": w((N_CLS_HEADS, CLS_H1, CLS_H2)),
        "b2": jnp.zeros((N_CLS_HEADS, CLS_H2), DTYPE),
        "g2": jnp.ones((N_CLS_HEADS, CLS_H2), DTYPE),
        "be2": jnp.zeros((N_CLS_HEADS, CLS_H2), DTYPE),
        "w3": w((N_CLS_HEADS, CLS_H2, N_CLASSES)),
        "b3": jnp.zeros((N_CLS_HEADS, N_CLASSES), DTYPE),
    }
    return p, cp


def pack_params(p, cp):
    H, I = HIDDEN, INTERMEDIATE
    vecs = jnp.zeros((VEC_ROWS, 3 * H), DTYPE)
    vis_bias = p["vis_proj_b"] + p["pos_emb"][0] + p["type_emb"][1]
    vecs = vecs.at[0, :H].set(vis_bias)
    vecs = vecs.at[1, :H].set(p["emb_ln_g"])
    vecs = vecs.at[2, :H].set(p["emb_ln_b"])
    vecs = vecs.at[3, :H].set(p["pool_b"])
    for l in range(N_LAYERS):
        r = 4 + 8 * l
        vecs = vecs.at[r + 0, :3 * H].set(p["qkv_b"][l])
        vecs = vecs.at[r + 1, :H].set(p["o_b"][l])
        vecs = vecs.at[r + 2, :H].set(p["ln1_g"][l])
        vecs = vecs.at[r + 3, :H].set(p["ln1_b"][l])
        vecs = vecs.at[r + 4, :I].set(p["i_b"][l])
        vecs = vecs.at[r + 5, :H].set(p["f_b"][l])
        vecs = vecs.at[r + 6, :H].set(p["ln2_g"][l])
        vecs = vecs.at[r + 7, :H].set(p["ln2_b"][l])

    wslab = jnp.zeros((W_ROWS, 3 * H), DTYPE)
    wslab = wslab.at[0:VIS_DIM, :H].set(p["vis_proj_w"])
    wslab = wslab.at[VIS_DIM:VIS_DIM + H, :H].set(p["pool_w"])
    for l in range(N_LAYERS):
        r = W_LAYER0 + l * W_LAYER_STRIDE
        wslab = wslab.at[r:r + H, :3 * H].set(p["qkv_w"][l])
        wslab = wslab.at[r + H:r + 2 * H, :H].set(p["o_w"][l])
        wslab = wslab.at[r + 2 * H:r + 3 * H, :I].set(p["i_w"][l])
        wslab = wslab.at[r + 3 * H:r + 3 * H + I, :H].set(p["f_w"][l])

    cslab = jnp.zeros((N_CLS_HEADS, CS_ROWS, CLS_H1), DTYPE)
    cslab = cslab.at[:, CS_W1:CS_W1 + H, :].set(cp["w1"])
    cslab = cslab.at[:, CS_B1, :].set(cp["b1"])
    cslab = cslab.at[:, CS_G1, :].set(cp["g1"])
    cslab = cslab.at[:, CS_BE1, :].set(cp["be1"])
    cslab = cslab.at[:, CS_B2, :CLS_H2].set(cp["b2"])
    cslab = cslab.at[:, CS_G2, :CLS_H2].set(cp["g2"])
    cslab = cslab.at[:, CS_BE2, :CLS_H2].set(cp["be2"])
    cslab = cslab.at[:, CS_B3, :N_CLASSES].set(cp["b3"])
    cslab = cslab.at[:, CS_W3T:CS_W3T + N_CLASSES, :CLS_H2].set(
        jnp.transpose(cp["w3"], (0, 2, 1)))

    return {"word_emb": p["word_emb"], "pos_emb": p["pos_emb"],
            "type_emb": p["type_emb"], "vecs": vecs, "wslab": wslab,
            "cslab": cslab, "w2": cp["w2"]}


# ----------------------------- model forward ---------------------------------
def visual_bert_last_cls_forward(packed, input_ids, input_masks, segment_ids,
                                 features):
    assert input_ids.shape == (B, L_TXT)
    L = L_TXT
    # embedding-table gathers (plain-JAX glue; gathers stay outside the kernel)
    pos_ids = jnp.arange(L, dtype=jnp.int32)
    txt = (jnp.take(packed["word_emb"], input_ids, axis=0)
           + jnp.take(packed["pos_emb"], pos_ids, axis=0)[None, :, :]
           + jnp.take(packed["type_emb"], segment_ids, axis=0)).astype(DTYPE)

    # padded [B, S_PAD, H] slab: text rows, zero placeholder for visual + pads
    x0 = jnp.zeros((B, S_PAD, HIDDEN), DTYPE).at[:, :L, :].set(txt)
    x0 = x0.reshape(BS, HIDDEN)

    # additive attention bias over the flattened [batch*seq] axis:
    #   0      same-batch key with mask==1 (text) or the visual token
    #  -1e4    same-batch text key with mask==0  (matches BERT's (1-m)*-10000)
    #  -1e9    padding slots / cross-batch pairs (artifacts of the packed slab)
    full_mask = jnp.concatenate(
        [input_masks.astype(jnp.float32), jnp.ones((B, 1), jnp.float32)], axis=1)
    key_bias = (1.0 - full_mask) * -10000.0
    key_bias = jnp.concatenate(
        [key_bias, jnp.full((B, S_PAD - L - 1), -1e9, jnp.float32)], axis=1)
    row_batch = jnp.repeat(jnp.arange(B), S_PAD)
    mask_bias = jnp.where(row_batch[:, None] == row_batch[None, :],
                          key_bias.reshape(-1)[None, :], -1e9).astype(DTYPE)

    out = _run_fused(x0, mask_bias, features, packed["vecs"], packed["wslab"],
                     packed["cslab"], packed["w2"])
    out = out.reshape(N_CLS_HEADS, B, N_CLASSES)
    return tuple(out[i] for i in range(N_CLS_HEADS))


# ----------------------------- main ------------------------------------------
if __name__ == "__main__":
    key = jax.random.PRNGKey(0)
    k_param, k_ids, k_feat = jax.random.split(key, 3)

    p, cp = init_params(k_param)
    packed = pack_params(p, cp)

    input_ids = jax.random.randint(k_ids, (B, L_TXT), 0, VOCAB, dtype=jnp.int32)
    input_masks = jnp.ones((B, L_TXT), jnp.float32)
    segment_ids = jnp.zeros((B, L_TXT), jnp.int32)
    features = jax.random.normal(k_feat, (B, VIS_DIM), DTYPE)

    fwd = jax.jit(functools.partial(visual_bert_last_cls_forward, packed))
    logits = fwd(input_ids, input_masks, segment_ids, features)
    jax.block_until_ready(logits)

    assert len(logits) == N_CLS_HEADS
    assert all(l.shape == (B, N_CLASSES) for l in logits)
    assert all(bool(jnp.all(jnp.isfinite(l))) for l in logits)
    print("KERNEL_OK")
</pallas_src>

<mosaic_0001>
module attributes {stable_mosaic.version = 11 : i64} {
  func.func @_fused_kernel(%arg0: i32, %arg1: memref<32x32xf32, #tpu.memory_space<vmem>>, %arg2: memref<32x32xf32, #tpu.memory_space<vmem>>, %arg3: memref<2x64xf32, #tpu.memory_space<vmem>>, %arg4: memref<20x96xf32, #tpu.memory_space<vmem>>, %arg5: memref<416x96xf32, #tpu.memory_space<vmem>>, %arg6: memref<1x43x512xf32, #tpu.memory_space<vmem>>, %arg7: memref<1x512x256xf32, #tpu.memory_space<vmem>>, %arg8: memref<26x4xf32, #tpu.memory_space<vmem>>, %arg9: memref<32x32xf32, #tpu.memory_space<vmem>>, %arg10: memref<2x32xf32, #tpu.memory_space<vmem>>) attributes {dimension_semantics = [#tpu.dimension_semantics<arbitrary>], iteration_bounds = array<i64: 13>, scalar_prefetch = 0 : i64, scratch_operands = 2 : i64, tpu.core_type = #tpu.core_type<tc>, window_params = [{pipeline_mode = #tpu.pipeline_mode<synchronous>, transform_indices = @transform_0, window_bounds = array<i64: 32, 32>}, {pipeline_mode = #tpu.pipeline_mode<synchronous>, transform_indices = @transform_1, window_bounds = array<i64: 32, 32>}, {pipeline_mode = #tpu.pipeline_mode<synchronous>, transform_indices = @transform_2, window_bounds = array<i64: 2, 64>}, {pipeline_mode = #tpu.pipeline_mode<synchronous>, transform_indices = @transform_3, window_bounds = array<i64: 20, 96>}, {pipeline_mode = #tpu.pipeline_mode<synchronous>, transform_indices = @transform_4, window_bounds = array<i64: 416, 96>}, {transform_indices = @transform_5, window_bounds = array<i64: 1, 43, 512>}, {transform_indices = @transform_6, window_bounds = array<i64: 1, 512, 256>}, {pipeline_mode = #tpu.pipeline_mode<synchronous>, transform_indices = @transform_7, window_bounds = array<i64: 26, 4>}]} {
    %c0_i32 = arith.constant 0 : i32
    %0 = arith.cmpi eq, %arg0, %c0_i32 : i32
    %1 = arith.extui %0 : i1 to i32
    %c0_i32_0 = arith.constant 0 : i32
    %2 = arith.cmpi ne, %1, %c0_i32_0 : i32
    scf.if %2 {
      %c0_41 = arith.constant 0 : index
      %c0_42 = arith.constant 0 : index
      %90 = vector.load %arg1[%c0_41, %c0_42] : memref<32x32xf32, #tpu.memory_space<vmem>>, vector<32x32xf32>
      %c0_43 = arith.constant 0 : index
      %c0_44 = arith.constant 0 : index
      %91 = vector.load %arg9[%c0_43, %c0_44] : memref<32x32xf32, #tpu.memory_space<vmem>>, vector<32x32xf32>
      tpu.vector_store %arg9[%c0_43, %c0_44], %90 {strides = array<i32>} : memref<32x32xf32, #tpu.memory_space<vmem>>, vector<32x32xf32>,
      %c0_45 = arith.constant 0 : index
      %c0_46 = arith.constant 0 : index
      %92 = vector.load %arg3[%c0_45, %c0_46] : memref<2x64xf32, #tpu.memory_space<vmem>>, vector<2x64xf32>
      %c0_47 = arith.constant 0 : index
      %c0_48 = arith.constant 0 : index
      %93 = vector.load %arg5[%c0_47, %c0_48] : memref<416x96xf32, #tpu.memory_space<vmem>>, vector<64x32xf32>
      %cst_49 = arith.constant dense<0.000000e+00> : vector<2x32xf32>
      %94 = tpu.matmul %92, %93, %cst_49 {dimension_numbers = #tpu.dot_dimension_numbers<[1], [0], [0], [1], [0, 0, 1, 1], [], []>} : vector<2x64xf32>, vector<64x32xf32>, vector<2x32xf32> -> vector<2x32xf32>
      %c0_50 = arith.constant 0 : index
      %c0_51 = arith.constant 0 : index
      %95 = vector.load %arg4[%c0_50, %c0_51] : memref<20x96xf32, #tpu.memory_space<vmem>>, vector<1x32xf32>
      %96 = vector.broadcast %95 : vector<1x32xf32> to vector<2x32xf32>
      %97 = arith.addf %94, %96 : vector<2x32xf32>
      %98 = vector.extract_strided_slice %97 {offsets = [0, 0], sizes = [1, 32], strides = [1, 1]} : vector<2x32xf32> to vector<1x32xf32>
      %c8 = arith.constant 8 : index
      %c0_52 = arith.constant 0 : index
      %99 = vector.load %arg9[%c8, %c0_52] : memref<32x32xf32, #tpu.memory_space<vmem>>, vector<1x32xf32>
      tpu.vector_store %arg9[%c8, %c0_52], %98 {strides = array<i32>} : memref<32x32xf32, #tpu.memory_space<vmem>>, vector<1x32xf32>,
      %100 = vector.extract_strided_slice %97 {offsets = [1, 0], sizes = [1, 32], strides = [1, 1]} : vector<2x32xf32> to vector<1x32xf32>
      %c24 = arith.constant 24 : index
      %c0_53 = arith.constant 0 : index
      %101 = vector.load %arg9[%c24, %c0_53] : memref<32x32xf32, #tpu.memory_space<vmem>>, vector<1x32xf32>
      tpu.vector_store %arg9[%c24, %c0_53], %100 {strides = array<i32>} : memref<32x32xf32, #tpu.memory_space<vmem>>, vector<1x32xf32>,
      %c0_54 = arith.constant 0 : index
      %c0_55 = arith.constant 0 : index
      %102 = vector.load %arg9[%c0_54, %c0_55] : memref<32x32xf32, #tpu.memory_space<vmem>>, vector<32x32xf32>
      %c1 = arith.constant 1 : index
      %c0_56 = arith.constant 0 : index
      %103 = vector.load %arg4[%c1, %c0_56] : memref<20x96xf32, #tpu.memory_space<vmem>>, vector<1x32xf32>
      %c2 = arith.constant 2 : index
      %c0_57 = arith.constant 0 : index
      %104 = vector.load %arg4[%c2, %c0_57] : memref<20x96xf32, #tpu.memory_space<vmem>>, vector<1x32xf32>
      %cst_58 = arith.constant dense<0.000000e+00> : vector<32xf32>
      %105 = vector.multi_reduction <add>, %102, %cst_58 [1] : vector<32x32xf32> to vector<32xf32>
      %106 = vector.shape_cast %105 : vector<32xf32> to vector<32x1xf32>
      %cst_59 = arith.constant 3.200000e+01 : f32
      %107 = vector.broadcast %cst_59 : f32 to vector<32x1xf32>
      %108 = arith.divf %106, %107 : vector<32x1xf32>
      %109 = vector.broadcast %108 : vector<32x1xf32> to vector<32x32xf32>
      %110 = arith.subf %102, %109 : vector<32x32xf32>
      %111 = arith.mulf %110, %110 : vector<32x32xf32>
      %cst_60 = arith.constant dense<0.000000e+00> : vector<32xf32>
      %112 = vector.multi_reduction <add>, %111, %cst_60 [1] : vector<32x32xf32> to vector<32xf32>
      %113 = vector.shape_cast %112 : vector<32xf32> to vector<32x1xf32>
      %cst_61 = arith.constant 3.200000e+01 : f32
      %114 = vector.broadcast %cst_61 : f32 to vector<32x1xf32>
      %115 = arith.divf %113, %114 : vector<32x1xf32>
      %116 = vector.broadcast %108 : vector<32x1xf32> to vector<32x32xf32>
      %117 = arith.subf %102, %116 : vector<32x32xf32>
      %cst_62 = arith.constant 9.99999996E-13 : f32
      %118 = vector.broadcast %cst_62 : f32 to vector<32x1xf32>
      %119 = arith.addf %115, %118 : vector<32x1xf32>
      %120 = math.rsqrt %119 : vector<32x1xf32>
      %121 = vector.broadcast %120 : vector<32x1xf32> to vector<32x32xf32>
      %122 = arith.mulf %117, %121 : vector<32x32xf32>
      %123 = vector.broadcast %103 : vector<1x32xf32> to vector<32x32xf32>
      %124 = arith.mulf %122, %123 : vector<32x32xf32>
      %125 = vector.broadcast %104 : vector<1x32xf32> to vector<32x32xf32>
      %126 = arith.addf %124, %125 : vector<32x32xf32>
      %c0_63 = arith.constant 0 : index
      %c0_64 = arith.constant 0 : index
      %127 = vector.load %arg2[%c0_63, %c0_64] : memref<32x32xf32, #tpu.memory_space<vmem>>, vector<32x32xf32>
      %c96 = arith.constant 96 : index
      %c0_65 = arith.constant 0 : index
      %128 = vector.load %arg5[%c96, %c0_65] : memref<416x96xf32, #tpu.memory_space<vmem>>, vector<32x96xf32>
      %cst_66 = arith.constant dense<0.000000e+00> : vector<32x96xf32>
      %129 = tpu.matmul %126, %128, %cst_66 {dimension_numbers = #tpu.dot_dimension_numbers<[1], [0], [0], [1], [0, 0, 1, 1], [], []>} : vector<32x32xf32>, vector<32x96xf32>, vector<32x96xf32> -> vector<32x96xf32>
      %c4 = arith.constant 4 : index
      %c0_67 = arith.constant 0 : index
      %130 = vector.load %arg4[%c4, %c0_67] : memref<20x96xf32, #tpu.memory_space<vmem>>, vector<1x96xf32>
      %131 = vector.broadcast %130 : vector<1x96xf32> to vector<32x96xf32>
      %132 = arith.addf %129, %131 : vector<32x96xf32>
      %133 = vector.extract_strided_slice %132 {offsets = [0, 0], sizes = [32, 16], strides = [1, 1]} : vector<32x96xf32> to vector<32x16xf32>
      %cst_68 = arith.constant 2.500000e-01 : f32
      %134 = vector.broadcast %cst_68 : f32 to vector<32x16xf32>
      %135 = arith.mulf %133, %134 : vector<32x16xf32>
      %136 = vector.extract_strided_slice %132 {offsets = [0, 32], sizes = [32, 16], strides = [1, 1]} : vector<32x96xf32> to vector<32x16xf32>
      %137 = vector.extract_strided_slice %132 {offsets = [0, 64], sizes = [32, 16], strides = [1, 1]} : vector<32x96xf32> to vector<32x16xf32>
      %cst_69 = arith.constant dense<0.000000e+00> : vector<32x32xf32>
      %138 = tpu.matmul %135, %136, %cst_69 {dimension_numbers = #tpu.dot_dimension_numbers<[1], [1], [0], [0], [0, 0, 1, 0], [], []>} : vector<32x16xf32>, vector<32x16xf32>, vector<32x32xf32> -> vector<32x32xf32>
      %139 = arith.addf %138, %127 : vector<32x32xf32>
      %cst_70 = arith.constant dense<0xFF800000> : vector<32xf32>
      %140 = vector.multi_reduction <maximumf>, %139, %cst_70 [1] : vector<32x32xf32> to vector<32xf32>
      %141 = vector.shape_cast %140 : vector<32xf32> to vector<32x1xf32>
      %142 = vector.broadcast %141 : vector<32x1xf32> to vector<32x32xf32>
      %143 = arith.subf %139, %142 : vector<32x32xf32>
      %144 = math.exp %143 : vector<32x32xf32>
      %cst_71 = arith.constant dense<0.000000e+00> : vector<32xf32>
      %145 = vector.multi_reduction <add>, %144, %cst_71 [1] : vector<32x32xf32> to vector<32xf32>
      %146 = vector.shape_cast %145 : vector<32xf32> to vector<32x1xf32>
      %147 = tpu.reciprocal %146 {approx = true} : vector<32x1xf32> -> vector<32x1xf32>
      %148 = vector.broadcast %147 : vector<32x1xf32> to vector<32x32xf32>
      %149 = arith.mulf %144, %148 : vector<32x32xf32>
      %cst_72 = arith.constant dense<0.000000e+00> : vector<32x16xf32>
      %150 = tpu.matmul %149, %137, %cst_72 {dimension_numbers = #tpu.dot_dimension_numbers<[1], [0], [0], [1], [0, 0, 1, 1], [], []>} : vector<32x32xf32>, vector<32x16xf32>, vector<32x16xf32> -> vector<32x16xf32>
      %151 = vector.extract_strided_slice %132 {offsets = [0, 16], sizes = [32, 16], strides = [1, 1]} : vector<32x96xf32> to vector<32x16xf32>
      %cst_73 = arith.constant 2.500000e-01 : f32
      %152 = vector.broadcast %cst_73 : f32 to vector<32x16xf32>
      %153 = arith.mulf %151, %152 : vector<32x16xf32>
      %154 = vector.extract_strided_slice %132 {offsets = [0, 48], sizes = [32, 16], strides = [1, 1]} : vector<32x96xf32> to vector<32x16xf32>
      %155 = vector.extract_strided_slice %132 {offsets = [0, 80], sizes = [32, 16], strides = [1, 1]} : vector<32x96xf32> to vector<32x16xf32>
      %cst_74 = arith.constant dense<0.000000e+00> : vector<32x32xf32>
      %156 = tpu.matmul %153, %154, %cst_74 {dimension_numbers = #tpu.dot_dimension_numbers<[1], [1], [0], [0], [0, 0, 1, 0], [], []>} : vector<32x16xf32>, vector<32x16xf32>, vector<32x32xf32> -> vector<32x32xf32>
      %157 = arith.addf %156, %127 : vector<32x32xf32>
      %cst_75 = arith.constant dense<0xFF800000> : vector<32xf32>
      %158 = vector.multi_reduction <maximumf>, %157, %cst_75 [1] : vector<32x32xf32> to vector<32xf32>
      %159 = vector.shape_cast %158 : vector<32xf32> to vector<32x1xf32>
      %160 = vector.broadcast %159 : vector<32x1xf32> to vector<32x32xf32>
      %161 = arith.subf %157, %160 : vector<32x32xf32>
      %162 = math.exp %161 : vector<32x32xf32>
      %cst_76 = arith.constant dense<0.000000e+00> : vector<32xf32>
      %163 = vector.multi_reduction <add>, %162, %cst_76 [1] : vector<32x32xf32> to vector<32xf32>
      %164 = vector.shape_cast %163 : vector<32xf32> to vector<32x1xf32>
      %165 = tpu.reciprocal %164 {approx = true} : vector<32x1xf32> -> vector<32x1xf32>
      %166 = vector.broadcast %165 : vector<32x1xf32> to vector<32x32xf32>
      %167 = arith.mulf %162, %166 : vector<32x32xf32>
      %cst_77 = arith.constant dense<0.000000e+00> : vector<32x16xf32>
      %168 = tpu.matmul %167, %155, %cst_77 {dimension_numbers = #tpu.dot_dimension_numbers<[1], [0], [0], [1], [0, 0, 1, 1], [], []>} : vector<32x32xf32>, vector<32x16xf32>, vector<32x16xf32> -> vector<32x16xf32>
      %169 = tpu.concatenate %150, %168 in 1 : vector<32x16xf32>, vector<32x16xf32> -> vector<32x32xf32>
      %c128 = arith.constant 128 : index
      %c0_78 = arith.constant 0 : index
      %170 = vector.load %arg5[%c128, %c0_78] : memref<416x96xf32, #tpu.memory_space<vmem>>, vector<32x32xf32>
      %cst_79 = arith.constant dense<0.000000e+00> : vector<32x32xf32>
      %171 = tpu.matmul %169, %170, %cst_79 {dimension_numbers = #tpu.dot_dimension_numbers<[1], [0], [0], [1], [0, 0, 1, 1], [], []>} : vector<32x32xf32>, vector<32x32xf32>, vector<32x32xf32> -> vector<32x32xf32>
      %c5 = arith.constant 5 : index
      %c0_80 = arith.constant 0 : index
      %172 = vector.load %arg4[%c5, %c0_80] : memref<20x96xf32, #tpu.memory_space<vmem>>, vector<1x32xf32>
      %173 = vector.broadcast %172 : vector<1x32xf32> to vector<32x32xf32>
      %174 = arith.addf %171, %173 : vector<32x32xf32>
      %175 = arith.addf %174, %126 : vector<32x32xf32>
      %c6 = arith.constant 6 : index
      %c0_81 = arith.constant 0 : index
      %176 = vector.load %arg4[%c6, %c0_81] : memref<20x96xf32, #tpu.memory_space<vmem>>, vector<1x32xf32>
      %c7 = arith.constant 7 : index
      %c0_82 = arith.constant 0 : index
      %177 = vector.load %arg4[%c7, %c0_82] : memref<20x96xf32, #tpu.memory_space<vmem>>, vector<1x32xf32>
      %cst_83 = arith.constant dense<0.000000e+00> : vector<32xf32>
      %178 = vector.multi_reduction <add>, %175, %cst_83 [1] : vector<32x32xf32> to vector<32xf32>
      %179 = vector.shape_cast %178 : vector<32xf32> to vector<32x1xf32>
      %cst_84 = arith.constant 3.200000e+01 : f32
      %180 = vector.broadcast %cst_84 : f32 to vector<32x1xf32>
      %181 = arith.divf %179, %180 : vector<32x1xf32>
      %182 = vector.broadcast %181 : vector<32x1xf32> to vector<32x32xf32>
      %183 = arith.subf %175, %182 : vector<32x32xf32>
      %184 = arith.mulf %183, %183 : vector<32x32xf32>
      %cst_85 = arith.constant dense<0.000000e+00> : vector<32xf32>
      %185 = vector.multi_reduction <add>, %184, %cst_85 [1] : vector<32x32xf32> to vector<32xf32>
      %186 = vector.shape_cast %185 : vector<32xf32> to vector<32x1xf32>
      %cst_86 = arith.constant 3.200000e+01 : f32
      %187 = vector.broadcast %cst_86 : f32 to vector<32x1xf32>
      %188 = arith.divf %186, %187 : vector<32x1xf32>
      %189 = vector.broadcast %181 : vector<32x1xf32> to vector<32x32xf32>
      %190 = arith.subf %175, %189 : vector<32x32xf32>
      %cst_87 = arith.constant 9.99999996E-13 : f32
      %191 = vector.broadcast %cst_87 : f32 to vector<32x1xf32>
      %192 = arith.addf %188, %191 : vector<32x1xf32>
      %193 = math.rsqrt %192 : vector<32x1xf32>
      %194 = vector.broadcast %193 : vector<32x1xf32> to vector<32x32xf32>
      %195 = arith.mulf %190, %194 : vector<32x32xf32>
      %196 = vector.broadcast %176 : vector<1x32xf32> to vector<32x32xf32>
      %197 = arith.mulf %195, %196 : vector<32x32xf32>
      %198 = vector.broadcast %177 : vector<1x32xf32> to vector<32x32xf32>
      %199 = arith.addf %197, %198 : vector<32x32xf32>
      %c160 = arith.constant 160 : index
      %c0_88 = arith.constant 0 : index
      %200 = vector.load %arg5[%c160, %c0_88] : memref<416x96xf32, #tpu.memory_space<vmem>>, vector<32x64xf32>
      %cst_89 = arith.constant dense<0.000000e+00> : vector<32x64xf32>
      %201 = tpu.matmul %199, %200, %cst_89 {dimension_numbers = #tpu.dot_dimension_numbers<[1], [0], [0], [1], [0, 0, 1, 1], [], []>} : vector<32x32xf32>, vector<32x64xf32>, vector<32x64xf32> -> vector<32x64xf32>
      %c8_90 = arith.constant 8 : index
      %c0_91 = arith.constant 0 : index
      %202 = vector.load %arg4[%c8_90, %c0_91] : memref<20x96xf32, #tpu.memory_space<vmem>>, vector<1x64xf32>
      %203 = vector.broadcast %202 : vector<1x64xf32> to vector<32x64xf32>
      %204 = arith.addf %201, %203 : vector<32x64xf32>
      %205 = arith.mulf %204, %204 : vector<32x64xf32>
      %206 = arith.mulf %204, %205 : vector<32x64xf32>
      %cst_92 = arith.constant 4.471500e-02 : f32
      %207 = vector.broadcast %cst_92 : f32 to vector<32x64xf32>
      %208 = arith.mulf %207, %206 : vector<32x64xf32>
      %209 = arith.addf %204, %208 : vector<32x64xf32>
      %cst_93 = arith.constant 0.797884583 : f32
      %210 = vector.broadcast %cst_93 : f32 to vector<32x64xf32>
      %211 = arith.mulf %210, %209 : vector<32x64xf32>
      %212 = math.tanh %211 : vector<32x64xf32>
      %cst_94 = arith.constant 1.000000e+00 : f32
      %213 = vector.broadcast %cst_94 : f32 to vector<32x64xf32>
      %214 = arith.addf %213, %212 : vector<32x64xf32>
      %cst_95 = arith.constant 5.000000e-01 : f32
      %215 = vector.broadcast %cst_95 : f32 to vector<32x64xf32>
      %216 = arith.mulf %215, %214 : vector<32x64xf32>
      %217 = arith.mulf %204, %216 : vector<32x64xf32>
      %c192 = arith.constant 192 : index
      %c0_96 = arith.constant 0 : index
      %218 = vector.load %arg5[%c192, %c0_96] : memref<416x96xf32, #tpu.memory_space<vmem>>, vector<64x32xf32>
      %cst_97 = arith.constant dense<0.000000e+00> : vector<32x32xf32>
      %219 = tpu.matmul %217, %218, %cst_97 {dimension_numbers = #tpu.dot_dimension_numbers<[1], [0], [0], [1], [0, 0, 1, 1], [], []>} : vector<32x64xf32>, vector<64x32xf32>, vector<32x32xf32> -> vector<32x32xf32>
      %c9 = arith.constant 9 : index
      %c0_98 = arith.constant 0 : index
      %220 = vector.load %arg4[%c9, %c0_98] : memref<20x96xf32, #tpu.memory_space<vmem>>, vector<1x32xf32>
      %221 = vector.broadcast %220 : vector<1x32xf32> to vector<32x32xf32>
      %222 = arith.addf %219, %221 : vector<32x32xf32>
      %223 = arith.addf %222, %199 : vector<32x32xf32>
      %c10 = arith.constant 10 : index
      %c0_99 = arith.constant 0 : index
      %224 = vector.load %arg4[%c10, %c0_99] : memref<20x96xf32, #tpu.memory_space<vmem>>, vector<1x32xf32>
      %c11 = arith.constant 11 : index
      %c0_100 = arith.constant 0 : index
      %225 = vector.load %arg4[%c11, %c0_100] : memref<20x96xf32, #tpu.memory_space<vmem>>, vector<1x32xf32>
      %cst_101 = arith.constant dense<0.000000e+00> : vector<32xf32>
      %226 = vector.multi_reduction <add>, %223, %cst_101 [1] : vector<32x32xf32> to vector<32xf32>
      %227 = vector.shape_cast %226 : vector<32xf32> to vector<32x1xf32>
      %cst_102 = arith.constant 3.200000e+01 : f32
      %228 = vector.broadcast %cst_102 : f32 to vector<32x1xf32>
      %229 = arith.divf %227, %228 : vector<32x1xf32>
      %230 = vector.broadcast %229 : vector<32x1xf32> to vector<32x32xf32>
      %231 = arith.subf %223, %230 : vector<32x32xf32>
      %232 = arith.mulf %231, %231 : vector<32x32xf32>
      %cst_103 = arith.constant dense<0.000000e+00> : vector<32xf32>
      %233 = vector.multi_reduction <add>, %232, %cst_103 [1] : vector<32x32xf32> to vector<32xf32>
      %234 = vector.shape_cast %233 : vector<32xf32> to vector<32x1xf32>
      %cst_104 = arith.constant 3.200000e+01 : f32
      %235 = vector.broadcast %cst_104 : f32 to vector<32x1xf32>
      %236 = arith.divf %234, %235 : vector<32x1xf32>
      %237 = vector.broadcast %229 : vector<32x1xf32> to vector<32x32xf32>
      %238 = arith.subf %223, %237 : vector<32x32xf32>
      %cst_105 = arith.constant 9.99999996E-13 : f32
      %239 = vector.broadcast %cst_105 : f32 to vector<32x1xf32>
      %240 = arith.addf %236, %239 : vector<32x1xf32>
      %241 = math.rsqrt %240 : vector<32x1xf32>
      %242 = vector.broadcast %241 : vector<32x1xf32> to vector<32x32xf32>
      %243 = arith.mulf %238, %242 : vector<32x32xf32>
      %244 = vector.broadcast %224 : vector<1x32xf32> to vector<32x32xf32>
      %245 = arith.mulf %243, %244 : vector<32x32xf32>
      %246 = vector.broadcast %225 : vector<1x32xf32> to vector<32x32xf32>
      %247 = arith.addf %245, %246 : vector<32x32xf32>
      %c256 = arith.constant 256 : index
      %c0_106 = arith.constant 0 : index
      %248 = vector.load %arg5[%c256, %c0_106] : memref<416x96xf32, #tpu.memory_space<vmem>>, vector<32x96xf32>
      %cst_107 = arith.constant dense<0.000000e+00> : vector<32x96xf32>
      %249 = tpu.matmul %247, %248, %cst_107 {dimension_numbers = #tpu.dot_dimension_numbers<[1], [0], [0], [1], [0, 0, 1, 1], [], []>} : vector<32x32xf32>, vector<32x96xf32>, vector<32x96xf32> -> vector<32x96xf32>
      %c12 = arith.constant 12 : index
      %c0_108 = arith.constant 0 : index
      %250 = vector.load %arg4[%c12, %c0_108] : memref<20x96xf32, #tpu.memory_space<vmem>>, vector<1x96xf32>
      %251 = vector.broadcast %250 : vector<1x96xf32> to vector<32x96xf32>
      %252 = arith.addf %249, %251 : vector<32x96xf32>
      %253 = vector.extract_strided_slice %252 {offsets = [0, 0], sizes = [32, 16], strides = [1, 1]} : vector<32x96xf32> to vector<32x16xf32>
      %cst_109 = arith.constant 2.500000e-01 : f32
      %254 = vector.broadcast %cst_109 : f32 to vector<32x16xf32>
      %255 = arith.mulf %253, %254 : vector<32x16xf32>
      %256 = vector.extract_strided_slice %252 {offsets = [0, 32], sizes = [32, 16], strides = [1, 1]} : vector<32x96xf32> to vector<32x16xf32>
      %257 = vector.extract_strided_slice %252 {offsets = [0, 64], sizes = [32, 16], strides = [1, 1]} : vector<32x96xf32> to vector<32x16xf32>
      %cst_110 = arith.constant dense<0.000000e+00> : vector<32x32xf32>
      %258 = tpu.matmul %255, %256, %cst_110 {dimension_numbers = #tpu.dot_dimension_numbers<[1], [1], [0], [0], [0, 0, 1, 0], [], []>} : vector<32x16xf32>, vector<32x16xf32>, vector<32x32xf32> -> vector<32x32xf32>
      %259 = arith.addf %258, %127 : vector<32x32xf32>
      %cst_111 = arith.constant dense<0xFF800000> : vector<32xf32>
      %260 = vector.multi_reduction <maximumf>, %259, %cst_111 [1] : vector<32x32xf32> to vector<32xf32>
      %261 = vector.shape_cast %260 : vector<32xf32> to vector<32x1xf32>
      %262 = vector.broadcast %261 : vector<32x1xf32> to vector<32x32xf32>
      %263 = arith.subf %259, %262 : vector<32x32xf32>
      %264 = math.exp %263 : vector<32x32xf32>
      %cst_112 = arith.constant dense<0.000000e+00> : vector<32xf32>
      %265 = vector.multi_reduction <add>, %264, %cst_112 [1] : vector<32x32xf32> to vector<32xf32>
      %266 = vector.shape_cast %265 : vector<32xf32> to vector<32x1xf32>
      %267 = tpu.reciprocal %266 {approx = true} : vector<32x1xf32> -> vector<32x1xf32>
      %268 = vector.broadcast %267 : vector<32x1xf32> to vector<32x32xf32>
      %269 = arith.mulf %264, %268 : vector<32x32xf32>
      %cst_113 = arith.constant dense<0.000000e+00> : vector<32x16xf32>
      %270 = tpu.matmul %269, %257, %cst_113 {dimension_numbers = #tpu.dot_dimension_numbers<[1], [0], [0], [1], [0, 0, 1, 1], [], []>} : vector<32x32xf32>, vector<32x16xf32>, vector<32x16xf32> -> vector<32x16xf32>
      %271 = vector.extract_strided_slice %252 {offsets = [0, 16], sizes = [32, 16], strides = [1, 1]} : vector<32x96xf32> to vector<32x16xf32>
      %cst_114 = arith.constant 2.500000e-01 : f32
      %272 = vector.broadcast %cst_114 : f32 to vector<32x16xf32>
      %273 = arith.mulf %271, %272 : vector<32x16xf32>
      %274 = vector.extract_strided_slice %252 {offsets = [0, 48], sizes = [32, 16], strides = [1, 1]} : vector<32x96xf32> to vector<32x16xf32>
      %275 = vector.extract_strided_slice %252 {offsets = [0, 80], sizes = [32, 16], strides = [1, 1]} : vector<32x96xf32> to vector<32x16xf32>
      %cst_115 = arith.constant dense<0.000000e+00> : vector<32x32xf32>
      %276 = tpu.matmul %273, %274, %cst_115 {dimension_numbers = #tpu.dot_dimension_numbers<[1], [1], [0], [0], [0, 0, 1, 0], [], []>} : vector<32x16xf32>, vector<32x16xf32>, vector<32x32xf32> -> vector<32x32xf32>
      %277 = arith.addf %276, %127 : vector<32x32xf32>
      %cst_116 = arith.constant dense<0xFF800000> : vector<32xf32>
      %278 = vector.multi_reduction <maximumf>, %277, %cst_116 [1] : vector<32x32xf32> to vector<32xf32>
      %279 = vector.shape_cast %278 : vector<32xf32> to vector<32x1xf32>
      %280 = vector.broadcast %279 : vector<32x1xf32> to vector<32x32xf32>
      %281 = arith.subf %277, %280 : vector<32x32xf32>
      %282 = math.exp %281 : vector<32x32xf32>
      %cst_117 = arith.constant dense<0.000000e+00> : vector<32xf32>
      %283 = vector.multi_reduction <add>, %282, %cst_117 [1] : vector<32x32xf32> to vector<32xf32>
      %284 = vector.shape_cast %283 : vector<32xf32> to vector<32x1xf32>
      %285 = tpu.reciprocal %284 {approx = true} : vector<32x1xf32> -> vector<32x1xf32>
      %286 = vector.broadcast %285 : vector<32x1xf32> to vector<32x32xf32>
      %287 = arith.mulf %282, %286 : vector<32x32xf32>
      %cst_118 = arith.constant dense<0.000000e+00> : vector<32x16xf32>
      %288 = tpu.matmul %287, %275, %cst_118 {dimension_numbers = #tpu.dot_dimension_numbers<[1], [0], [0], [1], [0, 0, 1, 1], [], []>} : vector<32x32xf32>, vector<32x16xf32>, vector<32x16xf32> -> vector<32x16xf32>
      %289 = tpu.concatenate %270, %288 in 1 : vector<32x16xf32>, vector<32x16xf32> -> vector<32x32xf32>
      %c288 = arith.constant 288 : index
      %c0_119 = arith.constant 0 : index
      %290 = vector.load %arg5[%c288, %c0_119] : memref<416x96xf32, #tpu.memory_space<vmem>>, vector<32x32xf32>
      %cst_120 = arith.constant dense<0.000000e+00> : vector<32x32xf32>
      %291 = tpu.matmul %289, %290, %cst_120 {dimension_numbers = #tpu.dot_dimension_numbers<[1], [0], [0], [1], [0, 0, 1, 1], [], []>} : vector<32x32xf32>, vector<32x32xf32>, vector<32x32xf32> -> vector<32x32xf32>
      %c13 = arith.constant 13 : index
      %c0_121 = arith.constant 0 : index
      %292 = vector.load %arg4[%c13, %c0_121] : memref<20x96xf32, #tpu.memory_space<vmem>>, vector<1x32xf32>
      %293 = vector.broadcast %292 : vector<1x32xf32> to vector<32x32xf32>
      %294 = arith.addf %291, %293 : vector<32x32xf32>
      %295 = arith.addf %294, %247 : vector<32x32xf32>
      %c14 = arith.constant 14 : index
      %c0_122 = arith.constant 0 : index
      %296 = vector.load %arg4[%c14, %c0_122] : memref<20x96xf32, #tpu.memory_space<vmem>>, vector<1x32xf32>
      %c15 = arith.constant 15 : index
      %c0_123 = arith.constant 0 : index
      %297 = vector.load %arg4[%c15, %c0_123] : memref<20x96xf32, #tpu.memory_space<vmem>>, vector<1x32xf32>
      %cst_124 = arith.constant dense<0.000000e+00> : vector<32xf32>
      %298 = vector.multi_reduction <add>, %295, %cst_124 [1] : vector<32x32xf32> to vector<32xf32>
      %299 = vector.shape_cast %298 : vector<32xf32> to vector<32x1xf32>
      %cst_125 = arith.constant 3.200000e+01 : f32
      %300 = vector.broadcast %cst_125 : f32 to vector<32x1xf32>
      %301 = arith.divf %299, %300 : vector<32x1xf32>
      %302 = vector.broadcast %301 : vector<32x1xf32> to vector<32x32xf32>
      %303 = arith.subf %295, %302 : vector<32x32xf32>
      %304 = arith.mulf %303, %303 : vector<32x32xf32>
      %cst_126 = arith.constant dense<0.000000e+00> : vector<32xf32>
      %305 = vector.multi_reduction <add>, %304, %cst_126 [1] : vector<32x32xf32> to vector<32xf32>
      %306 = vector.shape_cast %305 : vector<32xf32> to vector<32x1xf32>
      %cst_127 = arith.constant 3.200000e+01 : f32
      %307 = vector.broadcast %cst_127 : f32 to vector<32x1xf32>
      %308 = arith.divf %306, %307 : vector<32x1xf32>
      %309 = vector.broadcast %301 : vector<32x1xf32> to vector<32x32xf32>
      %310 = arith.subf %295, %309 : vector<32x32xf32>
      %cst_128 = arith.constant 9.99999996E-13 : f32
      %311 = vector.broadcast %cst_128 : f32 to vector<32x1xf32>
      %312 = arith.addf %308, %311 : vector<32x1xf32>
      %313 = math.rsqrt %312 : vector<32x1xf32>
      %314 = vector.broadcast %313 : vector<32x1xf32> to vector<32x32xf32>
      %315 = arith.mulf %310, %314 : vector<32x32xf32>
      %316 = vector.broadcast %296 : vector<1x32xf32> to vector<32x32xf32>
      %317 = arith.mulf %315, %316 : vector<32x32xf32>
      %318 = vector.broadcast %297 : vector<1x32xf32> to vector<32x32xf32>
      %319 = arith.addf %317, %318 : vector<32x32xf32>
      %c320 = arith.constant 320 : index
      %c0_129 = arith.constant 0 : index
      %320 = vector.load %arg5[%c320, %c0_129] : memref<416x96xf32, #tpu.memory_space<vmem>>, vector<32x64xf32>
      %cst_130 = arith.constant dense<0.000000e+00> : vector<32x64xf32>
      %321 = tpu.matmul %319, %320, %cst_130 {dimension_numbers = #tpu.dot_dimension_numbers<[1], [0], [0], [1], [0, 0, 1, 1], [], []>} : vector<32x32xf32>, vector<32x64xf32>, vector<32x64xf32> -> vector<32x64xf32>
      %c16 = arith.constant 16 : index
      %c0_131 = arith.constant 0 : index
      %322 = vector.load %arg4[%c16, %c0_131] : memref<20x96xf32, #tpu.memory_space<vmem>>, vector<1x64xf32>
      %323 = vector.broadcast %322 : vector<1x64xf32> to vector<32x64xf32>
      %324 = arith.addf %321, %323 : vector<32x64xf32>
      %325 = arith.mulf %324, %324 : vector<32x64xf32>
      %326 = arith.mulf %324, %325 : vector<32x64xf32>
      %cst_132 = arith.constant 4.471500e-02 : f32
      %327 = vector.broadcast %cst_132 : f32 to vector<32x64xf32>
      %328 = arith.mulf %327, %326 : vector<32x64xf32>
      %329 = arith.addf %324, %328 : vector<32x64xf32>
      %cst_133 = arith.constant 0.797884583 : f32
      %330 = vector.broadcast %cst_133 : f32 to vector<32x64xf32>
      %331 = arith.mulf %330, %329 : vector<32x64xf32>
      %332 = math.tanh %331 : vector<32x64xf32>
      %cst_134 = arith.constant 1.000000e+00 : f32
      %333 = vector.broadcast %cst_134 : f32 to vector<32x64xf32>
      %334 = arith.addf %333, %332 : vector<32x64xf32>
      %cst_135 = arith.constant 5.000000e-01 : f32
      %335 = vector.broadcast %cst_135 : f32 to vector<32x64xf32>
      %336 = arith.mulf %335, %334 : vector<32x64xf32>
      %337 = arith.mulf %324, %336 : vector<32x64xf32>
      %c352 = arith.constant 352 : index
      %c0_136 = arith.constant 0 : index
      %338 = vector.load %arg5[%c352, %c0_136] : memref<416x96xf32, #tpu.memory_space<vmem>>, vector<64x32xf32>
      %cst_137 = arith.constant dense<0.000000e+00> : vector<32x32xf32>
      %339 = tpu.matmul %337, %338, %cst_137 {dimension_numbers = #tpu.dot_dimension_numbers<[1], [0], [0], [1], [0, 0, 1, 1], [], []>} : vector<32x64xf32>, vector<64x32xf32>, vector<32x32xf32> -> vector<32x32xf32>
      %c17 = arith.constant 17 : index
      %c0_138 = arith.constant 0 : index
      %340 = vector.load %arg4[%c17, %c0_138] : memref<20x96xf32, #tpu.memory_space<vmem>>, vector<1x32xf32>
      %341 = vector.broadcast %340 : vector<1x32xf32> to vector<32x32xf32>
      %342 = arith.addf %339, %341 : vector<32x32xf32>
      %343 = arith.addf %342, %319 : vector<32x32xf32>
      %c18 = arith.constant 18 : index
      %c0_139 = arith.constant 0 : index
      %344 = vector.load %arg4[%c18, %c0_139] : memref<20x96xf32, #tpu.memory_space<vmem>>, vector<1x32xf32>
      %c19 = arith.constant 19 : index
      %c0_140 = arith.constant 0 : index
      %345 = vector.load %arg4[%c19, %c0_140] : memref<20x96xf32, #tpu.memory_space<vmem>>, vector<1x32xf32>
      %cst_141 = arith.constant dense<0.000000e+00> : vector<32xf32>
      %346 = vector.multi_reduction <add>, %343, %cst_141 [1] : vector<32x32xf32> to vector<32xf32>
      %347 = vector.shape_cast %346 : vector<32xf32> to vector<32x1xf32>
      %cst_142 = arith.constant 3.200000e+01 : f32
      %348 = vector.broadcast %cst_142 : f32 to vector<32x1xf32>
      %349 = arith.divf %347, %348 : vector<32x1xf32>
      %350 = vector.broadcast %349 : vector<32x1xf32> to vector<32x32xf32>
      %351 = arith.subf %343, %350 : vector<32x32xf32>
      %352 = arith.mulf %351, %351 : vector<32x32xf32>
      %cst_143 = arith.constant dense<0.000000e+00> : vector<32xf32>
      %353 = vector.multi_reduction <add>, %352, %cst_143 [1] : vector<32x32xf32> to vector<32xf32>
      %354 = vector.shape_cast %353 : vector<32xf32> to vector<32x1xf32>
      %cst_144 = arith.constant 3.200000e+01 : f32
      %355 = vector.broadcast %cst_144 : f32 to vector<32x1xf32>
      %356 = arith.divf %354, %355 : vector<32x1xf32>
      %357 = vector.broadcast %349 : vector<32x1xf32> to vector<32x32xf32>
      %358 = arith.subf %343, %357 : vector<32x32xf32>
      %cst_145 = arith.constant 9.99999996E-13 : f32
      %359 = vector.broadcast %cst_145 : f32 to vector<32x1xf32>
      %360 = arith.addf %356, %359 : vector<32x1xf32>
      %361 = math.rsqrt %360 : vector<32x1xf32>
      %362 = vector.broadcast %361 : vector<32x1xf32> to vector<32x32xf32>
      %363 = arith.mulf %358, %362 : vector<32x32xf32>
      %364 = vector.broadcast %344 : vector<1x32xf32> to vector<32x32xf32>
      %365 = arith.mulf %363, %364 : vector<32x32xf32>
      %366 = vector.broadcast %345 : vector<1x32xf32> to vector<32x32xf32>
      %367 = arith.addf %365, %366 : vector<32x32xf32>
      %368 = vector.extract_strided_slice %367 {offsets = [0, 0], sizes = [1, 32], strides = [1, 1]} : vector<32x32xf32> to vector<1x32xf32>
      %369 = vector.extract_strided_slice %367 {offsets = [16, 0], sizes = [1, 32], strides = [1, 1]} : vector<32x32xf32> to vector<1x32xf32>
      %370 = tpu.concatenate %368, %369 in 0 : vector<1x32xf32>, vector<1x32xf32> -> vector<2x32xf32>
      %c64 = arith.constant 64 : index
      %c0_146 = arith.constant 0 : index
      %371 = vector.load %arg5[%c64, %c0_146] : memref<416x96xf32, #tpu.memory_space<vmem>>, vector<32x32xf32>
      %cst_147 = arith.constant dense<0.000000e+00> : vector<2x32xf32>
      %372 = tpu.matmul %370, %371, %cst_147 {dimension_numbers = #tpu.dot_dimension_numbers<[1], [0], [0], [1], [0, 0, 1, 1], [], []>} : vector<2x32xf32>, vector<32x32xf32>, vector<2x32xf32> -> vector<2x32xf32>
      %c3 = arith.constant 3 : index
      %c0_148 = arith.constant 0 : index
      %373 = vector.load %arg4[%c3, %c0_148] : memref<20x96xf32, #tpu.memory_space<vmem>>, vector<1x32xf32>
      %374 = vector.broadcast %373 : vector<1x32xf32> to vector<2x32xf32>
      %375 = arith.addf %372, %374 : vector<2x32xf32>
      %376 = math.tanh %375 : vector<2x32xf32>
      %c0_149 = arith.constant 0 : index
      %c0_150 = arith.constant 0 : index
      %377 = vector.load %arg10[%c0_149, %c0_150] : memref<2x32xf32, #tpu.memory_space<vmem>>, vector<2x32xf32>
      tpu.vector_store %arg10[%c0_149, %c0_150], %376 {strides = array<i32>} : memref<2x32xf32, #tpu.memory_space<vmem>>, vector<2x32xf32>,
    } else {
    }
    %c0 = arith.constant 0 : index
    %c0_1 = arith.constant 0 : index
    %c0_2 = arith.constant 0 : index
    %3 = vector.load %arg6[%c0, %c0_1, %c0_2] : memref<1x43x512xf32, #tpu.memory_space<vmem>>, vector<1x32x512xf32>
    %4 = vector.shape_cast %3 : vector<1x32x512xf32> to vector<32x512xf32>
    %c0_3 = arith.constant 0 : index
    %c0_4 = arith.constant 0 : index
    %5 = vector.load %arg10[%c0_3, %c0_4] : memref<2x32xf32, #tpu.memory_space<vmem>>, vector<2x32xf32>
    %cst = arith.constant dense<0.000000e+00> : vector<2x512xf32>
    %6 = tpu.matmul %5, %4, %cst {dimension_numbers = #tpu.dot_dimension_numbers<[1], [0], [0], [1], [0, 0, 1, 1], [], []>} : vector<2x32xf32>, vector<32x512xf32>, vector<2x512xf32> -> vector<2x512xf32>
    %c0_5 = arith.constant 0 : index
    %c32 = arith.constant 32 : index
    %c0_6 = arith.constant 0 : index
    %7 = vector.load %arg6[%c0_5, %c32, %c0_6] : memref<1x43x512xf32, #tpu.memory_space<vmem>>, vector<1x1x512xf32>
    %8 = vector.shape_cast %7 : vector<1x1x512xf32> to vector<1x512xf32>
    %9 = vector.broadcast %8 : vector<1x512xf32> to vector<2x512xf32>
    %10 = arith.addf %6, %9 : vector<2x512xf32>
    %c0_7 = arith.constant 0 : index
    %c33 = arith.constant 33 : index
    %c0_8 = arith.constant 0 : index
    %11 = vector.load %arg6[%c0_7, %c33, %c0_8] : memref<1x43x512xf32, #tpu.memory_space<vmem>>, vector<1x1x512xf32>
    %12 = vector.shape_cast %11 : vector<1x1x512xf32> to vector<1x512xf32>
    %c0_9 = arith.constant 0 : index
    %c34 = arith.constant 34 : index
    %c0_10 = arith.constant 0 : index
    %13 = vector.load %arg6[%c0_9, %c34, %c0_10] : memref<1x43x512xf32, #tpu.memory_space<vmem>>, vector<1x1x512xf32>
    %14 = vector.shape_cast %13 : vector<1x1x512xf32> to vector<1x512xf32>
    %cst_11 = arith.constant dense<0.000000e+00> : vector<2xf32>
    %15 = vector.multi_reduction <add>, %10, %cst_11 [1] : vector<2x512xf32> to vector<2xf32>
    %16 = vector.shape_cast %15 : vector<2xf32> to vector<2x1xf32>
    %cst_12 = arith.constant 5.120000e+02 : f32
    %17 = vector.broadcast %cst_12 : f32 to vector<2x1xf32>
    %18 = arith.divf %16, %17 : vector<2x1xf32>
    %19 = vector.broadcast %18 : vector<2x1xf32> to vector<2x512xf32>
    %20 = arith.subf %10, %19 : vector<2x512xf32>
    %21 = arith.mulf %20, %20 : vector<2x512xf32>
    %cst_13 = arith.constant dense<0.000000e+00> : vector<2xf32>
    %22 = vector.multi_reduction <add>, %21, %cst_13 [1] : vector<2x512xf32> to vector<2xf32>
    %23 = vector.shape_cast %22 : vector<2xf32> to vector<2x1xf32>
    %cst_14 = arith.constant 5.120000e+02 : f32
    %24 = vector.broadcast %cst_14 : f32 to vector<2x1xf32>
    %25 = arith.divf %23, %24 : vector<2x1xf32>
    %26 = vector.broadcast %18 : vector<2x1xf32> to vector<2x512xf32>
    %27 = arith.subf %10, %26 : vector<2x512xf32>
    %cst_15 = arith.constant 9.99999974E-6 : f32
    %28 = vector.broadcast %cst_15 : f32 to vector<2x1xf32>
    %29 = arith.addf %25, %28 : vector<2x1xf32>
    %30 = math.rsqrt %29 : vector<2x1xf32>
    %31 = vector.broadcast %30 : vector<2x1xf32> to vector<2x512xf32>
    %32 = arith.mulf %27, %31 : vector<2x512xf32>
    %33 = vector.broadcast %12 : vector<1x512xf32> to vector<2x512xf32>
    %34 = arith.mulf %32, %33 : vector<2x512xf32>
    %35 = vector.broadcast %14 : vector<1x512xf32> to vector<2x512xf32>
    %36 = arith.addf %34, %35 : vector<2x512xf32>
    %cst_16 = arith.constant 0.000000e+00 : f32
    %37 = vector.broadcast %cst_16 : f32 to vector<2x512xf32>
    %38 = arith.cmpf ogt, %36, %37 : vector<2x512xf32>
    %cst_17 = arith.constant 0.00999999977 : f32
    %39 = vector.broadcast %cst_17 : f32 to vector<2x512xf32>
    %40 = arith.mulf %39, %36 : vector<2x512xf32>
    %41 = arith.select %38, %36, %40 : vector<2x512xi1>, vector<2x512xf32>
    %c0_18 = arith.constant 0 : index
    %c0_19 = arith.constant 0 : index
    %c0_20 = arith.constant 0 : index
    %42 = vector.load %arg7[%c0_18, %c0_19, %c0_20] : memref<1x512x256xf32, #tpu.memory_space<vmem>>, vector<1x512x256xf32>
    %43 = vector.shape_cast %42 : vector<1x512x256xf32> to vector<512x256xf32>
    %cst_21 = arith.constant dense<0.000000e+00> : vector<2x256xf32>
    %44 = tpu.matmul %41, %43, %cst_21 {dimension_numbers = #tpu.dot_dimension_numbers<[1], [0], [0], [1], [0, 0, 1, 1], [], []>} : vector<2x512xf32>, vector<512x256xf32>, vector<2x256xf32> -> vector<2x256xf32>
    %c0_22 = arith.constant 0 : index
    %c35 = arith.constant 35 : index
    %c0_23 = arith.constant 0 : index
    %45 = vector.load %arg6[%c0_22, %c35, %c0_23] : memref<1x43x512xf32, #tpu.memory_space<vmem>>, vector<1x1x256xf32>
    %46 = vector.shape_cast %45 : vector<1x1x256xf32> to vector<1x256xf32>
    %47 = vector.broadcast %46 : vector<1x256xf32> to vector<2x256xf32>
    %48 = arith.addf %44, %47 : vector<2x256xf32>
    %c0_24 = arith.constant 0 : index
    %c36 = arith.constant 36 : index
    %c0_25 = arith.constant 0 : index
    %49 = vector.load %arg6[%c0_24, %c36, %c0_25] : memref<1x43x512xf32, #tpu.memory_space<vmem>>, vector<1x1x256xf32>
    %50 = vector.shape_cast %49 : vector<1x1x256xf32> to vector<1x256xf32>
    %c0_26 = arith.constant 0 : index
    %c37 = arith.constant 37 : index
    %c0_27 = arith.constant 0 : index
    %51 = vector.load %arg6[%c0_26, %c37, %c0_27] : memref<1x43x512xf32, #tpu.memory_space<vmem>>, vector<1x1x256xf32>
    %52 = vector.shape_cast %51 : vector<1x1x256xf32> to vector<1x256xf32>
    %cst_28 = arith.constant dense<0.000000e+00> : vector<2xf32>
    %53 = vector.multi_reduction <add>, %48, %cst_28 [1] : vector<2x256xf32> to vector<2xf32>
    %54 = vector.shape_cast %53 : vector<2xf32> to vector<2x1xf32>
    %cst_29 = arith.constant 2.560000e+02 : f32
    %55 = vector.broadcast %cst_29 : f32 to vector<2x1xf32>
    %56 = arith.divf %54, %55 : vector<2x1xf32>
    %57 = vector.broadcast %56 : vector<2x1xf32> to vector<2x256xf32>
    %58 = arith.subf %48, %57 : vector<2x256xf32>
    %59 = arith.mulf %58, %58 : vector<2x256xf32>
    %cst_30 = arith.constant dense<0.000000e+00> : vector<2xf32>
    %60 = vector.multi_reduction <add>, %59, %cst_30 [1] : vector<2x256xf32> to vector<2xf32>
    %61 = vector.shape_cast %60 : vector<2xf32> to vector<2x1xf32>
    %cst_31 = arith.constant 2.560000e+02 : f32
    %62 = vector.broadcast %cst_31 : f32 to vector<2x1xf32>
    %63 = arith.divf %61, %62 : vector<2x1xf32>
    %64 = vector.broadcast %56 : vector<2x1xf32> to vector<2x256xf32>
    %65 = arith.subf %48, %64 : vector<2x256xf32>
    %cst_32 = arith.constant 9.99999974E-6 : f32
    %66 = vector.broadcast %cst_32 : f32 to vector<2x1xf32>
    %67 = arith.addf %63, %66 : vector<2x1xf32>
    %68 = math.rsqrt %67 : vector<2x1xf32>
    %69 = vector.broadcast %68 : vector<2x1xf32> to vector<2x256xf32>
    %70 = arith.mulf %65, %69 : vector<2x256xf32>
    %71 = vector.broadcast %50 : vector<1x256xf32> to vector<2x256xf32>
    %72 = arith.mulf %70, %71 : vector<2x256xf32>
    %73 = vector.broadcast %52 : vector<1x256xf32> to vector<2x256xf32>
    %74 = arith.addf %72, %73 : vector<2x256xf32>
    %cst_33 = arith.constant 0.000000e+00 : f32
    %75 = vector.broadcast %cst_33 : f32 to vector<2x256xf32>
    %76 = arith.cmpf ogt, %74, %75 : vector<2x256xf32>
    %cst_34 = arith.constant 0.00999999977 : f32
    %77 = vector.broadcast %cst_34 : f32 to vector<2x256xf32>
    %78 = arith.mulf %77, %74 : vector<2x256xf32>
    %79 = arith.select %76, %74, %78 : vector<2x256xi1>, vector<2x256xf32>
    %c0_35 = arith.constant 0 : index
    %c39 = arith.constant 39 : index
    %c0_36 = arith.constant 0 : index
    %80 = vector.load %arg6[%c0_35, %c39, %c0_36] : memref<1x43x512xf32, #tpu.memory_space<vmem>>, vector<1x4x256xf32>
    %81 = vector.shape_cast %80 : vector<1x4x256xf32> to vector<4x256xf32>
    %cst_37 = arith.constant dense<0.000000e+00> : vector<2x4xf32>
    %82 = tpu.matmul %79, %81, %cst_37 {dimension_numbers = #tpu.dot_dimension_numbers<[1], [1], [0], [0], [0, 0, 1, 0], [], []>} : vector<2x256xf32>, vector<4x256xf32>, vector<2x4xf32> -> vector<2x4xf32>
    %c0_38 = arith.constant 0 : index
    %c38 = arith.constant 38 : index
    %c0_39 = arith.constant 0 : index
    %83 = vector.load %arg6[%c0_38, %c38, %c0_39] : memref<1x43x512xf32, #tpu.memory_space<vmem>>, vector<1x1x4xf32>
    %84 = vector.shape_cast %83 : vector<1x1x4xf32> to vector<1x4xf32>
    %85 = vector.broadcast %84 : vector<1x4xf32> to vector<2x4xf32>
    %86 = arith.addf %82, %85 : vector<2x4xf32>
    %c2_i32 = arith.constant 2 : i32
    %87 = arith.muli %arg0, %c2_i32 : i32
    %88 = arith.index_cast %87 : i32 to index
    %c0_40 = arith.constant 0 : index
    %89 = vector.load %arg8[%88, %c0_40] : memref<26x4xf32, #tpu.memory_space<vmem>>, vector<2x4xf32>
    tpu.vector_store %arg8[%88, %c0_40], %86 {strides = array<i32>} : memref<26x4xf32, #tpu.memory_space<vmem>>, vector<2x4xf32>,
    return
  }
  func.func @transform_0(%arg0: i32) -> (i32, i32) {
    %c0_i32 = arith.constant 0 : i32
    %c0_i32_0 = arith.constant 0 : i32
    %c0_i32_1 = arith.constant 0 : i32
    return %c0_i32, %c0_i32_0 : i32, i32
  }
  func.func @transform_1(%arg0: i32) -> (i32, i32) {
    %c0_i32 = arith.constant 0 : i32
    %c0_i32_0 = arith.constant 0 : i32
    %c0_i32_1 = arith.constant 0 : i32
    return %c0_i32, %c0_i32_0 : i32, i32
  }
  func.func @transform_2(%arg0: i32) -> (i32, i32) {
    %c0_i32 = arith.constant 0 : i32
    %c0_i32_0 = arith.constant 0 : i32
    %c0_i32_1 = arith.constant 0 : i32
    return %c0_i32, %c0_i32_0 : i32, i32
  }
  func.func @transform_3(%arg0: i32) -> (i32, i32) {
    %c0_i32 = arith.constant 0 : i32
    %c0_i32_0 = arith.constant 0 : i32
    %c0_i32_1 = arith.constant 0 : i32
    return %c0_i32, %c0_i32_0 : i32, i32
  }
  func.func @transform_4(%arg0: i32) -> (i32, i32) {
    %c0_i32 = arith.constant 0 : i32
    %c0_i32_0 = arith.constant 0 : i32
    %c0_i32_1 = arith.constant 0 : i32
    return %c0_i32, %c0_i32_0 : i32, i32
  }
  func.func @transform_5(%arg0: i32) -> (i32, i32, i32) {
    %c0_i32 = arith.constant 0 : i32
    %c0_i32_0 = arith.constant 0 : i32
    %c0_i32_1 = arith.constant 0 : i32
    return %arg0, %c0_i32, %c0_i32_0 : i32, i32, i32
  }
  func.func @transform_6(%arg0: i32) -> (i32, i32, i32) {
    %c0_i32 = arith.constant 0 : i32
    %c0_i32_0 = arith.constant 0 : i32
    %c0_i32_1 = arith.constant 0 : i32
    return %arg0, %c0_i32, %c0_i32_0 : i32, i32, i32
  }
  func.func @transform_7(%arg0: i32) -> (i32, i32) {
    %c0_i32 = arith.constant 0 : i32
    %c0_i32_0 = arith.constant 0 : i32
    %c0_i32_1 = arith.constant 0 : i32
    return %c0_i32, %c0_i32_0 : i32, i32
  }
}

</mosaic_0001>

<bundles_post_ra>
// kernel: eq.8
= control target key start
LH: loop header
LB: loop body
LE: loop exit
PB: predicated region body
PF: predicated region fallthrough
CT: control target
= control target key end

     0   :  { %vm8_vm0 = vcmask 130048   ;;  %vm14_vm1 = vcmask 261248   ;;  %s42_s0 = inlined_call_operand.vmem [shape: s32[2,16], index: 0, kind: input, shape index: {}]   ;;  %s43_s1 = inlined_call_operand.vmem [shape: s32[32], index: 1, kind: output, shape index: {}]  }
   0x1   :  { %v5_v0 = vld [vmem:[%s42_s0] sm:$0x3]  ;;  %s25_s0 = smov 16  }
   0x2   :  { %6 = vst [vmem:[#allocation1] sm:$0x3] %v5_v0 }
   0x9   :  { %v11_v1 = vld [vmem:[#allocation1 + $0x1] sm:$0x1]   ;;  %v7_v2 = vld [vmem:[#allocation1] sm:$0x1]  }
   0xa   :  { %12 = vrot.lane.b32.xlu0 %v11_v1, %s25_s0  ;;  %9 = vst.msk [vmem:[#allocation0] sm:$0x1] %vm8_vm0, %v7_v2  }
  0x7c   :  { %v13_v3 = vpop.permute.xlu0 %12  }
  0x7d   :  { %15 = vst.msk [vmem:[#allocation0] sm:$0x1] %vm14_vm1, %v13_v3  }
  0x84   :  { %v20_v4 = vld [vmem:[#allocation0] sm:$0x1] }
  0x85   :  { %23 = vst [vmem:[%s43_s1] sm:$0x1] %v20_v4 }

// kernel: visual_bert_last_cls_forward.1
= control target key start
LH: loop header
LB: loop body
LE: loop exit
PB: predicated region body
PF: predicated region fallthrough
CT: control target
= control target key end

     0   :  { %12 = vsyncpa [#allocation5], 0  ;;  %s5657_s0 = inlined_call_operand.vmem [shape: f32[32,32], index: 0, kind: input, shape index: {}]   ;;  %s5658_s1 = inlined_call_operand.vmem [shape: f32[32,32], index: 1, kind: input, shape index: {}]   ;;  %s5659_s2 = inlined_call_operand.hbm [shape: f32[2,64], index: 2, kind: input, shape index: {}]   ;;  %s5660_s3 = inlined_call_operand.hbm [shape: f32[20,96], index: 3, kind: input, shape index: {}]   ;;  %s5661_s4 = inlined_call_operand.hbm [shape: f32[416,96], index: 4, kind: input, shape index: {}]   ;;  %s5662_s5 = inlined_call_operand.hbm [shape: f32[13,43,512], index: 5, kind: input, shape index: {}]   ;;  %s5663_s6 = inlined_call_operand.hbm [shape: f32[13,512,256], index: 6, kind: input, shape index: {}]   ;;  %s5664_s7 = inlined_call_operand.vmem [shape: f32[26,4], index: 7, kind: output, shape index: {}]  }
   0x1   :  { %13 = vsyncpa [#allocation7], 0 }
   0x2   :  { %14 = vsyncpa [#allocation10], 0 }
   0x3   :  { %16 = vsyncpa [#allocation10 + $0x1], 0  ;;  %s4775_s24 = smov 0   ;;  %s4777_s25 = smov 0  }
   0x4   :  { %s4779_s26 = smov 0   ;;  %s4781_s27 = smov 0  }
   0x5 LB: > { %s4794_s28 = sadd.s32 4294967295, %s4713_s27   ;;  %p147_p0 = scmp.ne.s32.totalorder %s4705_s25, %s4701_s24  ;;  %s4713_s27 = sphi %s4781_s27, %s5689_s27   ;;  %s4709_s26 = sphi %s4779_s26, %s5688_s26   ;;  %s4705_s25 = sphi %s4777_s25, %s5687_s25   ;;  %s4701_s24 = sphi %s4775_s24, %s5686_s24  }
   0x6   : > { %p5667_p1 = scmp.eq.s32.totalorder %s4794_s28, 0  ;;  %p3769_p2 = scmp.ge.s32.totalorder %s4713_s27, 1 }
   0x7   : > { %p205_p3 = scmp.lt.s32.totalorder %s4713_s27, 14  ;;  %s4715_s8 = smov [#allocation6]  }
   0x8   : > { %p4803_p5 = por %p5667_p1, %p147_p0  ;;  %s234_s9 = sshll.u32 %s4715_s8, 4  ;;  %s235_s9 = int_to_ptr.vmem [resolvable:$true] %s234_s9 }
   0x9   : > { %p4807_p6 = pnand %p3769_p2, %p205_p3  ;;  %s4820_s11 = sadd.s32 1, %s4713_s27  }
   0xa   : > { %s5671_s29 = scalar_select %p4803_p5, 1, 0 }
   0xb   : > { %s5672_s30 = scalar_select %p4807_p6, 1, 0 }
   0xc   : > { %p4337_p7 = pneg %p4807_p6  ;;  %s134_s12 = sadd.s32 1, %s4709_s26 }
   0xd   : > { %s131_s13 = ssub.s32 %s4713_s27, %s4820_s11  ;;  %s4548_s14 = scalar_lea.vmem %s235_s9, 384 }
   0xe   : > { %p4815_p8 = pnand %p4337_p7, %p5667_p1  ;;  %p4549_p10 = scmp.ne.s32.totalorder %s235_s9, %s4548_s14 }
   0xf   : > { %p4556_p13 = scmp.lt.s32.totalorder %s235_s9, %s235_s9  ;;  %p4557_p0 = scmp.lt.s32.totalorder %s4548_s14, %s4548_s14 }
  0x10   : > { %p5668_p9 = pneg %p4815_p8 }
  0x11   : > { %p4558_p2 = por %p4557_p0, %p4556_p13 }
  0x12   : > { %p4551_p11 = pnand %p4549_p10, %p5668_p9 }
  0x14   : > { %p4552_p12 = pneg %p4551_p11 }
  0x16   : > { %p4559_p3 = pnand %p4558_p2, %p4552_p12 }
  0x18   : > { %4562 = shalt.err (!%p4559_p3)
}
  0x19   : > { %s5665_s15 = smov 128   ;;  %s5666_s16 = smov 8  }
  0x1a   : > { %4343 = dma.hbm_to_vmem [thread:$0]  (!%p4815_p8), %s5660_s3, 384, %s235_s9, [#allocation7], %s5665_s15, %s5665_s15, %s5666_s16  }
  0x1b   : > { %p132_p7 = scmp.eq.s32.totalorder %s131_s13, 0  ;;  %p141_p10 = scmp.ne.s32.totalorder %s4709_s26, %s4705_s25 }
  0x1c   : > { %p142_p11 = scmp.eq.s32.totalorder %s4713_s27, 0  ;;  %p4357_p12 = scmp.lt.s32.totalorder %s4713_s27, 13 }
  0x1d   : > { %s4843_s19 = scalar_select %p132_p7, %s4709_s26, %s134_s12  }
  0x1e   : > { %p143_p13 = por %p142_p11, %p141_p10  ;;  %s261_s20 = sand.u32 1, %s4713_s27  }
  0x1f   : > { %s263_s21 = sand.u32 1, %s4709_s26   ;;  %s4319_s24 = smul.u32 3072, %s4713_s27 }
  0x20   : > { %s4318_s22 = smul.u32 192, %s263_s21  ;;  %p4849_p0 = pnand %p4357_p12, %p143_p13 }
  0x21   : > { %s4857_s13 = scalar_lea.hbm %s5662_s5, %s4319_s24  ;;  %s4861_s17 = scalar_lea.sflag [#allocation10], %s261_s20 }
  0x22   : > { %s265_s12 = scalar_lea.vmem [#allocation9], %s4318_s22  ;;  %s4563_s18 = scalar_lea.hbm %s4857_s13, 3072 }
  0x23   : > { %s272_s14 = sshll.u32 %s265_s12, 4  ;;  %p4564_p2 = scmp.ne.s32.totalorder %s4857_s13, %s4563_s18  ;;  %s4859_s14 = int_to_ptr.vmem [resolvable:$true] %s272_s14 }
  0x24   : > { %p4565_p3 = pneg %p4849_p0  ;;  %s4568_s9 = scalar_lea.hbm %s5662_s5, 39936 }
  0x25   : > { %p4569_p11 = scmp.lt.s32.totalorder %s4857_s13, %s5662_s5  ;;  %p4570_p12 = scmp.lt.s32.totalorder %s4568_s9, %s4563_s18 }
  0x26   : > { %p4566_p7 = pnand %p4565_p3, %p4564_p2 }
  0x27   : > { %p4571_p13 = por %p4570_p12, %p4569_p11 }
  0x28   : > { %p4567_p10 = pneg %p4566_p7 }
  0x2a   : > { %p4572_p4 = pnand %p4571_p13, %p4567_p10 }
  0x2c   : > { %4575 = shalt.err (!%p4572_p4)
}
  0x2d   : > { %s4576_s20 = scalar_lea.vmem %s4859_s14, 3072  ;;  %s4718_s22 = smov [#allocation9]  }
  0x2e   : > { %p4577_p1 = scmp.ne.s32.totalorder %s4859_s14, %s4576_s20  ;;  %s4581_s12 = sshll.u32 %s4718_s22, 4  ;;  %s4582_s12 = int_to_ptr.vmem [resolvable:$false] %s4581_s12 }
  0x2f   : > { %s4583_s8 = scalar_lea.vmem %s4582_s12, 6144  ;;  %p4584_p9 = scmp.lt.s32.totalorder %s4859_s14, %s4582_s12 }
  0x30   : > { %p4579_p2 = pnand %p4577_p1, %p4565_p3  ;;  %p4585_p5 = scmp.lt.s32.totalorder %s4583_s8, %s4576_s20 }
  0x32   : > { %p4580_p7 = pneg %p4579_p2  ;;  %p4586_p6 = por %p4585_p5, %p4584_p9 }
  0x34   : > { %p4587_p11 = pnand %p4586_p6, %p4580_p7 }
  0x36   : > { %4590 = shalt.err (!%p4587_p11)
}
  0x37   : > { %s4719_s15 = smov 512   ;;  %s4720_s16 = smov 32  }
  0x38   : > { %4350 = dma.hbm_to_vmem [thread:$0]  (!%p4849_p0), %s4857_s13, 3072, %s4859_s14, %s4861_s17, %s4719_s15, %s4719_s15, %s4720_s16  }
  0x39   : > { %s4890_s18 = sshll.u32 %s263_s21, 10  ;;  %s4721_s24 = smov [#allocation4]  }
  0x3a   : > { %s224_s9 = sshll.u32 %s4721_s24, 4  ;;  %p5675_p4 = pneg %p4815_p8  ;;  %s225_s9 = int_to_ptr.vmem [resolvable:$true] %s224_s9 }
  0x3b   : > { %s4602_s20 = scalar_lea.vmem %s225_s9, 32  ;;  %p4610_p9 = scmp.lt.s32.totalorder %s225_s9, %s225_s9 }
  0x3c   : > { %p4603_p1 = scmp.ne.s32.totalorder %s225_s9, %s4602_s20  ;;  %p4611_p10 = scmp.lt.s32.totalorder %s4602_s20, %s4602_s20 }
  0x3e   : > { %p4605_p5 = pnand %p4603_p1, %p5675_p4  ;;  %p4612_p12 = por %p4611_p10, %p4610_p9 }
  0x40   : > { %p4606_p6 = pneg %p4605_p5 }
  0x42   : > { %p4613_p13 = pnand %p4612_p12, %p4606_p6 }
  0x44   : > { %4616 = shalt.err (!%p4613_p13)
}
  0x45   : > { %4340 = dma.hbm_to_vmem [thread:$0]  (!%p4815_p8), %s5659_s2, 32, %s225_s9, [#allocation5]  }
  0x46   : > { %s4722_s21 = smov [#allocation8]   ;;  %s3897_s12 = sshll.u32 %s4713_s27, 14 }
  0x47   : > { %s247_s22 = sshll.u32 %s4722_s21, 4  ;;  %s4904_s16 = scalar_lea.hbm %s5663_s6, %s3897_s12  ;;  %s248_s22 = int_to_ptr.vmem [resolvable:$true] %s247_s22 }
  0x48   : > { %s4628_s24 = scalar_lea.vmem %s248_s22, 6656  ;;  %p5676_p7 = pmov %p5675_p4 }
  0x49   : > { %p4629_p2 = scmp.ne.s32.totalorder %s248_s22, %s4628_s24  ;;  %p4636_p4 = scmp.lt.s32.totalorder %s248_s22, %s248_s22 }
  0x4a   : > { %p4637_p5 = scmp.lt.s32.totalorder %s4628_s24, %s4628_s24 }
  0x4b   : > { %p4631_p11 = pnand %p4629_p2, %p5676_p7 }
  0x4c   : > { %p4638_p6 = por %p4637_p5, %p4636_p4 }
  0x4d   : > { %p4632_p1 = pneg %p4631_p11 }
  0x4f   : > { %p4639_p9 = pnand %p4638_p6, %p4632_p1 }
  0x51   : > { %4642 = shalt.err (!%p4639_p9)
}
  0x52   : > { %s5677_s27 = smov 8   ;;  %s5678_s9 = smov 128  }
  0x53   : > { %4346 = dma.hbm_to_vmem [thread:$0]  (!%p4815_p8), %s5661_s4, 6656, %s248_s22, [#allocation7], %s5678_s9, %s5678_s9, %s5677_s27  }
  0x54   : > { %s286_s14 = scalar_lea.vmem [#allocation11], %s4890_s18  ;;  %s4643_s12 = scalar_lea.hbm %s4904_s16, 16384 }
  0x55   : > { %s293_s21 = sshll.u32 %s286_s14, 4  ;;  %p4644_p10 = scmp.ne.s32.totalorder %s4904_s16, %s4643_s12  ;;  %s4918_s21 = int_to_ptr.vmem [resolvable:$true] %s293_s21 }
  0x56   : > { %s4648_s15 = scalar_lea.hbm %s5663_s6, 212992  ;;  %p4649_p2 = scmp.lt.s32.totalorder %s4904_s16, %s5663_s6 }
  0x57   : > { %p4646_p12 = pnand %p4644_p10, %p4565_p3  ;;  %p4650_p7 = scmp.lt.s32.totalorder %s4648_s15, %s4643_s12 }
  0x59   : > { %p4647_p13 = pneg %p4646_p12  ;;  %p4651_p8 = por %p4650_p7, %p4649_p2 }
  0x5b   : > { %p4652_p11 = pnand %p4651_p8, %p4647_p13 }
  0x5d   : > { %4655 = shalt.err (!%p4652_p11)
}
  0x5e   : > { %s4656_s18 = scalar_lea.vmem %s4918_s21, 16384  ;;  %s4723_s22 = smov [#allocation11]  }
  0x5f   : > { %p4657_p1 = scmp.ne.s32.totalorder %s4918_s21, %s4656_s18  ;;  %s4661_s27 = sshll.u32 %s4723_s22, 4  ;;  %s4662_s27 = int_to_ptr.vmem [resolvable:$false] %s4661_s27 }
  0x60   : > { %s4663_s9 = scalar_lea.vmem %s4662_s27, 32768  ;;  %p4664_p6 = scmp.lt.s32.totalorder %s4918_s21, %s4662_s27 }
  0x61   : > { %p4659_p4 = pnand %p4657_p1, %p4565_p3  ;;  %p4665_p9 = scmp.lt.s32.totalorder %s4663_s9, %s4656_s18 }
  0x63   : > { %p4660_p5 = pneg %p4659_p4  ;;  %p4666_p10 = por %p4665_p9, %p4664_p6 }
  0x65   : > { %p4667_p12 = pnand %p4666_p10, %p4660_p5 }
  0x67   : > { %4670 = shalt.err (!%p4667_p12)
}
  0x68   : > { %s4724_s13 = smov 256   ;;  %s4725_s14 = smov 16  }
  0x69   : > { %4353 = dma.hbm_to_vmem [thread:$0]  (!%p4849_p0), %s4904_s16, 16384, %s4918_s21, %s4861_s17, %s4724_s13, %s4724_s13, %s4725_s14  }
  0x6a   : > { %p5679_p3 = scmp.ne.s32.totalorder %s5672_s30, 0 }
  0x6b   : > { %p5680_p13 = scmp.eq.s32.totalorder (!%p5679_p3), %s4794_s28, 0 }
  0x6c   : > { %305 = sbr.rel (%p5679_p3) target bundleno = 7505 (0x1d51), region = 48 }
  0x71   : > { %4688 = dma.done.wait (%p5680_p13), [#allocation5], 32   ;;  %p5681_p2 = pmov %p5680_p13 }
  0x73   : > { %4690 = vsyncadd (%p5681_p2), [#allocation5], 4294967264  ;;  %p5682_p7 = pmov %p5681_p2 }
  0x74   : > { %p5683_p8 = pmov %p5681_p2 }
  0x75   : > { %4692 = dma.done.wait (%p5682_p7), [#allocation7], 7040  }
  0x76   : > { %4694 = vsyncadd (%p5683_p8), [#allocation7], 4294960256  ;;  %s319_s23 = sand.u32 1, %s4794_s28   ;;  %s321_s17 = sand.u32 1, %s4705_s25  }
  0x77   : > { %s4320_s16 = smul.u32 192, %s321_s17  ;;  %s320_s30 = scalar_lea.sflag [#allocation10], %s319_s23 }
  0x78   : > { %p5684_p0 = scmp.ne.s32.totalorder %s5671_s29, 0 }
  0x79   : > { %s4955_s21 = scalar_lea.vmem [#allocation9], %s4320_s16 }
  0x7a   : > { %4696 = dma.done.wait (%p5684_p0), %s320_s30, 19456  }
  0x7b   : > { %4698 = vsyncadd (%p5684_p0), %s320_s30, 4294947840  ;;  %s3782_s12 = sshll.u32 %s321_s17, 10  ;;  %p5685_p11 = scmp.ne.s32.totalorder %s4794_s28, 0 }
  0x7c   : > { %s4961_s10 = scalar_lea.vmem [#allocation11], %s3782_s12  ;;  %s4728_s9 = smov (!%p5685_p11), 96  }
  0x7d   : > { %366 = sbr.rel (%p5685_p11) target bundleno = 6264 (0x1878), region = 72  ;;  %s4729_s13 = smov (!%p5685_p11), 80  }
  0x7e   : > { %s4730_s14 = smov (!%p5685_p11), 112   ;;  %s4731_s24 = smov (!%p5685_p11), 64  }
  0x7f   : > { %s4732_s20 = smov (!%p5685_p11), 48   ;;  %s4733_s18 = smov (!%p5685_p11), 16  }
  0x82   : > { %v384_v0 = vld [vmem:[#allocation8 + $0x38] sm:$0xff]  ;;  %v4726_v1 = vmov 0.0   ;;  %v383_v2 = vld [vmem:[#allocation8 + $0x30] sm:$0xff]  ;;  %vm4727_vm0 = vmmov 0   ;;  %vm371_vm1 = vcmask 261120   ;;  %v382_v3 = vld [vmem:[#allocation8 + $0x28] sm:$0xff] }
  0x83   : > { %4048 = vmatprep.subr.mxu0 %v4726_v1  ;;  %4064 = vmatprep.mubr.msk.f32.mxu0 %vm4727_vm0, %v4726_v1  ;;  %v367_v4 = vld [vmem:[%s5657_s0] sm:$0xff]  ;;  %v369_v5 = vld [vmem:[%s5657_s0 + $0x10] sm:$0xff]  ;;  %v368_v6 = vld [vmem:[%s5657_s0 + $0x8] sm:$0xff]  ;;  %vm390_vm2 = vcmask 523264   ;;  %vm464_vm3 = vcmask 253952   ;;  %vm466_vm4 = vcmask 254977  }
  0x84   : > { %4049 = vmatpush3.msra.mxu0 %v384_v0  ;;  %372 = vst.msk [vmem:[#allocation2] sm:$0xff] %vm371_vm1, %v367_v4  ;;  %374 = vst.msk [vmem:[#allocation2 + $0x10] sm:$0xff] %vm371_vm1, %v369_v5  ;;  %v370_v7 = vld [vmem:[%s5657_s0 + $0x18] sm:$0xff]  ;;  %v379_v10 = vld [vmem:[#allocation8 + $0x10] sm:$0xff]  ;;  %vm669_vm5 = vcmask 130048   ;;  %vm2869_vm6 = vcmask 1040384  }
  0x85   : > { %4050 = vmatprep.subr.mxu0 %v4726_v1  ;;  %373 = vst.msk [vmem:[#allocation2 + $0x8] sm:$0xff] %vm371_vm1, %v368_v6  ;;  %v381_v8 = vld [vmem:[#allocation8 + $0x20] sm:$0xff]  ;;  %375 = vst.msk [vmem:[#allocation2 + $0x18] sm:$0xff] %vm371_vm1, %v370_v7  ;;  %v380_v9 = vld [vmem:[#allocation8 + $0x18] sm:$0xff]  ;;  %vm2954_vm7 = vcmask 254976  }
  0x86   : > { %4051 = vmatpush3.msra.mxu0 %v383_v2  ;;  %v378_v11 = vld [vmem:[#allocation8 + $0x8] sm:$0xff]  ;;  %v377_v16 = vld [vmem:[#allocation8] sm:$0xff]  ;;  %v550_v54 = vld [vmem:[#allocation8 + $0x78] sm:$0xff] }
  0x87   : > { %4052 = vmatprep.subr.mxu0 %v4726_v1  ;;  %v376_v17 = vld [vmem:[#allocation4] sm:$0x3]  ;;  %v3784_v18 = vld [vmem:[#allocation6] ss:$0 sm:$0xff]  ;;  %v3786_v50 = vld [vmem:[#allocation6 + $0x1] ss:$0 sm:$0xff]  ;;  %4067 = vmatprep.subr.mxu1 %v550_v54 }
  0x88   : > { %4053 = vmatpush3.msra.mxu0 %v382_v3  ;;  %v3787_v52 = vld [vmem:[#allocation6 + $0x2] ss:$0 sm:$0xff]  ;;  %v549_v55 = vld [vmem:[#allocation8 + $0x70] sm:$0xff]  ;;  %4068 = vmatpush3.msra.mxu1 %v550_v54  ;;  %v547_v58 = vld [vmem:[#allocation8 + $0x60] sm:$0xff] }
  0x89   : > { %4054 = vmatprep.subr.mxu0 %v4726_v1  ;;  %v548_v57 = vld [vmem:[#allocation8 + $0x68] sm:$0xff]  ;;  %4069 = vmatprep.subr.mxu1 %v549_v55 }
  0x8a   : > { %4055 = vmatpush3.msra.mxu0 %v381_v8  ;;  %4070 = vmatpush3.msra.mxu1 %v549_v55  ;;  %v5095_v55 = vld [vmem:[%s5658_s1 + $0x10] sm:$0xff] }
  0x8b   : > { %4056 = vmatprep.subr.mxu0 %v4726_v1  ;;  %v468_v12 = vld [vmem:[#allocation2] sm:$0xff]  ;;  %v470_v13 = vld [vmem:[#allocation2 + $0x10] sm:$0xff]  ;;  %4071 = vmatprep.subr.mxu1 %v548_v57 }
  0x8c   : > { %4057 = vmatpush3.msra.mxu0 %v380_v9  ;;  %v474_v14 = vsel %vm371_vm1, %v468_v12, 0.0  ;;  %v480_v15 = vsel %vm371_vm1, %v470_v13, 0.0  ;;  %4072 = vmatpush3.msra.mxu1 %v548_v57 }
  0x8d   : > { %4058 = vmatprep.subr.mxu0 %v4726_v1  ;;  %475 = vadd.xlane.f32.xlu0 %v474_v14 }
  0x8e   : > { %4059 = vmatpush3.msra.mxu0 %v379_v10  ;;  %481 = vadd.xlane.f32.xlu1 %v480_v15 }
  0x8f   : > { %4060 = vmatprep.subr.mxu0 %v4726_v1  ;;  %4073 = vmatprep.subr.mxu1 %v547_v58 }
  0x90   : > { %4061 = vmatpush3.msra.mxu0 %v378_v11  ;;  %4074 = vmatpush3.msra.mxu1 %v547_v58 }
  0x91   : > { %4062 = vmatprep.subr.mxu0 %v4726_v1 }
  0x92   : > { %4063 = vmatpush3.msra.mxu0 %v377_v16 }
  0x93   : > { %4065 = vmatmul.mubr.msk.f32.vlgmr.msra.gmra.mxu0 %vm390_vm2, %v376_v17  ;;  %v3788_v17 = vld [vmem:[#allocation6 + $0x4] ss:$0 sm:$0xff] }
 0x116   : > { %v476_v19 = vpop.xlane.xlu0 %475 }
 0x117   : > { %v487_v22 = vmul.f32 0.03125, %v476_v19  ;;  %v482_v24 = vpop.xlane.xlu1 %481 }
 0x118   : > { %v489_v26 = vmul.f32 0.03125, %v482_v24 }
 0x119   : > { %v491_v25 = vsub.f32 %v468_v12, %v487_v22 }
 0x11a   : > { %v493_v27 = vsub.f32 %v470_v13, %v489_v26 }
 0x11b   : > { %v495_v28 = vmul.f32 %v491_v25, %v491_v25 }
 0x11c   : > { %v497_v34 = vmul.f32 %v493_v27, %v493_v27 }
 0x11d   : > { %v499_v33 = vsel %vm371_vm1, %v495_v28, 0.0 }
 0x11e   : > { %v505_v35 = vsel %vm371_vm1, %v497_v34, 0.0 }
 0x153   : > { %v460_v20 = vpop.f32.mrf.mxu0 }
 0x154   : > { %v461_v21 = vadd.f32 %v3784_v18, %v460_v20 }
 0x155   : > { %v4066_v23 = vpop.f32.mrf.mxu0 }
 0x156   : > { %465 = vst.msk [vmem:[#allocation2 + $0x8] sm:$0x1] %vm464_vm3, %v461_v21 }
 0x157   : > { %467 = vst.msk [vmem:[#allocation2 + $0x17] sm:$0x2] %vm466_vm4, %v461_v21 }
 0x15d   : > { %v469_v30 = vld [vmem:[#allocation2 + $0x8] sm:$0xff] }
 0x15e   : > { %v471_v29 = vld [vmem:[#allocation2 + $0x18] sm:$0xff]  ;;  %v477_v32 = vsel %vm371_vm1, %v469_v30, 0.0 }
 0x15f   : > { %v483_v31 = vsel %vm371_vm1, %v471_v29, 0.0  ;;  %478 = vadd.xlane.f32.xlu0 %v477_v32 }
 0x160   : > { %484 = vadd.xlane.f32.xlu1 %v483_v31 }
 0x163   : > { %500 = vadd.xlane.f32.xlu0 %v499_v33 }
 0x167   : > { %506 = vadd.xlane.f32.xlu0 %v505_v35 }
 0x1e8   : > { %v479_v37 = vpop.xlane.xlu0 %478 }
 0x1e9   : > { %v485_v36 = vpop.xlane.xlu1 %484  ;;  %v488_v39 = vmul.f32 0.03125, %v479_v37 }
 0x1ea   : > { %v490_v38 = vmul.f32 0.03125, %v485_v36 }
 0x1eb   : > { %v492_v41 = vsub.f32 %v469_v30, %v488_v39 }
 0x1ec   : > { %v494_v40 = vsub.f32 %v471_v29, %v490_v38  ;;  %v501_v42 = vpop.xlane.xlu0 %500 }
 0x1ed   : > { %v511_v43 = vmul.f32 0.03125, %v501_v42  ;;  %v496_v44 = vmul.f32 %v492_v41, %v492_v41  ;;  %v5075_v42 = vld [vmem:[%s5658_s1 + $0x8] sm:$0xff] }
 0x1ee   : > { %v498_v47 = vmul.f32 %v494_v40, %v494_v40 }
 0x1ef   : > { %v515_v45 = vadd.f32 1e-12, %v511_v43  ;;  %v502_v46 = vsel %vm371_vm1, %v496_v44, 0.0  ;;  %v5080_v44 = vld [vmem:[%s5658_s1] sm:$0xff] }
 0x1f0   : > { %503 = vadd.xlane.f32.xlu1 %v502_v46  ;;  %v508_v48 = vsel %vm371_vm1, %v498_v47, 0.0  ;;  %v507_v59 = vpop.xlane.xlu0 %506  ;;  %v5086_v47 = vld [vmem:[%s5658_s1 + $0x18] sm:$0xff] }
 0x1f1   : > { %4411 = vrsqrt.f32 %v515_v45  ;;  %v513_v60 = vmul.f32 0.03125, %v507_v59 }
 0x1f3   : > { %v517_v61 = vadd.f32 1e-12, %v513_v60 }
 0x1f4   : > { %509 = vadd.xlane.f32.xlu1 %v508_v48 }
 0x1f5   : > { %4413 = vrsqrt.f32 %v517_v61 }
 0x1fe   : > { %v4412_v49 = vpop.eup %4411 }
 0x1ff   : > { %v523_v51 = vmul.f32 %v4412_v49, %v491_v25 }
 0x201   : > { %v531_v53 = vmul.f32 %v3786_v50, %v523_v51 }
 0x202   : > { %v4414_v5 = vpop.eup %4413 }
 0x203   : > { %v5000_v56 = vadd.f32 %v3787_v52, %v531_v53  ;;  %v525_v6 = vmul.f32 %v4414_v5, %v493_v27 }
 0x205   : > { %4075 = vmatprep.mubr.msk.f32.mxu1 %vm371_vm1, %v5000_v56  ;;  %v533_v9 = vmul.f32 %v3786_v50, %v525_v6 }
 0x207   : > { %v5006_v14 = vadd.f32 %v3787_v52, %v533_v9 }
 0x279   : > { %v504_v62 = vpop.xlane.xlu1 %503 }
 0x27a   : > { %v512_v63 = vmul.f32 0.03125, %v504_v62 }
 0x27c   : > { %v516_v0 = vadd.f32 1e-12, %v512_v63 }
 0x27d   : > { %v510_v2 = vpop.xlane.xlu1 %509 }
 0x27e   : > { %4415 = vrsqrt.f32 %v516_v0  ;;  %v514_v3 = vmul.f32 0.03125, %v510_v2 }
 0x280   : > { %v518_v4 = vadd.f32 1e-12, %v514_v3 }
 0x282   : > { %4417 = vrsqrt.f32 %v518_v4 }
 0x28b   : > { %v4416_v7 = vpop.eup %4415 }
 0x28c   : > { %v524_v8 = vmul.f32 %v4416_v7, %v492_v41 }
 0x28e   : > { %v532_v10 = vmul.f32 %v3786_v50, %v524_v8 }
 0x28f   : > { %v4418_v11 = vpop.eup %4417 }
 0x290   : > { %v5004_v12 = vadd.f32 %v3787_v52, %v532_v10  ;;  %v526_v13 = vmul.f32 %v4418_v11, %v494_v40 }
 0x292   : > { %4076 = vmatmul.mubr.msk.f32.vlgmr.msra.gmra.mxu1 %vm371_vm1, %v5004_v12  ;;  %v534_v15 = vmul.f32 %v3786_v50, %v526_v13 }
 0x293   : > { %4078 = vmatprep.mubr.msk.f32.mxu1 %vm371_vm1, %v5006_v14 }
 0x294   : > { %v5012_v16 = vadd.f32 %v3787_v52, %v534_v15 }
 0x296   : > { %4079 = vmatmul.mubr.msk.f32.gmra.mxu1 %vm371_vm1, %v5012_v16 }
 0x352   : > { %v4077_v18 = vpop.f32.mrf.mxu1 }
 0x353   : > { %v5016_v19 = vadd.f32 %v4077_v18, %v3788_v17 }
 0x354   : > { %v634_v20 = vpop.f32.mrf.mxu1 }
 0x355   : > { %v5018_v21 = vadd.f32 %v3788_v17, %v634_v20  ;;  %663 = vrot.lane.b32.xlu1 %v5016_v19, %s4728_s9  ;;  %v654_v28 = vmul.f32 0.25, %v5016_v19 }
 0x356   : > { %v4080_v22 = vpop.f32.mrf.mxu1 }
 0x357   : > { %v5022_v23 = vadd.f32 %v4080_v22, %v3788_v17  ;;  %v653_v24 = vmul.f32 0.25, %v5018_v21 }
 0x358   : > { %v644_v25 = vpop.f32.mrf.mxu1 }
 0x359   : > { %v5025_v26 = vadd.f32 %v3788_v17, %v644_v25  ;;  %4089 = vmatprep.mubr.msk.f32.mxu1 %vm669_vm5, %v653_v24  ;;  %667 = vrot.lane.b32.xlu0 %v5022_v23, %s4728_s9  ;;  %v656_v29 = vmul.f32 0.25, %v5022_v23 }
 0x35b   : > { %665 = vrot.lane.b32.xlu1 %v5025_v26, %s4728_s9  ;;  %v655_v27 = vmul.f32 0.25, %v5025_v26 }
 0x35d   : > { %661 = vrot.lane.b32.xlu0 %v5018_v21, %s4728_s9 }
 0x35f   : > { %942 = vrot.lane.b32.xlu1 %v5022_v23, %s4729_s13 }
 0x361   : > { %938 = vrot.lane.b32.xlu0 %v5016_v19, %s4729_s13 }
 0x363   : > { %940 = vrot.lane.b32.xlu1 %v5025_v26, %s4729_s13 }
 0x365   : > { %928 = vrot.lane.b32.xlu0 %v653_v24, %s4730_s14 }
 0x367   : > { %936 = vrot.lane.b32.xlu1 %v5018_v21, %s4729_s13 }
 0x369   : > { %932 = vrot.lane.b32.xlu0 %v655_v27, %s4730_s14 }
 0x36b   : > { %930 = vrot.lane.b32.xlu1 %v654_v28, %s4730_s14 }
 0x36f   : > { %934 = vrot.lane.b32.xlu1 %v656_v29, %s4730_s14 }
 0x3c7   : > { %v664_v30 = vpop.permute.xlu1 %663 }
 0x3cb   : > { %v668_v31 = vpop.permute.xlu0 %667 }
 0x3cc   : > { %4081 = vmatprep.subr.msk.mxu1 %vm669_vm5, %v668_v31 }
 0x3cd   : > { %4082 = vmatpush3.xpose.msk.msra.mxu1 %vm669_vm5, %v668_v31  ;;  %v666_v32 = vpop.permute.xlu1 %665 }
 0x3ce   : > { %4083 = vmatprep.subr.msk.mxu1 %vm669_vm5, %v666_v32 }
 0x3cf   : > { %v662_v33 = vpop.permute.xlu0 %661 }
 0x3d1   : > { %4084 = vmatpush3.xpose.msk.msra.mxu1 %vm669_vm5, %v666_v32  ;;  %v943_v34 = vpop.permute.xlu1 %942 }
 0x3d2   : > { %4085 = vmatprep.subr.msk.mxu1 %vm669_vm5, %v664_v30  ;;  %4109 = vmatprep.subr.msk.mxu0 %vm669_vm5, %v943_v34 }
 0x3d3   : > { %v939_v35 = vpop.permute.xlu0 %938  ;;  %4110 = vmatpush3.xpose.msk.msra.mxu0 %vm669_vm5, %v943_v34 }
 0x3d5   : > { %4086 = vmatpush3.xpose.msk.msra.mxu1 %vm669_vm5, %v664_v30  ;;  %v941_v36 = vpop.permute.xlu1 %940 }
 0x3d6   : > { %4087 = vmatprep.subr.msk.mxu1 %vm669_vm5, %v662_v33  ;;  %4111 = vmatprep.subr.msk.mxu0 %vm669_vm5, %v941_v36 }
 0x3d7   : > { %v929_v37 = vpop.permute.xlu0 %928  ;;  %4112 = vmatpush3.xpose.msk.msra.mxu0 %vm669_vm5, %v941_v36 }
 0x3d8   : > { %4113 = vmatprep.subr.msk.mxu0 %vm669_vm5, %v939_v35  ;;  %4117 = vmatprep.mubr.msk.f32.mxu0 %vm669_vm5, %v929_v37 }
 0x3d9   : > { %4088 = vmatpush3.xpose.msk.msra.mxu1 %vm669_vm5, %v662_v33  ;;  %v937_v38 = vpop.permute.xlu1 %936 }
 0x3db   : > { %4114 = vmatpush3.xpose.msk.msra.mxu0 %vm669_vm5, %v939_v35  ;;  %v933_v40 = vpop.permute.xlu0 %932 }
 0x3dc   : > { %4090 = vmatmul.mubr.msk.f32.vlgmr.msra.gmra.mxu1 %vm669_vm5, %v654_v28  ;;  %4115 = vmatprep.subr.msk.mxu0 %vm669_vm5, %v937_v38 }
 0x3dd   : > { %4092 = vmatprep.mubr.msk.f32.mxu1 %vm669_vm5, %v655_v27  ;;  %v931_v39 = vpop.permute.xlu1 %930 }
 0x3df   : > { %4116 = vmatpush3.xpose.msk.msra.mxu0 %vm669_vm5, %v937_v38 }
 0x3e0   : > { %4093 = vmatmul.mubr.msk.f32.gmra.mxu1 %vm669_vm5, %v656_v29 }
 0x3e1   : > { %v935_v41 = vpop.permute.xlu1 %934 }
 0x3e2   : > { %4118 = vmatmul.mubr.msk.f32.vlgmr.msra.gmra.mxu0 %vm669_vm5, %v931_v39 }
 0x3e3   : > { %4120 = vmatprep.mubr.msk.f32.mxu0 %vm669_vm5, %v933_v40 }
 0x3e6   : > { %4121 = vmatmul.mubr.msk.f32.gmra.mxu0 %vm669_vm5, %v935_v41 }
 0x49c   : > { %v4091_v43 = vpop.f32.mrf.mxu1 }
 0x49d   : > { %v762_v45 = vadd.f32 %v4091_v43, %v5075_v42 }
 0x49e   : > { %v756_v46 = vpop.f32.mrf.mxu1 }
 0x49f   : > { %v757_v48 = vadd.f32 %v756_v46, %v5080_v44  ;;  %v778_v49 = vsel %vm371_vm1, %v762_v45, -inf }
 0x4a0   : > { %779 = vmax.xlane.f32.xlu1 %v778_v49  ;;  %v4094_v50 = vpop.f32.mrf.mxu1 }
 0x4a1   : > { %v772_v51 = vadd.f32 %v4094_v50, %v5086_v47  ;;  %v775_v52 = vsel %vm371_vm1, %v757_v48, -inf }
 0x4a2   : > { %v4119_v53 = vpop.f32.mrf.mxu0  ;;  %776 = vmax.xlane.f32.xlu0 %v775_v52  ;;  %v766_v54 = vpop.f32.mrf.mxu1 }
 0x4a3   : > { %v1032_v57 = vadd.f32 %v4119_v53, %v5075_v42  ;;  %v767_v59 = vadd.f32 %v766_v54, %v5095_v55  ;;  %v784_v61 = vsel %vm371_vm1, %v772_v51, -inf }
 0x4a4   : > { %v1026_v58 = vpop.f32.mrf.mxu0 }
 0x4a5   : > { %v1048_v60 = vsel %vm371_vm1, %v1032_v57, -inf  ;;  %v1027_v0 = vadd.f32 %v1026_v58, %v5080_v44  ;;  %v781_v3 = vsel %vm371_vm1, %v767_v59, -inf }
 0x4a6   : > { %1049 = vmax.xlane.f32.xlu1 %v1048_v60  ;;  %v4122_v62 = vpop.f32.mrf.mxu0  ;;  %785 = vmax.xlane.f32.xlu0 %v784_v61 }
 0x4a7   : > { %v1042_v63 = vadd.f32 %v4122_v62, %v5086_v47  ;;  %v1045_v6 = vsel %vm371_vm1, %v1027_v0, -inf }
 0x4a8   : > { %v1036_v4 = vpop.f32.mrf.mxu0 }
 0x4a9   : > { %v1054_v2 = vsel %vm371_vm1, %v1042_v63, -inf  ;;  %v1037_v5 = vadd.f32 %v1036_v4, %v5095_v55 }
 0x4aa   : > { %1055 = vmax.xlane.f32.xlu1 %v1054_v2  ;;  %782 = vmax.xlane.f32.xlu0 %v781_v3 }
 0x4ab   : > { %v1051_v7 = vsel %vm371_vm1, %v1037_v5, -inf }
 0x4ae   : > { %1046 = vmax.xlane.f32.xlu0 %v1045_v6 }
 0x4b2   : > { %1052 = vmax.xlane.f32.xlu0 %v1051_v7 }
 0x4bb   : > { %823 = vrot.lane.b32.xlu1 %v5025_v26, %s4731_s24 }
 0x4bf   : > { %821 = vrot.lane.b32.xlu1 %v5016_v19, %s4731_s24 }
 0x4c3   : > { %819 = vrot.lane.b32.xlu1 %v5018_v21, %s4731_s24 }
 0x4c7   : > { %1093 = vrot.lane.b32.xlu1 %v5025_v26, %s4732_s20 }
 0x4c8   : > { %825 = vrot.lane.b32.xlu0 %v5022_v23, %s4731_s24 }
 0x4cc   : > { %1095 = vrot.lane.b32.xlu0 %v5022_v23, %s4732_s20 }
 0x529   : > { %v780_v8 = vpop.xlane.xlu1 %779 }
 0x52a   : > { %v788_v9 = vsub.f32 %v762_v45, %v780_v8 }
 0x52b   : > { %v777_v10 = vpop.xlane.xlu0 %776 }
 0x52c   : > { %v793_v11 = vmul.f32 1.442695, %v788_v9  ;;  %v787_v13 = vsub.f32 %v757_v48, %v777_v10 }
 0x52e   : > { %4419 = vpow2.f32 %v793_v11  ;;  %v791_v15 = vmul.f32 1.442695, %v787_v13 }
 0x52f   : > { %v1050_v17 = vpop.xlane.xlu1 %1049  ;;  %v786_v18 = vpop.xlane.xlu0 %785 }
 0x530   : > { %4421 = vpow2.f32 %v791_v15  ;;  %v1058_v20 = vsub.f32 %v1032_v57, %v1050_v17  ;;  %v790_v22 = vsub.f32 %v772_v51, %v786_v18 }
 0x532   : > { %v1063_v24 = vmul.f32 1.442695, %v1058_v20  ;;  %v797_v25 = vmul.f32 1.442695, %v790_v22 }
 0x533   : > { %v1056_v26 = vpop.xlane.xlu1 %1055  ;;  %v783_v27 = vpop.xlane.xlu0 %782 }
 0x534   : > { %4423 = vpow2.f32 %v1063_v24  ;;  %v1060_v28 = vsub.f32 %v1042_v63, %v1056_v26  ;;  %v789_v29 = vsub.f32 %v767_v59, %v783_v27 }
 0x535   : > { %4425 = vpow2.f32 %v797_v25 }
 0x536   : > { %v1067_v23 = vmul.f32 1.442695, %v1060_v28  ;;  %v795_v33 = vmul.f32 1.442695, %v789_v29 }
 0x537   : > { %v1047_v30 = vpop.xlane.xlu0 %1046  ;;  %v824_v32 = vpop.permute.xlu1 %823 }
 0x538   : > { %v1057_v31 = vsub.f32 %v1027_v0, %v1047_v30  ;;  %4427 = vpow2.f32 %v1067_v23  ;;  %v1221_v30 = vld [vmem:[#allocation8 + $0x98] sm:$0xff] }
 0x53a   : > { %v1061_v34 = vmul.f32 1.442695, %v1057_v31  ;;  %v1220_v31 = vld [vmem:[#allocation8 + $0x90] sm:$0xff] }
 0x53b   : > { %v4420_v35 = vpop.eup %4419  ;;  %v1053_v36 = vpop.xlane.xlu0 %1052 }
 0x53c   : > { %4429 = vpow2.f32 %v1061_v34  ;;  %v1059_v37 = vsub.f32 %v1037_v5, %v1053_v36  ;;  %v802_v38 = vsel %vm371_vm1, %v4420_v35, 0.0  ;;  %v822_v43 = vpop.permute.xlu1 %821  ;;  %v1218_v34 = vld [vmem:[#allocation8 + $0x80] sm:$0xff] }
 0x53d   : > { %v4422_v39 = vpop.eup %4421  ;;  %803 = vadd.xlane.f32.xlu1 %v802_v38  ;;  %4431 = vpow2.f32 %v795_v33 }
 0x53e   : > { %v1065_v40 = vmul.f32 1.442695, %v1059_v37  ;;  %v799_v41 = vsel %vm371_vm1, %v4422_v39, 0.0 }
 0x53f   : > { %800 = vadd.xlane.f32.xlu0 %v799_v41  ;;  %v826_v45 = vpop.permute.xlu0 %825 }
 0x540   : > { %4095 = vmatprep.subr.mxu1 %v826_v45  ;;  %4433 = vpow2.f32 %v1065_v40  ;;  %v820_v50 = vpop.permute.xlu1 %819 }
 0x541   : > { %v5122_v46 = vpop.eup %4423  ;;  %4096 = vmatpush3.msra.mxu1 %v826_v45 }
 0x542   : > { %4097 = vmatprep.subr.mxu1 %v824_v32  ;;  %v1072_v48 = vsel %vm371_vm1, %v5122_v46, 0.0  ;;  %v4426_v49 = vpop.eup %4425 }
 0x543   : > { %1073 = vadd.xlane.f32.xlu1 %v1072_v48  ;;  %4098 = vmatpush3.msra.mxu1 %v824_v32  ;;  %v808_v51 = vsel %vm371_vm1, %v4426_v49, 0.0  ;;  %v1096_v53 = vpop.permute.xlu0 %1095  ;;  %v1219_v32 = vld [vmem:[#allocation8 + $0x88] sm:$0xff] }
 0x544   : > { %4099 = vmatprep.subr.mxu1 %v822_v43  ;;  %v1094_v63 = vpop.permute.xlu1 %1093 }
 0x545   : > { %4100 = vmatpush3.msra.mxu1 %v822_v43  ;;  %v5127_v52 = vpop.eup %4427 }
 0x546   : > { %4101 = vmatprep.subr.mxu1 %v820_v50  ;;  %v1078_v57 = vsel %vm371_vm1, %v5127_v52, 0.0 }
 0x547   : > { %809 = vadd.xlane.f32.xlu1 %v808_v51  ;;  %4102 = vmatpush3.msra.mxu1 %v820_v50 }
 0x548   : > { %4123 = vmatprep.subr.mxu1 %v1096_v53 }
 0x549   : > { %v4430_v54 = vpop.eup %4429 }
 0x54a   : > { %v1069_v58 = vsel %vm371_vm1, %v4430_v54, 0.0  ;;  %v4432_v59 = vpop.eup %4431 }
 0x54b   : > { %1079 = vadd.xlane.f32.xlu1 %v1078_v57  ;;  %1070 = vadd.xlane.f32.xlu0 %v1069_v58  ;;  %v805_v60 = vsel %vm371_vm1, %v4432_v59, 0.0 }
 0x54d   : > { %v4434_v61 = vpop.eup %4433 }
 0x54e   : > { %v1075_v62 = vsel %vm371_vm1, %v4434_v61, 0.0 }
 0x54f   : > { %806 = vadd.xlane.f32.xlu0 %v805_v60 }
 0x553   : > { %1076 = vadd.xlane.f32.xlu0 %v1075_v62 }
 0x55c   : > { %1089 = vrot.lane.b32.xlu1 %v5018_v21, %s4732_s20 }
 0x569   : > { %1091 = vrot.lane.b32.xlu0 %v5016_v19, %s4732_s20 }
 0x5c6   : > { %v804_v0 = vpop.xlane.xlu1 %803 }
 0x5c7   : > { %4435 = vrcp.f32 %v804_v0 }
 0x5c8   : > { %v801_v2 = vpop.xlane.xlu0 %800 }
 0x5c9   : > { %4437 = vrcp.f32 %v801_v2 }
 0x5cc   : > { %v1074_v3 = vpop.xlane.xlu1 %1073 }
 0x5d0   : > { %v810_v4 = vpop.xlane.xlu1 %809 }
 0x5d1   : > { %4439 = vrcp.f32 %v810_v4 }
 0x5d4   : > { %v1071_v5 = vpop.xlane.xlu0 %1070  ;;  %v4436_v6 = vpop.eup %4435 }
 0x5d5   : > { %v816_v9 = vmul.f32 %v4436_v6, %v4420_v35  ;;  %4441 = vrcp.f32 %v1071_v5  ;;  %v1080_v19 = vpop.xlane.xlu1 %1079 }
 0x5d6   : > { %v4438_v7 = vpop.eup %4437 }
 0x5d7   : > { %v815_v8 = vmul.f32 %v4438_v7, %v4422_v39 }
 0x5d8   : > { %v807_v10 = vpop.xlane.xlu0 %806 }
 0x5d9   : > { %4443 = vrcp.f32 %v807_v10  ;;  %4103 = vmatprep.mubr.msk.f32.mxu1 %vm371_vm1, %v815_v8  ;;  %v1090_v13 = vpop.permute.xlu1 %1089 }
 0x5da   : > { %4104 = vmatmul.mubr.msk.f32.vlgmr.msra.gmra.mxu1 %vm371_vm1, %v816_v9  ;;  %4445 = vrcp.f32 %v1074_v3 }
 0x5db   : > { %4124 = vmatpush3.msra.mxu1 %v1096_v53  ;;  %v3817_v53 = vld [vmem:[#allocation6 + $0x5] ss:$0 sm:$0xff] }
 0x5dc   : > { %4125 = vmatprep.subr.mxu1 %v1094_v63  ;;  %v1077_v21 = vpop.xlane.xlu0 %1076 }
 0x5dd   : > { %4126 = vmatpush3.msra.mxu1 %v1094_v63  ;;  %4447 = vrcp.f32 %v1077_v21 }
 0x5de   : > { %4449 = vrcp.f32 %v1080_v19  ;;  %v4440_v15 = vpop.eup %4439 }
 0x5df   : > { %v818_v22 = vmul.f32 %v4440_v15, %v4426_v49 }
 0x5e0   : > { %v1092_v11 = vpop.permute.xlu0 %1091 }
 0x5e1   : > { %4127 = vmatprep.subr.mxu1 %v1092_v11 }
 0x5e2   : > { %4128 = vmatpush3.msra.mxu1 %v1092_v11  ;;  %v4442_v17 = vpop.eup %4441 }
 0x5e3   : > { %4129 = vmatprep.subr.mxu1 %v1090_v13  ;;  %v1085_v25 = vmul.f32 %v4442_v17, %v4430_v54 }
 0x5e4   : > { %4130 = vmatpush3.msra.mxu1 %v1090_v13 }
 0x5e5   : > { %4137 = vmatprep.subr.mxu1 %v1221_v30 }
 0x5e6   : > { %v4444_v18 = vpop.eup %4443 }
 0x5e7   : > { %v817_v20 = vmul.f32 %v4444_v18, %v4432_v59  ;;  %v4446_v24 = vpop.eup %4445 }
 0x5e8   : > { %v1086_v27 = vmul.f32 %v4446_v24, %v5122_v46 }
 0x5e9   : > { %4106 = vmatprep.mubr.msk.f32.mxu1 %vm371_vm1, %v817_v20 }
 0x5ea   : > { %v4448_v26 = vpop.eup %4447  ;;  %4107 = vmatmul.mubr.msk.f32.gmra.mxu1 %vm371_vm1, %v818_v22 }
 0x5eb   : > { %4131 = vmatprep.mubr.msk.f32.mxu1 %vm371_vm1, %v1085_v25  ;;  %v4450_v28 = vpop.eup %4449  ;;  %v1087_v23 = vmul.f32 %v4448_v26, %v4434_v61 }
 0x5ec   : > { %v1088_v29 = vmul.f32 %v4450_v28, %v5127_v52 }
 0x5ee   : > { %4132 = vmatmul.mubr.msk.f32.vlgmr.msra.gmra.mxu1 %vm371_vm1, %v1086_v27 }
 0x5ef   : > { %4134 = vmatprep.mubr.msk.f32.mxu1 %vm371_vm1, %v1087_v23  ;;  %4138 = vmatpush3.msra.mxu1 %v1221_v30  ;;  %v1401_v23 = vld [vmem:[#allocation8 + $0xb8] sm:$0xff]  ;;  %v1399_v30 = vld [vmem:[#allocation8 + $0xa8] sm:$0xff] }
 0x5f0   : > { %4139 = vmatprep.subr.mxu1 %v1220_v31  ;;  %4151 = vmatprep.subr.mxu0 %v1401_v23 }
 0x5f1   : > { %4140 = vmatpush3.msra.mxu1 %v1220_v31  ;;  %4152 = vmatpush3.msra.mxu0 %v1401_v23  ;;  %v1398_v31 = vld [vmem:[#allocation8 + $0xa0] sm:$0xff] }
 0x5f2   : > { %4135 = vmatmul.mubr.msk.f32.gmra.mxu1 %vm371_vm1, %v1088_v29  ;;  %4141 = vmatprep.subr.mxu1 %v1219_v32  ;;  %v1400_v29 = vld [vmem:[#allocation8 + $0xb0] sm:$0xff] }
 0x5f3   : > { %4142 = vmatpush3.msra.mxu1 %v1219_v32  ;;  %4153 = vmatprep.subr.mxu0 %v1400_v29 }
 0x5f4   : > { %4143 = vmatprep.subr.mxu1 %v1218_v34  ;;  %4154 = vmatpush3.msra.mxu0 %v1400_v29 }
 0x5f5   : > { %4144 = vmatpush3.msra.mxu1 %v1218_v34  ;;  %4155 = vmatprep.subr.mxu0 %v1399_v30 }
 0x5f6   : > { %4156 = vmatpush3.msra.mxu0 %v1399_v30 }
 0x5f7   : > { %4157 = vmatprep.subr.mxu0 %v1398_v31 }
 0x5f8   : > { %4158 = vmatpush3.msra.mxu0 %v1398_v31 }
 0x69a   : > { %v4105_v33 = vpop.f32.mrf.mxu1 }
 0x69c   : > { %v909_v35 = vpop.f32.mrf.mxu1 }
 0x6aa   : > { %v4108_v36 = vpop.f32.mrf.mxu1 }
 0x6ac   : > { %v919_v37 = vpop.f32.mrf.mxu1 }
 0x6ae   : > { %v4133_v38 = vpop.f32.mrf.mxu1 }
 0x6af   : > { %1204 = vrot.lane.b32.xlu1 %v4133_v38, %s4733_s18 }
 0x6b0   : > { %v1179_v39 = vpop.f32.mrf.mxu1 }
 0x6b1   : > { %1202 = vrot.lane.b32.xlu0 %v1179_v39, %s4733_s18 }
 0x6b2   : > { %v4136_v40 = vpop.f32.mrf.mxu1 }
 0x6b3   : > { %1208 = vrot.lane.b32.xlu1 %v4136_v40, %s4733_s18 }
 0x6b4   : > { %v1189_v41 = vpop.f32.mrf.mxu1 }
 0x6b5   : > { %1206 = vrot.lane.b32.xlu0 %v1189_v41, %s4733_s18 }
 0x721   : > { %v1205_v43 = vpop.permute.xlu1 %1204 }
 0x722   : > { %v1215_v48 = vsel %vm669_vm5, %v4105_v33, %v1205_v43 }
 0x723   : > { %v1203_v45 = vpop.permute.xlu0 %1202 }
 0x724   : > { %v1214_v46 = vsel %vm669_vm5, %v909_v35, %v1203_v45 }
 0x725   : > { %4145 = vmatprep.mubr.msk.f32.mxu1 %vm371_vm1, %v1214_v46  ;;  %v1209_v49 = vpop.permute.xlu1 %1208 }
 0x726   : > { %4146 = vmatmul.mubr.msk.f32.vlgmr.msra.gmra.mxu1 %vm371_vm1, %v1215_v48  ;;  %v1217_v52 = vsel %vm669_vm5, %v4108_v36, %v1209_v49  ;;  %v3822_v49 = vld [vmem:[#allocation6 + $0x6] ss:$0 sm:$0xff] }
 0x727   : > { %v1207_v50 = vpop.permute.xlu0 %1206 }
 0x728   : > { %v1216_v51 = vsel %vm669_vm5, %v919_v37, %v1207_v50 }
 0x729   : > { %4148 = vmatprep.mubr.msk.f32.mxu1 %vm371_vm1, %v1216_v51 }
 0x72a   : > { %4149 = vmatmul.mubr.msk.f32.gmra.mxu1 %vm371_vm1, %v1217_v52 }
 0x7e6   : > { %v4147_v54 = vpop.f32.mrf.mxu1 }
 0x7e7   : > { %v1311_v57 = vadd.f32 %v4147_v54, %v3817_v53 }
 0x7e8   : > { %v1305_v58 = vpop.f32.mrf.mxu1 }
 0x7e9   : > { %v1306_v59 = vadd.f32 %v3817_v53, %v1305_v58  ;;  %v1325_v60 = vadd.f32 %v1311_v57, %v5004_v12 }
 0x7ea   : > { %v4150_v61 = vpop.f32.mrf.mxu1 }
 0x7eb   : > { %v1333_v62 = vsel %vm371_vm1, %v1325_v60, 0.0  ;;  %v1324_v63 = vadd.f32 %v1306_v59, %v5000_v56  ;;  %v1321_v2 = vadd.f32 %v4150_v61, %v3817_v53 }
 0x7ec   : > { %1334 = vadd.xlane.f32.xlu1 %v1333_v62  ;;  %v1315_v0 = vpop.f32.mrf.mxu1 }
 0x7ed   : > { %v1316_v3 = vadd.f32 %v3817_v53, %v1315_v0  ;;  %v1330_v4 = vsel %vm371_vm1, %v1324_v63, 0.0  ;;  %v1327_v7 = vadd.f32 %v1321_v2, %v5012_v16  ;;  %v3823_v53 = vld [vmem:[#allocation6 + $0x7] ss:$0 sm:$0xff] }
 0x7ee   : > { %1331 = vadd.xlane.f32.xlu0 %v1330_v4  ;;  %v1547_v4 = vld [vmem:[#allocation8 + $0xf8] sm:$0xff] }
 0x7ef   : > { %v1326_v5 = vadd.f32 %v1316_v3, %v5006_v14  ;;  %v1339_v12 = vsel %vm371_vm1, %v1327_v7, 0.0  ;;  %4165 = vmatprep.subr.mxu1 %v1547_v4 }
 0x7f0   : > { %4166 = vmatpush3.msra.mxu1 %v1547_v4 }
 0x7f1   : > { %v1336_v6 = vsel %vm371_vm1, %v1326_v5, 0.0 }
 0x7f2   : > { %1337 = vadd.xlane.f32.xlu0 %v1336_v6  ;;  %v1545_v6 = vld [vmem:[#allocation8 + $0xe8] sm:$0xff] }
 0x7f6   : > { %1340 = vadd.xlane.f32.xlu0 %v1339_v12  ;;  %v1543_v12 = vld [vmem:[#allocation8 + $0xd8] sm:$0xff] }
 0x875   : > { %v1335_v8 = vpop.xlane.xlu1 %1334 }
 0x876   : > { %v1343_v9 = vmul.f32 0.03125, %v1335_v8  ;;  %v1542_v8 = vld [vmem:[#allocation8 + $0xd0] sm:$0xff] }
 0x877   : > { %v1332_v56 = vpop.xlane.xlu0 %1331 }
 0x878   : > { %v1347_v10 = vsub.f32 %v1325_v60, %v1343_v9  ;;  %v1342_v19 = vmul.f32 0.03125, %v1332_v56  ;;  %v1541_v9 = vld [vmem:[#allocation8 + $0xc8] sm:$0xff]  ;;  %v1540_v56 = vld [vmem:[#allocation8 + $0xc0] sm:$0xff] }
 0x87a   : > { %v1346_v21 = vsub.f32 %v1324_v63, %v1342_v19  ;;  %v1351_v11 = vmul.f32 %v1347_v10, %v1347_v10 }
 0x87b   : > { %v1338_v13 = vpop.xlane.xlu0 %1337 }
 0x87c   : > { %v1344_v15 = vmul.f32 0.03125, %v1338_v13  ;;  %v1357_v17 = vsel %vm371_vm1, %v1351_v11, 0.0  ;;  %v1350_v14 = vmul.f32 %v1346_v21, %v1346_v21 }
 0x87d   : > { %1358 = vadd.xlane.f32.xlu1 %v1357_v17 }
 0x87e   : > { %v1348_v18 = vsub.f32 %v1326_v5, %v1344_v15  ;;  %v1354_v16 = vsel %vm371_vm1, %v1350_v14, 0.0  ;;  %v1546_v5 = vld [vmem:[#allocation8 + $0xf0] sm:$0xff] }
 0x87f   : > { %1355 = vadd.xlane.f32.xlu0 %v1354_v16  ;;  %v1341_v20 = vpop.xlane.xlu0 %1340  ;;  %4167 = vmatprep.subr.mxu1 %v1546_v5 }
 0x880   : > { %v1345_v22 = vmul.f32 0.03125, %v1341_v20  ;;  %v1352_v24 = vmul.f32 %v1348_v18, %v1348_v18  ;;  %4168 = vmatpush3.msra.mxu1 %v1546_v5 }
 0x881   : > { %4169 = vmatprep.subr.mxu1 %v1545_v6 }
 0x882   : > { %v1349_v25 = vsub.f32 %v1327_v7, %v1345_v22  ;;  %v1360_v26 = vsel %vm371_vm1, %v1352_v24, 0.0  ;;  %4170 = vmatpush3.msra.mxu1 %v1545_v6  ;;  %v1544_v7 = vld [vmem:[#allocation8 + $0xe0] sm:$0xff] }
 0x883   : > { %1361 = vadd.xlane.f32.xlu0 %v1360_v26  ;;  %4171 = vmatprep.subr.mxu1 %v1544_v7 }
 0x884   : > { %v1353_v27 = vmul.f32 %v1349_v25, %v1349_v25  ;;  %4172 = vmatpush3.msra.mxu1 %v1544_v7 }
 0x885   : > { %4173 = vmatprep.subr.mxu1 %v1543_v12 }
 0x886   : > { %v1363_v28 = vsel %vm371_vm1, %v1353_v27, 0.0  ;;  %4174 = vmatpush3.msra.mxu1 %v1543_v12 }
 0x887   : > { %1364 = vadd.xlane.f32.xlu1 %v1363_v28  ;;  %4175 = vmatprep.subr.mxu1 %v1542_v8 }
 0x888   : > { %4176 = vmatpush3.msra.mxu1 %v1542_v8 }
 0x889   : > { %4177 = vmatprep.subr.mxu1 %v1541_v9 }
 0x88a   : > { %4178 = vmatpush3.msra.mxu1 %v1541_v9 }
 0x88b   : > { %4179 = vmatprep.subr.mxu1 %v1540_v56 }
 0x88c   : > { %4180 = vmatpush3.msra.mxu1 %v1540_v56 }
 0x906   : > { %v1359_v32 = vpop.xlane.xlu1 %1358 }
 0x907   : > { %v1367_v33 = vmul.f32 0.03125, %v1359_v32 }
 0x908   : > { %v1356_v34 = vpop.xlane.xlu0 %1355 }
 0x909   : > { %v1371_v35 = vadd.f32 1e-12, %v1367_v33  ;;  %v1366_v36 = vmul.f32 0.03125, %v1356_v34 }
 0x90b   : > { %4451 = vrsqrt.f32 %v1371_v35  ;;  %v1370_v37 = vadd.f32 1e-12, %v1366_v36 }
 0x90c   : > { %v1362_v38 = vpop.xlane.xlu0 %1361 }
 0x90d   : > { %4453 = vrsqrt.f32 %v1370_v37  ;;  %v1368_v39 = vmul.f32 0.03125, %v1362_v38 }
 0x90f   : > { %v1372_v40 = vadd.f32 1e-12, %v1368_v39 }
 0x910   : > { %v1365_v41 = vpop.xlane.xlu1 %1364 }
 0x911   : > { %4455 = vrsqrt.f32 %v1372_v40  ;;  %v1369_v43 = vmul.f32 0.03125, %v1365_v41 }
 0x913   : > { %v1373_v45 = vadd.f32 1e-12, %v1369_v43 }
 0x915   : > { %4457 = vrsqrt.f32 %v1373_v45 }
 0x918   : > { %v4452_v46 = vpop.eup %4451 }
 0x919   : > { %v1379_v48 = vmul.f32 %v4452_v46, %v1347_v10  ;;  %v3824_v10 = vld [vmem:[#allocation6 + $0x8] ss:$0 sm:$0xff] }
 0x91a   : > { %v4454_v50 = vpop.eup %4453 }
 0x91b   : > { %v1378_v51 = vmul.f32 %v4454_v50, %v1346_v21  ;;  %v1387_v52 = vmul.f32 %v3822_v49, %v1379_v48 }
 0x91d   : > { %v1386_v54 = vmul.f32 %v3822_v49, %v1378_v51  ;;  %v5174_v60 = vadd.f32 %v3823_v53, %v1387_v52 }
 0x91e   : > { %v4456_v57 = vpop.eup %4455 }
 0x91f   : > { %v5172_v58 = vadd.f32 %v3823_v53, %v1386_v54  ;;  %v1380_v59 = vmul.f32 %v4456_v57, %v1348_v18 }
 0x921   : > { %4159 = vmatprep.mubr.msk.f32.mxu0 %vm371_vm1, %v5172_v58  ;;  %v1388_v61 = vmul.f32 %v3822_v49, %v1380_v59 }
 0x922   : > { %v4458_v62 = vpop.eup %4457  ;;  %4160 = vmatmul.mubr.msk.f32.vlgmr.msra.gmra.mxu0 %vm371_vm1, %v5174_v60 }
 0x923   : > { %v5180_v63 = vadd.f32 %v3823_v53, %v1388_v61  ;;  %v1381_v0 = vmul.f32 %v4458_v62, %v1349_v25 }
 0x925   : > { %4162 = vmatprep.mubr.msk.f32.mxu0 %vm371_vm1, %v5180_v63  ;;  %v1389_v2 = vmul.f32 %v3822_v49, %v1381_v0  ;;  %v3829_v0 = vld [vmem:[#allocation6 + $0x9] ss:$0 sm:$0xff] }
 0x927   : > { %v5184_v3 = vadd.f32 %v3823_v53, %v1389_v2 }
 0x929   : > { %4163 = vmatmul.mubr.msk.f32.gmra.mxu0 %vm371_vm1, %v5184_v3 }
 0x9e2   : > { %v4161_v19 = vpop.f32.mrf.mxu0 }
 0x9e3   : > { %v1491_v21 = vadd.f32 %v4161_v19, %v3824_v10 }
 0x9e4   : > { %v1485_v11 = vpop.f32.mrf.mxu0 }
 0x9e5   : > { %v1505_v13 = vmul.f32 %v1491_v21, %v1491_v21  ;;  %v1486_v15 = vadd.f32 %v3824_v10, %v1485_v11 }
 0x9e7   : > { %v1509_v17 = vmul.f32 %v1505_v13, %v1491_v21  ;;  %v1504_v14 = vmul.f32 %v1486_v15, %v1486_v15 }
 0x9e9   : > { %v1513_v18 = vmul.f32 0.044715, %v1509_v17  ;;  %v1508_v16 = vmul.f32 %v1504_v14, %v1486_v15  ;;  %v4164_v20 = vpop.f32.mrf.mxu0 }
 0x9ea   : > { %v1501_v22 = vadd.f32 %v4164_v20, %v3824_v10 }
 0x9eb   : > { %v1517_v24 = vadd.f32 %v1513_v18, %v1491_v21  ;;  %v1512_v25 = vmul.f32 0.044715, %v1508_v16  ;;  %v1495_v26 = vpop.f32.mrf.mxu0 }
 0x9ec   : > { %v1507_v27 = vmul.f32 %v1501_v22, %v1501_v22  ;;  %v1496_v28 = vadd.f32 %v3824_v10, %v1495_v26 }
 0x9ed   : > { %v1521_v23 = vmul.f32 0.7978846, %v1517_v24  ;;  %v1516_v29 = vadd.f32 %v1512_v25, %v1486_v15 }
 0x9ee   : > { %v1511_v30 = vmul.f32 %v1507_v27, %v1501_v22  ;;  %v1506_v31 = vmul.f32 %v1496_v28, %v1496_v28 }
 0x9ef   : > { %4459 = vtanh.f32 %v1521_v23  ;;  %v1520_v32 = vmul.f32 0.7978846, %v1516_v29 }
 0x9f0   : > { %v1515_v33 = vmul.f32 0.044715, %v1511_v30  ;;  %v1510_v34 = vmul.f32 %v1506_v31, %v1496_v28 }
 0x9f1   : > { %4461 = vtanh.f32 %v1520_v32 }
 0x9f2   : > { %v1519_v35 = vadd.f32 %v1515_v33, %v1501_v22  ;;  %v1514_v36 = vmul.f32 0.044715, %v1510_v34  ;;  %v1727_v34 = vld [vmem:[#allocation8 + $0x118] sm:$0xff] }
 0x9f3   : > { %4187 = vmatprep.subr.mxu0 %v1727_v34 }
 0x9f4   : > { %v1523_v37 = vmul.f32 0.7978846, %v1519_v35  ;;  %v1518_v38 = vadd.f32 %v1514_v36, %v1496_v28  ;;  %v1726_v35 = vld [vmem:[#allocation8 + $0x110] sm:$0xff]  ;;  %4188 = vmatpush3.msra.mxu0 %v1727_v34  ;;  %v1725_v36 = vld [vmem:[#allocation8 + $0x108] sm:$0xff] }
 0x9f5   : > { %4189 = vmatprep.subr.mxu0 %v1726_v35 }
 0x9f6   : > { %4463 = vtanh.f32 %v1523_v37  ;;  %v1522_v39 = vmul.f32 0.7978846, %v1518_v38  ;;  %4190 = vmatpush3.msra.mxu0 %v1726_v35  ;;  %v1724_v37 = vld [vmem:[#allocation8 + $0x100] sm:$0xff] }
 0x9f7   : > { %4191 = vmatprep.subr.mxu0 %v1725_v36 }
 0x9f8   : > { %4465 = vtanh.f32 %v1522_v39  ;;  %4192 = vmatpush3.msra.mxu0 %v1725_v36 }
 0x9f9   : > { %4193 = vmatprep.subr.mxu0 %v1724_v37 }
 0x9fa   : > { %4194 = vmatpush3.msra.mxu0 %v1724_v37 }
 0x9fc   : > { %v4460_v40 = vpop.eup %4459 }
 0x9fd   : > { %v1529_v41 = vadd.f32 1.0, %v4460_v40 }
 0x9fe   : > { %v4462_v43 = vpop.eup %4461 }
 0x9ff   : > { %v1528_v45 = vadd.f32 1.0, %v4462_v43  ;;  %v1533_v46 = vmul.f32 0.5, %v1529_v41 }
 0xa01   : > { %v1532_v48 = vmul.f32 0.5, %v1528_v45  ;;  %v1537_v51 = vmul.f32 %v1533_v46, %v1491_v21 }
 0xa03   : > { %v4464_v49 = vpop.eup %4463  ;;  %v1536_v50 = vmul.f32 %v1532_v48, %v1486_v15 }
 0xa04   : > { %v1531_v52 = vadd.f32 1.0, %v4464_v49 }
 0xa05   : > { %v4466_v53 = vpop.eup %4465  ;;  %4181 = vmatprep.mubr.msk.f32.mxu1 %vm390_vm2, %v1536_v50 }
 0xa06   : > { %4182 = vmatmul.mubr.msk.f32.vlgmr.msra.gmra.mxu1 %vm390_vm2, %v1537_v51  ;;  %v1530_v54 = vadd.f32 1.0, %v4466_v53  ;;  %v1535_v57 = vmul.f32 0.5, %v1531_v52 }
 0xa08   : > { %v1534_v59 = vmul.f32 0.5, %v1530_v54  ;;  %v1539_v62 = vmul.f32 %v1535_v57, %v1501_v22  ;;  %v3834_v57 = vld [vmem:[#allocation6 + $0xa] ss:$0 sm:$0xff] }
 0xa0a   : > { %v1538_v61 = vmul.f32 %v1534_v59, %v1496_v28 }
 0xa0c   : > { %4184 = vmatprep.mubr.msk.f32.mxu1 %vm390_vm2, %v1538_v61 }
 0xa0d   : > { %4185 = vmatmul.mubr.msk.f32.gmra.mxu1 %vm390_vm2, %v1539_v62 }
 0xac6   : > { %v4183_v2 = vpop.f32.mrf.mxu1 }
 0xac7   : > { %v1637_v4 = vadd.f32 %v4183_v2, %v3829_v0 }
 0xac8   : > { %v1631_v5 = vpop.f32.mrf.mxu1 }
 0xac9   : > { %v1632_v6 = vadd.f32 %v3829_v0, %v1631_v5  ;;  %v1651_v7 = vadd.f32 %v1637_v4, %v5174_v60 }
 0xacb   : > { %v1659_v12 = vsel %vm371_vm1, %v1651_v7, 0.0  ;;  %v1650_v8 = vadd.f32 %v1632_v6, %v5172_v58 }
 0xacc   : > { %1660 = vadd.xlane.f32.xlu1 %v1659_v12 }
 0xacd   : > { %v4186_v9 = vpop.f32.mrf.mxu1  ;;  %v1656_v56 = vsel %vm371_vm1, %v1650_v8, 0.0 }
 0xace   : > { %v1647_v10 = vadd.f32 %v4186_v9, %v3829_v0  ;;  %1657 = vadd.xlane.f32.xlu0 %v1656_v56 }
 0xacf   : > { %v1641_v19 = vpop.f32.mrf.mxu1 }
 0xad0   : > { %v1642_v21 = vadd.f32 %v3829_v0, %v1641_v19  ;;  %v1653_v11 = vadd.f32 %v1647_v10, %v5184_v3  ;;  %v3835_v0 = vld [vmem:[#allocation6 + $0xb] ss:$0 sm:$0xff] }
 0xad2   : > { %v1665_v13 = vsel %vm371_vm1, %v1653_v11, 0.0  ;;  %v1652_v15 = vadd.f32 %v1642_v21, %v5180_v63 }
 0xad3   : > { %1666 = vadd.xlane.f32.xlu1 %v1665_v13 }
 0xad4   : > { %v1662_v60 = vsel %vm371_vm1, %v1652_v15, 0.0 }
 0xad5   : > { %1663 = vadd.xlane.f32.xlu0 %v1662_v60 }
 0xb55   : > { %v1661_v17 = vpop.xlane.xlu1 %1660 }
 0xb56   : > { %v1669_v58 = vmul.f32 0.03125, %v1661_v17 }
 0xb57   : > { %v1658_v14 = vpop.xlane.xlu0 %1657 }
 0xb58   : > { %v1673_v18 = vsub.f32 %v1651_v7, %v1669_v58  ;;  %v1668_v16 = vmul.f32 0.03125, %v1658_v14 }
 0xb5a   : > { %v1672_v20 = vsub.f32 %v1650_v8, %v1668_v16  ;;  %v1677_v22 = vmul.f32 %v1673_v18, %v1673_v18 }
 0xb5c   : > { %v1667_v24 = vpop.xlane.xlu1 %1666  ;;  %v1683_v25 = vsel %vm371_vm1, %v1677_v22, 0.0  ;;  %v1676_v26 = vmul.f32 %v1672_v20, %v1672_v20 }
 0xb5d   : > { %v1671_v3 = vmul.f32 0.03125, %v1667_v24  ;;  %1684 = vadd.xlane.f32.xlu1 %v1683_v25 }
 0xb5e   : > { %v1664_v27 = vpop.xlane.xlu0 %1663  ;;  %v1680_v63 = vsel %vm371_vm1, %v1676_v26, 0.0 }
 0xb5f   : > { %v1675_v28 = vsub.f32 %v1653_v11, %v1671_v3  ;;  %v1670_v23 = vmul.f32 0.03125, %v1664_v27  ;;  %1681 = vadd.xlane.f32.xlu0 %v1680_v63  ;;  %v3836_v11 = vld [vmem:[#allocation6 + $0xc] ss:$0 sm:$0xff] }
 0xb61   : > { %v1674_v29 = vsub.f32 %v1652_v15, %v1670_v23  ;;  %v1679_v30 = vmul.f32 %v1675_v28, %v1675_v28 }
 0xb63   : > { %v1689_v31 = vsel %vm371_vm1, %v1679_v30, 0.0  ;;  %v1678_v32 = vmul.f32 %v1674_v29, %v1674_v29 }
 0xb64   : > { %1690 = vadd.xlane.f32.xlu1 %v1689_v31 }
 0xb65   : > { %v1686_v33 = vsel %vm371_vm1, %v1678_v32, 0.0 }
 0xb66   : > { %1687 = vadd.xlane.f32.xlu0 %v1686_v33 }
 0xbe6   : > { %v1685_v38 = vpop.xlane.xlu1 %1684 }
 0xbe7   : > { %v1693_v39 = vmul.f32 0.03125, %v1685_v38 }
 0xbe8   : > { %v1682_v40 = vpop.xlane.xlu0 %1681 }
 0xbe9   : > { %v1697_v41 = vadd.f32 1e-12, %v1693_v39  ;;  %v1692_v43 = vmul.f32 0.03125, %v1682_v40 }
 0xbeb   : > { %4467 = vrsqrt.f32 %v1697_v41  ;;  %v1696_v45 = vadd.f32 1e-12, %v1692_v43 }
 0xbed   : > { %4469 = vrsqrt.f32 %v1696_v45  ;;  %v1691_v46 = vpop.xlane.xlu1 %1690 }
 0xbee   : > { %v1695_v48 = vmul.f32 0.03125, %v1691_v46 }
 0xbef   : > { %v1688_v49 = vpop.xlane.xlu0 %1687 }
 0xbf0   : > { %v1699_v50 = vadd.f32 1e-12, %v1695_v48  ;;  %v1694_v51 = vmul.f32 0.03125, %v1688_v49 }
 0xbf2   : > { %4471 = vrsqrt.f32 %v1699_v50  ;;  %v1698_v52 = vadd.f32 1e-12, %v1694_v51 }
 0xbf4   : > { %4473 = vrsqrt.f32 %v1698_v52 }
 0xbf8   : > { %v4468_v53 = vpop.eup %4467 }
 0xbf9   : > { %v1705_v54 = vmul.f32 %v4468_v53, %v1673_v18 }
 0xbfa   : > { %v4470_v59 = vpop.eup %4469 }
 0xbfb   : > { %v1704_v61 = vmul.f32 %v4470_v59, %v1672_v20  ;;  %v1713_v62 = vmul.f32 %v3834_v57, %v1705_v54 }
 0xbfd   : > { %v1712_v2 = vmul.f32 %v3834_v57, %v1704_v61  ;;  %v5206_v6 = vadd.f32 %v3835_v0, %v1713_v62 }
 0xbff   : > { %v4472_v4 = vpop.eup %4471  ;;  %v5204_v5 = vadd.f32 %v3835_v0, %v1712_v2 }
 0xc00   : > { %v1707_v7 = vmul.f32 %v4472_v4, %v1675_v28 }
 0xc01   : > { %v4474_v12 = vpop.eup %4473  ;;  %4195 = vmatprep.mubr.msk.f32.mxu0 %vm371_vm1, %v5204_v5 }
 0xc02   : > { %4196 = vmatmul.mubr.msk.f32.vlgmr.msra.gmra.mxu0 %vm371_vm1, %v5206_v6  ;;  %v1706_v8 = vmul.f32 %v4474_v12, %v1674_v29  ;;  %v1715_v9 = vmul.f32 %v3834_v57, %v1707_v7 }
 0xc04   : > { %v1714_v56 = vmul.f32 %v3834_v57, %v1706_v8  ;;  %v5214_v19 = vadd.f32 %v3835_v0, %v1715_v9 }
 0xc06   : > { %v5212_v10 = vadd.f32 %v3835_v0, %v1714_v56 }
 0xc08   : > { %4198 = vmatprep.mubr.msk.f32.mxu0 %vm371_vm1, %v5212_v10 }
 0xc09   : > { %4199 = vmatmul.mubr.msk.f32.gmra.mxu0 %vm371_vm1, %v5214_v19 }
 0xcc2   : > { %v4197_v21 = vpop.f32.mrf.mxu0 }
 0xcc3   : > { %v5235_v16 = vadd.f32 %v4197_v21, %v3836_v11 }
 0xcc4   : > { %v1811_v13 = vpop.f32.mrf.mxu0 }
 0xcc5   : > { %v5220_v15 = vadd.f32 %v3836_v11, %v1811_v13  ;;  %v5250_v26 = vmul.f32 0.25, %v5235_v16 }
 0xcc7   : > { %v5223_v60 = vmul.f32 0.25, %v5220_v15 }
 0xcc9   : > { %v4200_v17 = vpop.f32.mrf.mxu0  ;;  %4209 = vmatprep.mubr.msk.f32.mxu0 %vm669_vm5, %v5223_v60 }
 0xcca   : > { %v5227_v58 = vadd.f32 %v4200_v17, %v3836_v11 }
 0xccb   : > { %v1821_v14 = vpop.f32.mrf.mxu0 }
 0xccc   : > { %v5229_v18 = vadd.f32 %v3836_v11, %v1821_v14  ;;  %1844 = vrot.lane.b32.xlu0 %v5227_v58, %s4728_s9  ;;  %v5260_v27 = vmul.f32 0.25, %v5227_v58 }
 0xcce   : > { %1842 = vrot.lane.b32.xlu1 %v5229_v18, %s4728_s9  ;;  %v5253_v3 = vmul.f32 0.25, %v5229_v18 }
 0xcd2   : > { %1840 = vrot.lane.b32.xlu1 %v5235_v16, %s4728_s9 }
 0xcd6   : > { %1838 = vrot.lane.b32.xlu1 %v5220_v15, %s4728_s9 }
 0xd3e   : > { %v1845_v20 = vpop.permute.xlu0 %1844 }
 0xd3f   : > { %4201 = vmatprep.subr.msk.mxu0 %vm669_vm5, %v1845_v20 }
 0xd40   : > { %4202 = vmatpush3.xpose.msk.msra.mxu0 %vm669_vm5, %v1845_v20  ;;  %v1843_v22 = vpop.permute.xlu1 %1842 }
 0xd41   : > { %4203 = vmatprep.subr.msk.mxu0 %vm669_vm5, %v1843_v22 }
 0xd44   : > { %4204 = vmatpush3.xpose.msk.msra.mxu0 %vm669_vm5, %v1843_v22  ;;  %v1841_v24 = vpop.permute.xlu1 %1840 }
 0xd45   : > { %4205 = vmatprep.subr.msk.mxu0 %vm669_vm5, %v1841_v24 }
 0xd48   : > { %4206 = vmatpush3.xpose.msk.msra.mxu0 %vm669_vm5, %v1841_v24  ;;  %v1839_v25 = vpop.permute.xlu1 %1838 }
 0xd49   : > { %4207 = vmatprep.subr.msk.mxu0 %vm669_vm5, %v1839_v25 }
 0xd4c   : > { %4208 = vmatpush3.xpose.msk.msra.mxu0 %vm669_vm5, %v1839_v25 }
 0xd4f   : > { %4210 = vmatmul.mubr.msk.f32.vlgmr.msra.gmra.mxu0 %vm669_vm5, %v5250_v26 }
 0xd50   : > { %4212 = vmatprep.mubr.msk.f32.mxu0 %vm669_vm5, %v5253_v3 }
 0xd53   : > { %4213 = vmatmul.mubr.msk.f32.gmra.mxu0 %vm669_vm5, %v5260_v27 }
 0xe0f   : > { %v4211_v63 = vpop.f32.mrf.mxu0 }
 0xe10   : > { %v1938_v28 = vadd.f32 %v4211_v63, %v5075_v42 }
 0xe11   : > { %v1932_v23 = vpop.f32.mrf.mxu0 }
 0xe12   : > { %v1933_v29 = vadd.f32 %v1932_v23, %v5080_v44  ;;  %v1954_v30 = vsel %vm371_vm1, %v1938_v28, -inf }
 0xe13   : > { %1955 = vmax.xlane.f32.xlu1 %v1954_v30  ;;  %v4214_v31 = vpop.f32.mrf.mxu0 }
 0xe14   : > { %v1948_v32 = vadd.f32 %v4214_v31, %v5086_v47  ;;  %v1951_v33 = vsel %vm371_vm1, %v1933_v29, -inf }
 0xe15   : > { %1952 = vmax.xlane.f32.xlu0 %v1951_v33  ;;  %v1942_v34 = vpop.f32.mrf.mxu0 }
 0xe16   : > { %v1943_v35 = vadd.f32 %v1942_v34, %v5095_v55  ;;  %v1960_v36 = vsel %vm371_vm1, %v1948_v32, -inf }
 0xe18   : > { %v1957_v42 = vsel %vm371_vm1, %v1943_v35, -inf }
 0xe19   : > { %1961 = vmax.xlane.f32.xlu0 %v1960_v36 }
 0xe1d   : > { %1958 = vmax.xlane.f32.xlu0 %v1957_v42 }
 0xe24   : > { %1999 = vrot.lane.b32.xlu1 %v5229_v18, %s4731_s24 }
 0xe28   : > { %1997 = vrot.lane.b32.xlu1 %v5235_v16, %s4731_s24 }
 0xe2c   : > { %1995 = vrot.lane.b32.xlu1 %v5220_v15, %s4731_s24 }
 0xe33   : > { %2001 = vrot.lane.b32.xlu0 %v5227_v58, %s4731_s24 }
 0xe9c   : > { %v1956_v44 = vpop.xlane.xlu1 %1955 }
 0xe9d   : > { %v1964_v47 = vsub.f32 %v1938_v28, %v1956_v44 }
 0xe9e   : > { %v1953_v55 = vpop.xlane.xlu0 %1952 }
 0xe9f   : > { %v1969_v37 = vmul.f32 1.442695, %v1964_v47  ;;  %v1963_v38 = vsub.f32 %v1933_v29, %v1953_v55 }
 0xea0   : > { %v2000_v41 = vpop.permute.xlu1 %1999 }
 0xea1   : > { %4475 = vpow2.f32 %v1969_v37  ;;  %v1967_v39 = vmul.f32 1.442695, %v1963_v38  ;;  %v4531_v37 = vld [vmem:[%s5658_s1 + $0x10] sm:$0xff] }
 0xea2   : > { %v1962_v40 = vpop.xlane.xlu0 %1961 }
 0xea3   : > { %4477 = vpow2.f32 %v1967_v39  ;;  %v1966_v53 = vsub.f32 %v1948_v32, %v1962_v40  ;;  %v4529_v32 = vld [vmem:[%s5658_s1 + $0x8] sm:$0xff]  ;;  %v4532_v39 = vld [vmem:[%s5658_s1 + $0x18] sm:$0xff] }
 0xea4   : > { %v1998_v45 = vpop.permute.xlu1 %1997 }
 0xea5   : > { %v1973_v57 = vmul.f32 1.442695, %v1966_v53 }
 0xea6   : > { %v1959_v43 = vpop.xlane.xlu0 %1958 }
 0xea7   : > { %v1965_v54 = vsub.f32 %v1943_v35, %v1959_v43  ;;  %4479 = vpow2.f32 %v1973_v57  ;;  %v4530_v35 = vld [vmem:[%s5658_s1] sm:$0xff] }
 0xea8   : > { %v1996_v51 = vpop.permute.xlu1 %1995 }
 0xea9   : > { %v1971_v59 = vmul.f32 1.442695, %v1965_v54 }
 0xeaa   : > { %v2002_v46 = vpop.permute.xlu0 %2001 }
 0xeab   : > { %4215 = vmatprep.subr.mxu1 %v2002_v46  ;;  %4481 = vpow2.f32 %v1971_v59 }
 0xeac   : > { %4216 = vmatpush3.msra.mxu1 %v2002_v46 }
 0xead   : > { %4217 = vmatprep.subr.mxu1 %v2000_v41 }
 0xeae   : > { %v4476_v48 = vpop.eup %4475  ;;  %4218 = vmatpush3.msra.mxu1 %v2000_v41 }
 0xeaf   : > { %4219 = vmatprep.subr.mxu1 %v1998_v45  ;;  %v1978_v49 = vsel %vm371_vm1, %v4476_v48, 0.0 }
 0xeb0   : > { %v4478_v50 = vpop.eup %4477  ;;  %1979 = vadd.xlane.f32.xlu1 %v1978_v49  ;;  %4220 = vmatpush3.msra.mxu1 %v1998_v45 }
 0xeb1   : > { %4221 = vmatprep.subr.mxu1 %v1996_v51  ;;  %v1975_v52 = vsel %vm371_vm1, %v4478_v50, 0.0 }
 0xeb2   : > { %1976 = vadd.xlane.f32.xlu0 %v1975_v52  ;;  %4222 = vmatpush3.msra.mxu1 %v1996_v51 }
 0xeb4   : > { %v4480_v61 = vpop.eup %4479 }
 0xeb5   : > { %v1984_v0 = vsel %vm371_vm1, %v4480_v61, 0.0 }
 0xeb8   : > { %v4482_v62 = vpop.eup %4481 }
 0xeb9   : > { %v1981_v2 = vsel %vm371_vm1, %v4482_v62, 0.0 }
 0xec1   : > { %2116 = vrot.lane.b32.xlu1 %v5229_v18, %s4729_s13 }
 0xec8   : > { %2118 = vrot.lane.b32.xlu0 %v5227_v58, %s4729_s13 }
 0xee5   : > { %1985 = vadd.xlane.f32.xlu1 %v1984_v0 }
 0xee7   : > { %1982 = vadd.xlane.f32.xlu0 %v1981_v2 }
 0xef6   : > { %2112 = vrot.lane.b32.xlu1 %v5220_v15, %s4729_s13 }
 0xefa   : > { %2106 = vrot.lane.b32.xlu1 %v5250_v26, %s4730_s14 }
 0xefd   : > { %2114 = vrot.lane.b32.xlu0 %v5235_v16, %s4729_s13 }
 0xefe   : > { %2110 = vrot.lane.b32.xlu1 %v5260_v27, %s4730_s14 }
 0xf01   : > { %2104 = vrot.lane.b32.xlu0 %v5223_v60, %s4730_s14 }
 0xf05   : > { %2108 = vrot.lane.b32.xlu0 %v5253_v3, %s4730_s14 }
 0xf39   : > { %v1980_v4 = vpop.xlane.xlu1 %1979 }
 0xf3a   : > { %4483 = vrcp.f32 %v1980_v4 }
 0xf3b   : > { %v1977_v7 = vpop.xlane.xlu0 %1976 }
 0xf3c   : > { %4485 = vrcp.f32 %v1977_v7 }
 0xf3d   : > { %v2117_v11 = vpop.permute.xlu1 %2116 }
 0xf3f   : > { %v2119_v12 = vpop.permute.xlu0 %2118 }
 0xf40   : > { %4229 = vmatprep.subr.msk.mxu1 %vm669_vm5, %v2119_v12 }
 0xf47   : > { %v4484_v8 = vpop.eup %4483 }
 0xf48   : > { %v1992_v21 = vmul.f32 %v4484_v8, %v4476_v48 }
 0xf49   : > { %v4486_v9 = vpop.eup %4485 }
 0xf4a   : > { %v1991_v56 = vmul.f32 %v4486_v9, %v4478_v50 }
 0xf4c   : > { %4223 = vmatprep.mubr.msk.f32.mxu1 %vm371_vm1, %v1991_v56 }
 0xf4d   : > { %4224 = vmatmul.mubr.msk.f32.vlgmr.msra.gmra.mxu1 %vm371_vm1, %v1992_v21 }
 0xf4e   : > { %4230 = vmatpush3.xpose.msk.msra.mxu1 %vm669_vm5, %v2119_v12 }
 0xf4f   : > { %4231 = vmatprep.subr.msk.mxu1 %vm669_vm5, %v2117_v11 }
 0xf52   : > { %4232 = vmatpush3.xpose.msk.msra.mxu1 %vm669_vm5, %v2117_v11 }
 0xf6e   : > { %v1986_v13 = vpop.xlane.xlu1 %1985 }
 0xf6f   : > { %4487 = vrcp.f32 %v1986_v13 }
 0xf70   : > { %v1983_v60 = vpop.xlane.xlu0 %1982 }
 0xf71   : > { %4489 = vrcp.f32 %v1983_v60 }
 0xf72   : > { %v2113_v14 = vpop.permute.xlu1 %2112 }
 0xf74   : > { %v2115_v17 = vpop.permute.xlu0 %2114 }
 0xf75   : > { %4233 = vmatprep.subr.msk.mxu1 %vm669_vm5, %v2115_v17 }
 0xf76   : > { %4234 = vmatpush3.xpose.msk.msra.mxu1 %vm669_vm5, %v2115_v17  ;;  %v2107_v3 = vpop.permute.xlu1 %2106 }
 0xf77   : > { %4235 = vmatprep.subr.msk.mxu1 %vm669_vm5, %v2113_v14 }
 0xf78   : > { %v2105_v25 = vpop.permute.xlu0 %2104 }
 0xf7a   : > { %4236 = vmatpush3.xpose.msk.msra.mxu1 %vm669_vm5, %v2113_v14  ;;  %v2111_v63 = vpop.permute.xlu1 %2110 }
 0xf7c   : > { %v4488_v20 = vpop.eup %4487  ;;  %v2109_v27 = vpop.permute.xlu0 %2108 }
 0xf7d   : > { %v1994_v26 = vmul.f32 %v4488_v20, %v4480_v61 }
 0xf7e   : > { %v4490_v22 = vpop.eup %4489 }
 0xf7f   : > { %v1993_v24 = vmul.f32 %v4490_v22, %v4482_v62 }
 0xf81   : > { %4226 = vmatprep.mubr.msk.f32.mxu1 %vm371_vm1, %v1993_v24 }
 0xf82   : > { %4227 = vmatmul.mubr.msk.f32.gmra.mxu1 %vm371_vm1, %v1994_v26 }
 0xf83   : > { %4237 = vmatprep.mubr.msk.f32.mxu1 %vm669_vm5, %v2105_v25 }
 0xf86   : > { %4238 = vmatmul.mubr.msk.f32.vlgmr.msra.gmra.mxu1 %vm669_vm5, %v2107_v3  ;;  %v2397_v3 = vld [vmem:[#allocation8 + $0x138] sm:$0xff] }
 0xf87   : > { %4240 = vmatprep.mubr.msk.f32.mxu1 %vm669_vm5, %v2109_v27  ;;  %v2396_v27 = vld [vmem:[#allocation8 + $0x130] sm:$0xff] }
 0xf8a   : > { %4241 = vmatmul.mubr.msk.f32.gmra.mxu1 %vm669_vm5, %v2111_v63  ;;  %v2395_v63 = vld [vmem:[#allocation8 + $0x128] sm:$0xff] }
0x100d   : > { %v5316_v28 = vpop.f32.mrf.mxu1 }
0x100f   : > { %v5318_v23 = vpop.f32.mrf.mxu1 }
0x1042   : > { %v5320_v29 = vpop.f32.mrf.mxu1 }
0x1044   : > { %v5322_v30 = vpop.f32.mrf.mxu1 }
0x1046   : > { %v4239_v31 = vpop.f32.mrf.mxu1 }
0x1047   : > { %v2208_v33 = vadd.f32 %v4529_v32, %v4239_v31  ;;  %v2394_v31 = vld [vmem:[#allocation8 + $0x120] sm:$0xff] }
0x1048   : > { %v2202_v34 = vpop.f32.mrf.mxu1 }
0x1049   : > { %v2203_v36 = vadd.f32 %v4530_v35, %v2202_v34  ;;  %v2224_v42 = vsel %vm371_vm1, %v2208_v33, -inf }
0x104a   : > { %2225 = vmax.xlane.f32.xlu1 %v2224_v42  ;;  %v4242_v44 = vpop.f32.mrf.mxu1 }
0x104b   : > { %v2221_v47 = vsel %vm371_vm1, %v2203_v36, -inf  ;;  %v2218_v40 = vadd.f32 %v4532_v39, %v4242_v44 }
0x104c   : > { %2222 = vmax.xlane.f32.xlu0 %v2221_v47  ;;  %v2212_v55 = vpop.f32.mrf.mxu1 }
0x104d   : > { %v2213_v38 = vadd.f32 %v4531_v37, %v2212_v55  ;;  %v2230_v43 = vsel %vm371_vm1, %v2218_v40, -inf }
0x104f   : > { %v2227_v41 = vsel %vm371_vm1, %v2213_v38, -inf }
0x1050   : > { %2228 = vmax.xlane.f32.xlu0 %v2227_v41 }
0x1054   : > { %2231 = vmax.xlane.f32.xlu0 %v2230_v43 }
0x10d3   : > { %v2226_v45 = vpop.xlane.xlu1 %2225 }
0x10d4   : > { %v2234_v46 = vsub.f32 %v2208_v33, %v2226_v45 }
0x10d5   : > { %v2223_v48 = vpop.xlane.xlu0 %2222 }
0x10d6   : > { %v2239_v49 = vmul.f32 1.442695, %v2234_v46  ;;  %v2233_v50 = vsub.f32 %v2203_v36, %v2223_v48 }
0x10d8   : > { %4491 = vpow2.f32 %v2239_v49  ;;  %v2237_v51 = vmul.f32 1.442695, %v2233_v50 }
0x10d9   : > { %v2229_v52 = vpop.xlane.xlu0 %2228 }
0x10da   : > { %4493 = vpow2.f32 %v2237_v51  ;;  %v2235_v53 = vsub.f32 %v2213_v38, %v2229_v52 }
0x10dc   : > { %v2241_v54 = vmul.f32 1.442695, %v2235_v53 }
0x10dd   : > { %v2232_v57 = vpop.xlane.xlu0 %2231 }
0x10de   : > { %4495 = vpow2.f32 %v2241_v54  ;;  %v2236_v59 = vsub.f32 %v2218_v40, %v2232_v57 }
0x10e0   : > { %v2243_v61 = vmul.f32 1.442695, %v2236_v59 }
0x10e2   : > { %4497 = vpow2.f32 %v2243_v61 }
0x10e5   : > { %v4492_v62 = vpop.eup %4491 }
0x10e6   : > { %v2248_v0 = vsel %vm371_vm1, %v4492_v62, 0.0 }
0x10e7   : > { %v4494_v2 = vpop.eup %4493  ;;  %2249 = vadd.xlane.f32.xlu1 %v2248_v0 }
0x10e8   : > { %v2245_v4 = vsel %vm371_vm1, %v4494_v2, 0.0 }
0x10e9   : > { %2246 = vadd.xlane.f32.xlu0 %v2245_v4 }
0x10eb   : > { %v4496_v7 = vpop.eup %4495 }
0x10ec   : > { %v2251_v12 = vsel %vm371_vm1, %v4496_v7, 0.0 }
0x10ed   : > { %2252 = vadd.xlane.f32.xlu0 %v2251_v12 }
0x10ef   : > { %v4498_v8 = vpop.eup %4497 }
0x10f0   : > { %v2254_v9 = vsel %vm371_vm1, %v4498_v8, 0.0 }
0x10f1   : > { %2255 = vadd.xlane.f32.xlu1 %v2254_v9 }
0x1102   : > { %2269 = vrot.lane.b32.xlu1 %v5229_v18, %s4732_s20 }
0x1103   : > { %2271 = vrot.lane.b32.xlu0 %v5227_v58, %s4732_s20 }
0x1106   : > { %2267 = vrot.lane.b32.xlu1 %v5235_v16, %s4732_s20 }
0x110a   : > { %2265 = vrot.lane.b32.xlu1 %v5220_v15, %s4732_s20 }
0x1170   : > { %v2250_v21 = vpop.xlane.xlu1 %2249 }
0x1172   : > { %v2247_v56 = vpop.xlane.xlu0 %2246 }
0x1173   : > { %4499 = vrcp.f32 %v2247_v56 }
0x1174   : > { %4501 = vrcp.f32 %v2250_v21 }
0x1176   : > { %v2253_v11 = vpop.xlane.xlu0 %2252 }
0x1177   : > { %4503 = vrcp.f32 %v2253_v11 }
0x117a   : > { %v2256_v13 = vpop.xlane.xlu1 %2255  ;;  %v2272_v60 = vpop.permute.xlu0 %2271 }
0x117b   : > { %4505 = vrcp.f32 %v2256_v13  ;;  %4243 = vmatprep.subr.mxu0 %v2272_v60 }
0x117c   : > { %4244 = vmatpush3.msra.mxu0 %v2272_v60 }
0x117e   : > { %v2270_v18 = vpop.permute.xlu1 %2269 }
0x117f   : > { %4245 = vmatprep.subr.mxu0 %v2270_v18 }
0x1180   : > { %v4500_v58 = vpop.eup %4499  ;;  %4246 = vmatpush3.msra.mxu0 %v2270_v18 }
0x1181   : > { %v2261_v17 = vmul.f32 %v4500_v58, %v4494_v2  ;;  %v4502_v15 = vpop.eup %4501  ;;  %v2577_v58 = vld [vmem:[#allocation8 + $0x158] sm:$0xff] }
0x1182   : > { %v2268_v16 = vpop.permute.xlu1 %2267  ;;  %v2262_v22 = vmul.f32 %v4502_v15, %v4492_v62  ;;  %4271 = vmatprep.subr.mxu1 %v2577_v58  ;;  %v2574_v15 = vld [vmem:[#allocation8 + $0x140] sm:$0xff] }
0x1183   : > { %4247 = vmatprep.subr.mxu0 %v2268_v16  ;;  %4251 = vmatprep.mubr.msk.f32.mxu0 %vm371_vm1, %v2261_v17  ;;  %v2576_v17 = vld [vmem:[#allocation8 + $0x150] sm:$0xff] }
0x1184   : > { %4248 = vmatpush3.msra.mxu0 %v2268_v16  ;;  %v4504_v14 = vpop.eup %4503  ;;  %4272 = vmatpush3.msra.mxu1 %v2577_v58  ;;  %v2575_v16 = vld [vmem:[#allocation8 + $0x148] sm:$0xff] }
0x1185   : > { %v2263_v25 = vmul.f32 %v4504_v14, %v4496_v7  ;;  %4273 = vmatprep.subr.mxu1 %v2576_v17 }
0x1186   : > { %v2266_v20 = vpop.permute.xlu1 %2265  ;;  %4274 = vmatpush3.msra.mxu1 %v2576_v17 }
0x1187   : > { %4249 = vmatprep.subr.mxu0 %v2266_v20  ;;  %4275 = vmatprep.subr.mxu1 %v2575_v16 }
0x1188   : > { %v4506_v24 = vpop.eup %4505  ;;  %4250 = vmatpush3.msra.mxu0 %v2266_v20  ;;  %4276 = vmatpush3.msra.mxu1 %v2575_v16 }
0x1189   : > { %4252 = vmatmul.mubr.msk.f32.vlgmr.msra.gmra.mxu0 %vm371_vm1, %v2262_v22  ;;  %v2264_v26 = vmul.f32 %v4506_v24, %v4498_v8  ;;  %4257 = vmatprep.subr.mxu0 %v2397_v3 }
0x118a   : > { %4254 = vmatprep.mubr.msk.f32.mxu0 %vm371_vm1, %v2263_v25  ;;  %4258 = vmatpush3.msra.mxu0 %v2397_v3 }
0x118b   : > { %4259 = vmatprep.subr.mxu0 %v2396_v27  ;;  %4277 = vmatprep.subr.mxu1 %v2574_v15 }
0x118c   : > { %4260 = vmatpush3.msra.mxu0 %v2396_v27  ;;  %4278 = vmatpush3.msra.mxu1 %v2574_v15 }
0x118d   : > { %4255 = vmatmul.mubr.msk.f32.gmra.mxu0 %vm371_vm1, %v2264_v26  ;;  %4261 = vmatprep.subr.mxu0 %v2395_v63 }
0x118e   : > { %4262 = vmatpush3.msra.mxu0 %v2395_v63  ;;  %4307 = vmatprep.subr.mxu1 %v4726_v1 }
0x118f   : > { %4263 = vmatprep.subr.mxu0 %v2394_v31 }
0x1190   : > { %4264 = vmatpush3.msra.mxu0 %v2394_v31 }
0x1249   : > { %v4253_v32 = vpop.f32.mrf.mxu0 }
0x124a   : > { %2380 = vrot.lane.b32.xlu1 %v4253_v32, %s4733_s18 }
0x124b   : > { %v2355_v33 = vpop.f32.mrf.mxu0 }
0x124c   : > { %2378 = vrot.lane.b32.xlu0 %v2355_v33, %s4733_s18 }
0x124d   : > { %v4256_v34 = vpop.f32.mrf.mxu0 }
0x124e   : > { %2384 = vrot.lane.b32.xlu1 %v4256_v34, %s4733_s18 }
0x124f   : > { %v2365_v35 = vpop.f32.mrf.mxu0 }
0x1250   : > { %2382 = vrot.lane.b32.xlu0 %v2365_v35, %s4733_s18 }
0x12bc   : > { %v2381_v36 = vpop.permute.xlu1 %2380 }
0x12bd   : > { %v2391_v47 = vsel %vm669_vm5, %v5316_v28, %v2381_v36  ;;  %v3870_v36 = vld [vmem:[#allocation6 + $0xe] ss:$0 sm:$0xff] }
0x12be   : > { %v2379_v42 = vpop.permute.xlu0 %2378 }
0x12bf   : > { %v2390_v44 = vsel %vm669_vm5, %v5318_v23, %v2379_v42  ;;  %v3865_v23 = vld [vmem:[#allocation6 + $0xd] ss:$0 sm:$0xff] }
0x12c0   : > { %4265 = vmatprep.mubr.msk.f32.mxu0 %vm371_vm1, %v2390_v44  ;;  %v2385_v55 = vpop.permute.xlu1 %2384 }
0x12c1   : > { %4266 = vmatmul.mubr.msk.f32.vlgmr.msra.gmra.mxu0 %vm371_vm1, %v2391_v47  ;;  %v2393_v39 = vsel %vm669_vm5, %v5320_v29, %v2385_v55  ;;  %v3871_v55 = vld [vmem:[#allocation6 + $0xf] ss:$0 sm:$0xff] }
0x12c2   : > { %v2383_v37 = vpop.permute.xlu0 %2382 }
0x12c3   : > { %v2392_v38 = vsel %vm669_vm5, %v5322_v30, %v2383_v37 }
0x12c4   : > { %4268 = vmatprep.mubr.msk.f32.mxu0 %vm371_vm1, %v2392_v38 }
0x12c5   : > { %4269 = vmatmul.mubr.msk.f32.gmra.mxu0 %vm371_vm1, %v2393_v39 }
0x1381   : > { %v4267_v40 = vpop.f32.mrf.mxu0 }
0x1382   : > { %v2487_v41 = vadd.f32 %v4267_v40, %v3865_v23 }
0x1383   : > { %v2481_v28 = vpop.f32.mrf.mxu0 }
0x1384   : > { %v2501_v43 = vadd.f32 %v2487_v41, %v5206_v6  ;;  %v2482_v45 = vadd.f32 %v3865_v23, %v2481_v28 }
0x1385   : > { %v4270_v46 = vpop.f32.mrf.mxu0 }
0x1386   : > { %v2500_v48 = vadd.f32 %v2482_v45, %v5204_v5  ;;  %v2509_v49 = vsel %vm371_vm1, %v2501_v43, 0.0  ;;  %v2497_v50 = vadd.f32 %v4270_v46, %v3865_v23 }
0x1387   : > { %2510 = vadd.xlane.f32.xlu1 %v2509_v49  ;;  %v2491_v30 = vpop.f32.mrf.mxu0  ;;  %v2723_v49 = vld [vmem:[#allocation8 + $0x198] sm:$0xff] }
0x1388   : > { %v2492_v29 = vadd.f32 %v3865_v23, %v2491_v30  ;;  %v2506_v51 = vsel %vm371_vm1, %v2500_v48, 0.0  ;;  %v2503_v53 = vadd.f32 %v2497_v50, %v5214_v19  ;;  %4285 = vmatprep.subr.mxu0 %v2723_v49  ;;  %v2722_v30 = vld [vmem:[#allocation8 + $0x190] sm:$0xff]  ;;  %v2721_v50 = vld [vmem:[#allocation8 + $0x188] sm:$0xff] }
0x1389   : > { %2507 = vadd.xlane.f32.xlu0 %v2506_v51  ;;  %4286 = vmatpush3.msra.mxu0 %v2723_v49  ;;  %v2719_v51 = vld [vmem:[#allocation8 + $0x178] sm:$0xff] }
0x138a   : > { %v2502_v52 = vadd.f32 %v2492_v29, %v5212_v10  ;;  %v2515_v6 = vsel %vm371_vm1, %v2503_v53, 0.0  ;;  %4287 = vmatprep.subr.mxu0 %v2722_v30  ;;  %v2720_v29 = vld [vmem:[#allocation8 + $0x180] sm:$0xff] }
0x138b   : > { %4288 = vmatpush3.msra.mxu0 %v2722_v30 }
0x138c   : > { %v2512_v54 = vsel %vm371_vm1, %v2502_v52, 0.0  ;;  %4289 = vmatprep.subr.mxu0 %v2721_v50 }
0x138d   : > { %2513 = vadd.xlane.f32.xlu0 %v2512_v54  ;;  %4290 = vmatpush3.msra.mxu0 %v2721_v50  ;;  %v2716_v54 = vld [vmem:[#allocation8 + $0x160] sm:$0xff] }
0x138e   : > { %4291 = vmatprep.subr.mxu0 %v2720_v29 }
0x138f   : > { %4292 = vmatpush3.msra.mxu0 %v2720_v29 }
0x1390   : > { %4293 = vmatprep.subr.mxu0 %v2719_v51 }
0x1391   : > { %2516 = vadd.xlane.f32.xlu0 %v2515_v6  ;;  %4294 = vmatpush3.msra.mxu0 %v2719_v51  ;;  %v3872_v6 = vld [vmem:[#allocation6 + $0x10] ss:$0 sm:$0xff] }
0x1410   : > { %v2511_v5 = vpop.xlane.xlu1 %2510 }
0x1411   : > { %v2519_v57 = vmul.f32 0.03125, %v2511_v5 }
0x1412   : > { %v2508_v59 = vpop.xlane.xlu0 %2507 }
0x1413   : > { %v2523_v61 = vsub.f32 %v2501_v43, %v2519_v57  ;;  %v2518_v62 = vmul.f32 0.03125, %v2508_v59 }
0x1415   : > { %v2522_v0 = vsub.f32 %v2500_v48, %v2518_v62  ;;  %v2527_v2 = vmul.f32 %v2523_v61, %v2523_v61 }
0x1416   : > { %v2514_v4 = vpop.xlane.xlu0 %2513 }
0x1417   : > { %v2520_v7 = vmul.f32 0.03125, %v2514_v4  ;;  %v2533_v12 = vsel %vm371_vm1, %v2527_v2, 0.0  ;;  %v2526_v10 = vmul.f32 %v2522_v0, %v2522_v0 }
0x1418   : > { %2534 = vadd.xlane.f32.xlu1 %v2533_v12 }
0x1419   : > { %v2524_v19 = vsub.f32 %v2502_v52, %v2520_v7  ;;  %v2530_v8 = vsel %vm371_vm1, %v2526_v10, 0.0  ;;  %v2718_v52 = vld [vmem:[#allocation8 + $0x170] sm:$0xff] }
0x141a   : > { %2531 = vadd.xlane.f32.xlu0 %v2530_v8  ;;  %v2517_v9 = vpop.xlane.xlu0 %2516  ;;  %4295 = vmatprep.subr.mxu0 %v2718_v52 }
0x141b   : > { %v2521_v56 = vmul.f32 0.03125, %v2517_v9  ;;  %v2528_v21 = vmul.f32 %v2524_v19, %v2524_v19  ;;  %4296 = vmatpush3.msra.mxu0 %v2718_v52 }
0x141d   : > { %v2525_v11 = vsub.f32 %v2503_v53, %v2521_v56  ;;  %v2536_v13 = vsel %vm371_vm1, %v2528_v21, 0.0  ;;  %v2717_v53 = vld [vmem:[#allocation8 + $0x168] sm:$0xff] }
0x141e   : > { %2537 = vadd.xlane.f32.xlu0 %v2536_v13  ;;  %4297 = vmatprep.subr.mxu0 %v2717_v53 }
0x141f   : > { %v2529_v60 = vmul.f32 %v2525_v11, %v2525_v11  ;;  %4298 = vmatpush3.msra.mxu0 %v2717_v53 }
0x1420   : > { %4299 = vmatprep.subr.mxu0 %v2716_v54 }
0x1421   : > { %v2539_v18 = vsel %vm371_vm1, %v2529_v60, 0.0  ;;  %4300 = vmatpush3.msra.mxu0 %v2716_v54 }
0x1422   : > { %2540 = vadd.xlane.f32.xlu1 %v2539_v18 }
0x14a1   : > { %v2535_v14 = vpop.xlane.xlu1 %2534 }
0x14a2   : > { %v2543_v20 = vmul.f32 0.03125, %v2535_v14 }
0x14a3   : > { %v2532_v22 = vpop.xlane.xlu0 %2531 }
0x14a4   : > { %v2547_v24 = vadd.f32 1e-12, %v2543_v20  ;;  %v2542_v25 = vmul.f32 0.03125, %v2532_v22 }
0x14a6   : > { %4507 = vrsqrt.f32 %v2547_v24  ;;  %v2546_v26 = vadd.f32 1e-12, %v2542_v25 }
0x14a7   : > { %v2538_v3 = vpop.xlane.xlu0 %2537 }
0x14a8   : > { %4509 = vrsqrt.f32 %v2546_v26  ;;  %v2544_v27 = vmul.f32 0.03125, %v2538_v3 }
0x14aa   : > { %v2548_v63 = vadd.f32 1e-12, %v2544_v27 }
0x14ab   : > { %v2541_v31 = vpop.xlane.xlu1 %2540 }
0x14ac   : > { %4511 = vrsqrt.f32 %v2548_v63  ;;  %v2545_v32 = vmul.f32 0.03125, %v2541_v31 }
0x14ae   : > { %v2549_v33 = vadd.f32 1e-12, %v2545_v32 }
0x14b0   : > { %4513 = vrsqrt.f32 %v2549_v33 }
0x14b3   : > { %v4508_v34 = vpop.eup %4507 }
0x14b4   : > { %v2555_v35 = vmul.f32 %v4508_v34, %v2523_v61 }
0x14b5   : > { %v4510_v42 = vpop.eup %4509 }
0x14b6   : > { %v2554_v44 = vmul.f32 %v4510_v42, %v2522_v0  ;;  %v2563_v47 = vmul.f32 %v3870_v36, %v2555_v35 }
0x14b8   : > { %v2562_v37 = vmul.f32 %v3870_v36, %v2554_v44  ;;  %v2571_v40 = vadd.f32 %v3871_v55, %v2563_v47 }
0x14b9   : > { %v4512_v38 = vpop.eup %4511 }
0x14ba   : > { %v5385_v39 = vadd.f32 %v3871_v55, %v2562_v37  ;;  %v2556_v23 = vmul.f32 %v4512_v38, %v2524_v19 }
0x14bc   : > { %4279 = vmatprep.mubr.msk.f32.mxu1 %vm371_vm1, %v5385_v39  ;;  %v2564_v41 = vmul.f32 %v3870_v36, %v2556_v23  ;;  %v3877_v23 = vld [vmem:[#allocation6 + $0x11] ss:$0 sm:$0xff] }
0x14bd   : > { %v4514_v28 = vpop.eup %4513  ;;  %4280 = vmatmul.mubr.msk.f32.vlgmr.msra.gmra.mxu1 %vm371_vm1, %v2571_v40 }
0x14be   : > { %v5390_v43 = vadd.f32 %v3871_v55, %v2564_v41  ;;  %v2557_v45 = vmul.f32 %v4514_v28, %v2525_v11 }
0x14c0   : > { %4282 = vmatprep.mubr.msk.f32.mxu1 %vm371_vm1, %v5390_v43  ;;  %v2565_v46 = vmul.f32 %v3870_v36, %v2557_v45 }
0x14c2   : > { %v2573_v48 = vadd.f32 %v3871_v55, %v2565_v46 }
0x14c4   : > { %4283 = vmatmul.mubr.msk.f32.gmra.mxu1 %vm371_vm1, %v2573_v48 }
0x14c5   : > { %4315 = vmatprep.mubr.msk.f32.mxu1 %vm4727_vm0, %v4726_v1 }
0x157d   : > { %v4281_v5 = vpop.f32.mrf.mxu1 }
0x157e   : > { %v2667_v57 = vadd.f32 %v4281_v5, %v3872_v6 }
0x157f   : > { %v2661_v59 = vpop.f32.mrf.mxu1 }
0x1580   : > { %v2681_v61 = vmul.f32 %v2667_v57, %v2667_v57  ;;  %v2662_v62 = vadd.f32 %v3872_v6, %v2661_v59 }
0x1582   : > { %v2685_v0 = vmul.f32 %v2681_v61, %v2667_v57  ;;  %v2680_v2 = vmul.f32 %v2662_v62, %v2662_v62  ;;  %v2874_v61 = vld [vmem:[#allocation8 + $0x58] sm:$0xff] }
0x1583   : > { %4308 = vmatpush3.msra.mxu1 %v2874_v61 }
0x1584   : > { %v2689_v4 = vmul.f32 0.044715, %v2685_v0  ;;  %v2684_v7 = vmul.f32 %v2680_v2, %v2662_v62  ;;  %v4284_v12 = vpop.f32.mrf.mxu1  ;;  %4309 = vmatprep.subr.mxu1 %v4726_v1  ;;  %v2871_v0 = vld [vmem:[#allocation8 + $0x40] sm:$0xff] }
0x1585   : > { %v2677_v10 = vadd.f32 %v4284_v12, %v3872_v6 }
0x1586   : > { %v2693_v19 = vadd.f32 %v2689_v4, %v2667_v57  ;;  %v2688_v8 = vmul.f32 0.044715, %v2684_v7  ;;  %v2671_v9 = vpop.f32.mrf.mxu1 }
0x1587   : > { %v2683_v56 = vmul.f32 %v2677_v10, %v2677_v10  ;;  %v2672_v21 = vadd.f32 %v3872_v6, %v2671_v9 }
0x1588   : > { %v2697_v11 = vmul.f32 0.7978846, %v2693_v19  ;;  %v2692_v13 = vadd.f32 %v2688_v8, %v2662_v62 }
0x1589   : > { %v2687_v60 = vmul.f32 %v2683_v56, %v2677_v10  ;;  %v2682_v18 = vmul.f32 %v2672_v21, %v2672_v21 }
0x158a   : > { %4515 = vtanh.f32 %v2697_v11  ;;  %v2696_v58 = vmul.f32 0.7978846, %v2692_v13 }
0x158b   : > { %v2691_v17 = vmul.f32 0.044715, %v2687_v60  ;;  %v2686_v16 = vmul.f32 %v2682_v18, %v2672_v21  ;;  %v3883_v18 = vld [vmem:[#allocation6 + $0x13] ss:$0 sm:$0xff] }
0x158c   : > { %4517 = vtanh.f32 %v2696_v58 }
0x158d   : > { %v2695_v15 = vadd.f32 %v2691_v17, %v2677_v10  ;;  %v2690_v14 = vmul.f32 0.044715, %v2686_v16 }
0x158f   : > { %v2699_v20 = vmul.f32 0.7978846, %v2695_v15  ;;  %v2694_v22 = vadd.f32 %v2690_v14, %v2672_v21  ;;  %v3884_v15 = vld [vmem:[#allocation6 + $0x3] ss:$0 sm:$0xff] }
0x1591   : > { %4519 = vtanh.f32 %v2699_v20  ;;  %v2698_v24 = vmul.f32 0.7978846, %v2694_v22 }
0x1593   : > { %4521 = vtanh.f32 %v2698_v24 }
0x1597   : > { %v4516_v25 = vpop.eup %4515 }
0x1598   : > { %v2705_v26 = vadd.f32 1.0, %v4516_v25 }
0x1599   : > { %v4518_v3 = vpop.eup %4517 }
0x159a   : > { %v2704_v27 = vadd.f32 1.0, %v4518_v3  ;;  %v2709_v63 = vmul.f32 0.5, %v2705_v26 }
0x159c   : > { %v2708_v31 = vmul.f32 0.5, %v2704_v27  ;;  %v2713_v34 = vmul.f32 %v2709_v63, %v2667_v57 }
0x159e   : > { %v4520_v32 = vpop.eup %4519  ;;  %v2712_v33 = vmul.f32 %v2708_v31, %v2662_v62  ;;  %v2873_v62 = vld [vmem:[#allocation8 + $0x50] sm:$0xff] }
0x159f   : > { %v2707_v35 = vadd.f32 1.0, %v4520_v32  ;;  %4310 = vmatpush3.msra.mxu1 %v2873_v62 }
0x15a0   : > { %v4522_v36 = vpop.eup %4521  ;;  %4301 = vmatprep.mubr.msk.f32.mxu0 %vm390_vm2, %v2712_v33  ;;  %4311 = vmatprep.subr.mxu1 %v4726_v1 }
0x15a1   : > { %4302 = vmatmul.mubr.msk.f32.vlgmr.msra.gmra.mxu0 %vm390_vm2, %v2713_v34  ;;  %v2706_v42 = vadd.f32 1.0, %v4522_v36  ;;  %v2711_v44 = vmul.f32 0.5, %v2707_v35 }
0x15a3   : > { %v2710_v47 = vmul.f32 0.5, %v2706_v42  ;;  %v2715_v37 = vmul.f32 %v2711_v44, %v2677_v10 }
0x15a5   : > { %v2714_v55 = vmul.f32 %v2710_v47, %v2672_v21  ;;  %v3882_v21 = vld [vmem:[#allocation6 + $0x12] ss:$0 sm:$0xff] }
0x15a7   : > { %4304 = vmatprep.mubr.msk.f32.mxu0 %vm390_vm2, %v2714_v55 }
0x15a8   : > { %4305 = vmatmul.mubr.msk.f32.gmra.mxu0 %vm390_vm2, %v2715_v37 }
0x1661   : > { %v4303_v38 = vpop.f32.mrf.mxu0 }
0x1663   : > { %v2807_v40 = vpop.f32.mrf.mxu0 }
0x1664   : > { %v2808_v41 = vadd.f32 %v3877_v23, %v2807_v40 }
0x1666   : > { %v2824_v28 = vadd.f32 %v2808_v41, %v5385_v39 }
0x1668   : > { %v4306_v45 = vpop.f32.mrf.mxu0  ;;  %v2828_v46 = vsel %vm371_vm1, %v2824_v28, 0.0 }
0x1669   : > { %2829 = vadd.xlane.f32.xlu1 %v2828_v46 }
0x166a   : > { %v2816_v48 = vpop.f32.mrf.mxu0 }
0x166b   : > { %v2817_v49 = vadd.f32 %v3877_v23, %v2816_v48 }
0x166d   : > { %v2825_v30 = vadd.f32 %v2817_v49, %v5390_v43  ;;  %v2872_v43 = vld [vmem:[#allocation8 + $0x48] sm:$0xff] }
0x166e   : > { %4312 = vmatpush3.msra.mxu1 %v2872_v43 }
0x166f   : > { %v2831_v50 = vsel %vm371_vm1, %v2825_v30, 0.0  ;;  %4313 = vmatprep.subr.mxu1 %v4726_v1 }
0x1670   : > { %2832 = vadd.xlane.f32.xlu0 %v2831_v50  ;;  %4314 = vmatpush3.msra.mxu1 %v2871_v0 }
0x16f2   : > { %v2830_v29 = vpop.xlane.xlu1 %2829 }
0x16f3   : > { %v2834_v51 = vmul.f32 0.03125, %v2830_v29 }
0x16f5   : > { %v2836_v52 = vsub.f32 %v2824_v28, %v2834_v51 }
0x16f7   : > { %v2838_v53 = vmul.f32 %v2836_v52, %v2836_v52 }
0x16f9   : > { %v2833_v54 = vpop.xlane.xlu0 %2832  ;;  %v2840_v6 = vsel %vm371_vm1, %v2838_v53, 0.0 }
0x16fa   : > { %v2835_v5 = vmul.f32 0.03125, %v2833_v54  ;;  %2841 = vadd.xlane.f32.xlu1 %v2840_v6 }
0x16fc   : > { %v2837_v39 = vsub.f32 %v2825_v30, %v2835_v5 }
0x16fe   : > { %v2839_v57 = vmul.f32 %v2837_v39, %v2837_v39 }
0x1700   : > { %v2843_v59 = vsel %vm371_vm1, %v2839_v57, 0.0 }
0x1701   : > { %2844 = vadd.xlane.f32.xlu0 %v2843_v59 }
0x1783   : > { %v2842_v2 = vpop.xlane.xlu1 %2841 }
0x1784   : > { %v2846_v4 = vmul.f32 0.03125, %v2842_v2 }
0x1786   : > { %v2848_v7 = vadd.f32 1e-12, %v2846_v4 }
0x1788   : > { %4523 = vrsqrt.f32 %v2848_v7 }
0x178a   : > { %v2845_v12 = vpop.xlane.xlu0 %2844 }
0x178b   : > { %v2847_v10 = vmul.f32 0.03125, %v2845_v12 }
0x178d   : > { %v2849_v19 = vadd.f32 1e-12, %v2847_v10 }
0x178f   : > { %4525 = vrsqrt.f32 %v2849_v19 }
0x1795   : > { %v4524_v8 = vpop.eup %4523 }
0x1796   : > { %v2852_v9 = vmul.f32 %v4524_v8, %v2836_v52 }
0x1798   : > { %v2858_v13 = vmul.f32 %v3882_v21, %v2852_v9 }
0x179a   : > { %v2864_v1 = vadd.f32 %v3883_v18, %v2858_v13 }
0x179c   : > { %v4526_v56 = vpop.eup %4525 }
0x179d   : > { %v2853_v11 = vmul.f32 %v4526_v56, %v2837_v39 }
0x179f   : > { %v2859_v60 = vmul.f32 %v3882_v21, %v2853_v11 }
0x17a1   : > { %v2865_v58 = vadd.f32 %v3883_v18, %v2859_v60 }
0x17a3   : > { %v2867_v17 = vrot.slane %v2865_v58, 7 }
0x17a5   : > { %v2870_v16 = vsel %vm2869_vm6, %v2864_v1, %v2867_v17 }
0x17a6   : > { %4316 = vmatmul.mubr.msk.f32.vlgmr.msra.gmra.mxu1 %vm371_vm1, %v2870_v16 }
0x1866   : > { %v2949_v14 = vpop.f32.mrf.mxu1 }
0x1867   : > { %v2950_v20 = vadd.f32 %v3884_v15, %v2949_v14 }
0x1868   : > { %v4317_v22 = vpop.f32.mrf.mxu1 }
0x1869   : > { %4527 = vtanh.f32 %v2950_v20 }
0x1876   : > { %v4528_v24 = vpop.eup %4527 }
0x1877   : > { %2955 = vst.msk [vmem:[#allocation3] sm:$0x3] %vm2954_vm7, %v4528_v24 }
0x1878 PF: > { %v2969_v25 = vld [vmem:[%s4955_s21 + $0x68] sm:$0xff]  ;;  %v2968_v26 = vld [vmem:[%s4955_s21 + $0x60] sm:$0xff]  ;;  %v2971_v27 = vld [vmem:[%s4955_s21 + $0x78] sm:$0xff]  ;;  %v4734_v32 = vmov 0.0   ;;  %vm2996_vm8 = vcmask 261120   ;;  %v2976_v40 = vlaneseq  ;;  %vm3146_vm9 = vcmask 1041408  }
0x1879   : > { %v2965_v3 = vld [vmem:[%s4955_s21 + $0x48] sm:$0xff]  ;;  %3024 = vmatprep.subr.mxu0 %v2969_v25  ;;  %v2964_v63 = vld [vmem:[%s4955_s21 + $0x40] sm:$0xff]  ;;  %v2970_v31 = vld [vmem:[%s4955_s21 + $0x70] sm:$0xff]  ;;  %3064 = vmatprep.mubr.f32.mxu0 %v4734_v32  ;;  %vm3593_vm14 = vcmask 1040384   ;;  %vm3674_vm1 = vcmask 25600  }
0x187a   : > { %3025 = vmatpush1.msra.mxu0 %v2968_v26  ;;  %3095 = vmatprep.subr.mxu1 %v2971_v27  ;;  %v2961_v33 = vld [vmem:[%s4955_s21 + $0x28] sm:$0xff]  ;;  %v2967_v34 = vld [vmem:[%s4955_s21 + $0x58] sm:$0xff]  ;;  %v2960_v35 = vld [vmem:[%s4955_s21 + $0x20] sm:$0xff]  ;;  %v2977_v41 = vshrl.u32 %v2976_v40, 7 }
0x187b   : > { %3026 = vmatprep.subr.mxu0 %v2965_v3  ;;  %3096 = vmatpush1.msra.mxu1 %v2970_v31  ;;  %v2966_v36 = vld [vmem:[%s4955_s21 + $0x50] sm:$0xff]  ;;  %v2963_v42 = vld [vmem:[%s4955_s21 + $0x38] sm:$0xff]  ;;  %v2957_v44 = vld [vmem:[%s4955_s21 + $0x8] sm:$0xff] }
0x187c   : > { %3027 = vmatpush1.msra.mxu0 %v2964_v63  ;;  %3097 = vmatprep.subr.mxu1 %v2967_v34  ;;  %v2962_v47 = vld [vmem:[%s4955_s21 + $0x30] sm:$0xff]  ;;  %v2956_v55 = vld [vmem:[%s4955_s21] sm:$0xff]  ;;  %v2959_v37 = vld [vmem:[%s4955_s21 + $0x18] sm:$0xff]  ;;  %v5427_v28 = vsub.s32 0, %v2977_v41  ;;  %v5430_v46 = vsub.s32 1, %v2977_v41  ;;  %v5432_v48 = vsub.s32 2, %v2977_v41 }
0x187d   : > { %3028 = vmatprep.subr.mxu0 %v2961_v33  ;;  %3098 = vmatpush1.msra.mxu1 %v2966_v36  ;;  %v2958_v23 = vld [vmem:[%s4955_s21 + $0x10] sm:$0xff]  ;;  %v5435_v30 = vsub.s32 3, %v2977_v41  ;;  %v3275_v12 = vld [vmem:[%s4961_s10 + $0xf8] sm:$0xff]  ;;  %v3273_v9 = vld [vmem:[%s4961_s10 + $0xe8] sm:$0xff] }
0x187e   : > { %3029 = vmatpush1.msra.mxu0 %v2960_v35  ;;  %3099 = vmatprep.subr.mxu1 %v2963_v42  ;;  %v2972_v38 = vld [vmem:[#allocation3] sm:$0x3]  ;;  %v3886_v45 = vld [vmem:[%s4955_s21 + $0x80] ss:$8 sm:$0xf] }
0x187f   : > { %3030 = vmatprep.subr.mxu0 %v2957_v44  ;;  %3100 = vmatpush1.msra.mxu1 %v2962_v47  ;;  %v2979_v49 = vrot.slane %v3886_v45, %v5427_v28  ;;  %v2983_v50 = vrot.slane %v3886_v45, %v5430_v46  ;;  %v2987_v29 = vrot.slane %v3886_v45, %v5432_v48  ;;  %v3339_v10 = vld [vmem:[%s4961_s10 + $0x2f8] sm:$0xff]  ;;  %v3274_v19 = vld [vmem:[%s4961_s10 + $0xf0] sm:$0xff]  ;;  %v3337_v56 = vld [vmem:[%s4961_s10 + $0x2e8] sm:$0xff] }
0x1880   : > { %3031 = vmatpush1.msra.mxu0 %v2956_v55  ;;  %3101 = vmatprep.subr.mxu1 %v2959_v37  ;;  %v2991_v53 = vrot.slane %v3886_v45, %v5435_v30  ;;  %v3338_v8 = vld [vmem:[%s4961_s10 + $0x2f0] sm:$0xff]  ;;  %v3272_v21 = vld [vmem:[%s4961_s10 + $0xe0] sm:$0xff]  ;;  %v3271_v13 = vld [vmem:[%s4961_s10 + $0xd8] sm:$0xff] }
0x1881   : > { %3887 = vmatmul.mubr.msk.f32.vlgmr.msra.gmra.mxu0 %vm2996_vm8, %v2972_v38  ;;  %3102 = vmatpush1.msra.mxu1 %v2958_v23  ;;  %v3336_v11 = vld [vmem:[%s4961_s10 + $0x2e0] sm:$0xff]  ;;  %v3335_v60 = vld [vmem:[%s4961_s10 + $0x2d8] sm:$0xff]  ;;  %v3270_v18 = vld [vmem:[%s4961_s10 + $0xd0] sm:$0xff] }
0x1882   : > { %3135 = vmatprep.mubr.f32.mxu1 %v4734_v32  ;;  %3385 = vmatprep.subr.mxu0 %v3275_v12  ;;  %v3334_v58 = vld [vmem:[%s4961_s10 + $0x2d0] sm:$0xff]  ;;  %v3269_v1 = vld [vmem:[%s4961_s10 + $0xc8] sm:$0xff]  ;;  %v3268_v16 = vld [vmem:[%s4961_s10 + $0xc0] sm:$0xff] }
0x1883   : > { %3888 = vmatmul.mubr.msk.f32.vlgmr.msra.gmra.mxu1 %vm2996_vm8, %v2972_v38  ;;  %3456 = vmatprep.subr.mxu1 %v3339_v10  ;;  %v3333_v17 = vld [vmem:[%s4961_s10 + $0x2c8] sm:$0xff]  ;;  %v3332_v15 = vld [vmem:[%s4961_s10 + $0x2c0] sm:$0xff]  ;;  %v3267_v14 = vld [vmem:[%s4961_s10 + $0xb8] sm:$0xff] }
0x1884   : > { %3386 = vmatpush1.msra.mxu0 %v3274_v19  ;;  %3457 = vmatpush1.msra.mxu1 %v3338_v8  ;;  %v3331_v20 = vld [vmem:[%s4961_s10 + $0x2b8] sm:$0xff]  ;;  %v3266_v22 = vld [vmem:[%s4961_s10 + $0xb0] sm:$0xff]  ;;  %v3265_v25 = vld [vmem:[%s4961_s10 + $0xa8] sm:$0xff] }
0x1885   : > { %3387 = vmatprep.subr.mxu0 %v3273_v9  ;;  %3458 = vmatprep.subr.mxu1 %v3337_v56  ;;  %v3330_v24 = vld [vmem:[%s4961_s10 + $0x2b0] sm:$0xff]  ;;  %v3329_v26 = vld [vmem:[%s4961_s10 + $0x2a8] sm:$0xff]  ;;  %v3264_v3 = vld [vmem:[%s4961_s10 + $0xa0] sm:$0xff] }
0x1886   : > { %3388 = vmatpush1.msra.mxu0 %v3272_v21  ;;  %3459 = vmatpush1.msra.mxu1 %v3336_v11  ;;  %v3328_v27 = vld [vmem:[%s4961_s10 + $0x2a0] sm:$0xff]  ;;  %v3263_v63 = vld [vmem:[%s4961_s10 + $0x98] sm:$0xff]  ;;  %v3262_v32 = vld [vmem:[%s4961_s10 + $0x90] sm:$0xff] }
0x1887   : > { %3389 = vmatprep.subr.mxu0 %v3271_v13  ;;  %3460 = vmatprep.subr.mxu1 %v3335_v60  ;;  %v3327_v31 = vld [vmem:[%s4961_s10 + $0x298] sm:$0xff]  ;;  %v3326_v33 = vld [vmem:[%s4961_s10 + $0x290] sm:$0xff]  ;;  %v3261_v34 = vld [vmem:[%s4961_s10 + $0x88] sm:$0xff] }
0x1888   : > { %3390 = vmatpush1.msra.mxu0 %v3270_v18  ;;  %3461 = vmatpush1.msra.mxu1 %v3334_v58  ;;  %v3325_v35 = vld [vmem:[%s4961_s10 + $0x288] sm:$0xff]  ;;  %v3260_v36 = vld [vmem:[%s4961_s10 + $0x80] sm:$0xff]  ;;  %v3259_v44 = vld [vmem:[%s4961_s10 + $0x78] sm:$0xff] }
0x1889   : > { %3391 = vmatprep.subr.mxu0 %v3269_v1  ;;  %3462 = vmatprep.subr.mxu1 %v3333_v17  ;;  %v3324_v42 = vld [vmem:[%s4961_s10 + $0x280] sm:$0xff]  ;;  %v3323_v47 = vld [vmem:[%s4961_s10 + $0x278] sm:$0xff]  ;;  %v3258_v55 = vld [vmem:[%s4961_s10 + $0x70] sm:$0xff] }
0x188a   : > { %3392 = vmatpush1.msra.mxu0 %v3268_v16  ;;  %3463 = vmatpush1.msra.mxu1 %v3332_v15  ;;  %v3322_v37 = vld [vmem:[%s4961_s10 + $0x270] sm:$0xff]  ;;  %v3257_v38 = vld [vmem:[%s4961_s10 + $0x68] sm:$0xff]  ;;  %v3256_v40 = vld [vmem:[%s4961_s10 + $0x60] sm:$0xff] }
0x188b   : > { %3393 = vmatprep.subr.mxu0 %v3267_v14  ;;  %3464 = vmatprep.subr.mxu1 %v3331_v20  ;;  %v3321_v23 = vld [vmem:[%s4961_s10 + $0x268] sm:$0xff]  ;;  %v3320_v41 = vld [vmem:[%s4961_s10 + $0x260] sm:$0xff]  ;;  %v3255_v45 = vld [vmem:[%s4961_s10 + $0x58] sm:$0xff] }
0x188c   : > { %3394 = vmatpush1.msra.mxu0 %v3266_v22  ;;  %3465 = vmatpush1.msra.mxu1 %v3330_v24  ;;  %v3247_v12 = vld [vmem:[%s4961_s10 + $0x18] sm:$0xff]  ;;  %v3246_v19 = vld [vmem:[%s4961_s10 + $0x10] sm:$0xff]  ;;  %v3245_v9 = vld [vmem:[%s4961_s10 + $0x8] sm:$0xff] }
0x188d   : > { %3395 = vmatprep.subr.mxu0 %v3265_v25  ;;  %3466 = vmatprep.subr.mxu1 %v3329_v26  ;;  %v3311_v10 = vld [vmem:[%s4961_s10 + $0x218] sm:$0xff]  ;;  %v3310_v8 = vld [vmem:[%s4961_s10 + $0x210] sm:$0xff]  ;;  %v3309_v56 = vld [vmem:[%s4961_s10 + $0x208] sm:$0xff] }
0x188e   : > { %3396 = vmatpush1.msra.mxu0 %v3264_v3  ;;  %3467 = vmatpush1.msra.mxu1 %v3328_v27  ;;  %v3244_v21 = vld [vmem:[%s4961_s10] sm:$0xff]  ;;  %v3307_v13 = vld [vmem:[%s4961_s10 + $0x1f8] sm:$0xff]  ;;  %v3306_v18 = vld [vmem:[%s4961_s10 + $0x1f0] sm:$0xff] }
0x188f   : > { %3397 = vmatprep.subr.mxu0 %v3263_v63  ;;  %3468 = vmatprep.subr.mxu1 %v3327_v31  ;;  %v3308_v11 = vld [vmem:[%s4961_s10 + $0x200] sm:$0xff]  ;;  %v3371_v60 = vld [vmem:[%s4961_s10 + $0x3f8] sm:$0xff]  ;;  %v3370_v58 = vld [vmem:[%s4961_s10 + $0x3f0] sm:$0xff] }
0x1890   : > { %3398 = vmatpush1.msra.mxu0 %v3262_v32  ;;  %3469 = vmatpush1.msra.mxu1 %v3326_v33  ;;  %v3305_v1 = vld [vmem:[%s4961_s10 + $0x1e8] sm:$0xff]  ;;  %v3304_v16 = vld [vmem:[%s4961_s10 + $0x1e0] sm:$0xff] }
0x1891   : > { %3399 = vmatprep.subr.mxu0 %v3261_v34  ;;  %3470 = vmatprep.subr.mxu1 %v3325_v35  ;;  %v3369_v17 = vld [vmem:[%s4961_s10 + $0x3e8] sm:$0xff]  ;;  %v3368_v15 = vld [vmem:[%s4961_s10 + $0x3e0] sm:$0xff]  ;;  %v3303_v35 = vld [vmem:[%s4961_s10 + $0x1d8] sm:$0xff] }
0x1892   : > { %3400 = vmatpush1.msra.mxu0 %v3260_v36  ;;  %3471 = vmatpush1.msra.mxu1 %v3324_v42  ;;  %v3367_v36 = vld [vmem:[%s4961_s10 + $0x3d8] sm:$0xff]  ;;  %v3302_v42 = vld [vmem:[%s4961_s10 + $0x1d0] sm:$0xff] }
0x1893   : > { %3401 = vmatprep.subr.mxu0 %v3259_v44  ;;  %3472 = vmatprep.subr.mxu1 %v3323_v47  ;;  %v3366_v44 = vld [vmem:[%s4961_s10 + $0x3d0] sm:$0xff]  ;;  %v3301_v47 = vld [vmem:[%s4961_s10 + $0x1c8] sm:$0xff] }
0x1894   : > { %3402 = vmatpush1.msra.mxu0 %v3258_v55  ;;  %3473 = vmatpush1.msra.mxu1 %v3322_v37  ;;  %v3365_v55 = vld [vmem:[%s4961_s10 + $0x3c8] sm:$0xff]  ;;  %v3300_v37 = vld [vmem:[%s4961_s10 + $0x1c0] sm:$0xff] }
0x1895   : > { %3403 = vmatprep.subr.mxu0 %v3257_v38  ;;  %3474 = vmatprep.subr.mxu1 %v3321_v23  ;;  %v3364_v38 = vld [vmem:[%s4961_s10 + $0x3c0] sm:$0xff]  ;;  %v3299_v23 = vld [vmem:[%s4961_s10 + $0x1b8] sm:$0xff] }
0x1896   : > { %3404 = vmatpush1.msra.mxu0 %v3256_v40  ;;  %3475 = vmatpush1.msra.mxu1 %v3320_v41  ;;  %v3363_v40 = vld [vmem:[%s4961_s10 + $0x3b8] sm:$0xff]  ;;  %v3298_v41 = vld [vmem:[%s4961_s10 + $0x1b0] sm:$0xff] }
0x1897   : > { %3405 = vmatprep.subr.mxu0 %v3255_v45  ;;  %v3362_v45 = vld [vmem:[%s4961_s10 + $0x3b0] sm:$0xff] }
0x1941   : > { %v3066_v51 = vpop.f32.mrf.mxu0 }
0x1942   : > { %v5439_v52 = vadd.f32 %v3066_v51, %v2979_v49  ;;  %v3319_v49 = vld [vmem:[%s4961_s10 + $0x258] sm:$0xff]  ;;  %v3253_v51 = vld [vmem:[%s4961_s10 + $0x48] sm:$0xff] }
0x1943   : > { %v3068_v54 = vpop.f32.mrf.mxu0  ;;  %v3137_v6 = vpop.f32.mrf.mxu1  ;;  %3476 = vmatprep.subr.mxu1 %v3319_v49  ;;  %v3297_v49 = vld [vmem:[%s4961_s10 + $0x1a8] sm:$0xff] }
0x1944   : > { %v5442_v5 = vadd.f32 %v3068_v54, %v2983_v50  ;;  %v5444_v39 = vadd.f32 %v3137_v6, %v2987_v29  ;;  %v3147_v59 = vsel %vm3146_vm9, %v5439_v52, 0.0  ;;  %v3254_v50 = vld [vmem:[%s4961_s10 + $0x50] sm:$0xff]  ;;  %v3252_v54 = vld [vmem:[%s4961_s10 + $0x40] sm:$0xff] }
0x1945   : > { %v3139_v57 = vpop.f32.mrf.mxu1  ;;  %v3318_v29 = vld [vmem:[%s4961_s10 + $0x250] sm:$0xff]  ;;  %v3316_v6 = vld [vmem:[%s4961_s10 + $0x240] sm:$0xff]  ;;  %3406 = vmatpush1.msra.mxu0 %v3254_v50  ;;  %v3361_v50 = vld [vmem:[%s4961_s10 + $0x3a8] sm:$0xff] }
0x1946   : > { %v3148_v61 = vsel %vm3146_vm9, %v5442_v5, 0.0  ;;  %v3150_v62 = vsel %vm3146_vm9, %v5444_v39, 0.0  ;;  %v5452_v43 = vadd.f32 %v3139_v57, %v2991_v53  ;;  %v3317_v53 = vld [vmem:[%s4961_s10 + $0x248] sm:$0xff]  ;;  %3477 = vmatpush1.msra.mxu1 %v3318_v29  ;;  %v3251_v57 = vld [vmem:[%s4961_s10 + $0x38] sm:$0xff]  ;;  %3407 = vmatprep.subr.mxu0 %v3253_v51  ;;  %v3296_v29 = vld [vmem:[%s4961_s10 + $0x1a0] sm:$0xff] }
0x1947   : > { %v3149_v0 = vadd.f32 %v3148_v61, %v3147_v59  ;;  %v3315_v59 = vld [vmem:[%s4961_s10 + $0x238] sm:$0xff]  ;;  %3478 = vmatprep.subr.mxu1 %v3317_v53  ;;  %v3250_v61 = vld [vmem:[%s4961_s10 + $0x30] sm:$0xff]  ;;  %3408 = vmatpush1.msra.mxu0 %v3252_v54  ;;  %v3360_v51 = vld [vmem:[%s4961_s10 + $0x3a0] sm:$0xff] }
0x1948   : > { %v3152_v4 = vsel %vm3146_vm9, %v5452_v43, 0.0  ;;  %3479 = vmatpush1.msra.mxu1 %v3316_v6  ;;  %3409 = vmatprep.subr.mxu0 %v3251_v57  ;;  %v3295_v53 = vld [vmem:[%s4961_s10 + $0x198] sm:$0xff]  ;;  %v3294_v6 = vld [vmem:[%s4961_s10 + $0x190] sm:$0xff] }
0x1949   : > { %v3151_v2 = vadd.f32 %v3150_v62, %v3149_v0  ;;  %v3314_v62 = vld [vmem:[%s4961_s10 + $0x230] sm:$0xff]  ;;  %v3249_v0 = vld [vmem:[%s4961_s10 + $0x28] sm:$0xff]  ;;  %3480 = vmatprep.subr.mxu1 %v3315_v59  ;;  %3410 = vmatpush1.msra.mxu0 %v3250_v61  ;;  %v3359_v54 = vld [vmem:[%s4961_s10 + $0x398] sm:$0xff] }
0x194a   : > { %3481 = vmatpush1.msra.mxu1 %v3314_v62  ;;  %3411 = vmatprep.subr.mxu0 %v3249_v0  ;;  %v3358_v57 = vld [vmem:[%s4961_s10 + $0x390] sm:$0xff]  ;;  %v3293_v59 = vld [vmem:[%s4961_s10 + $0x188] sm:$0xff]  ;;  %v3292_v62 = vld [vmem:[%s4961_s10 + $0x180] sm:$0xff] }
0x194b   : > { %v3153_v7 = vadd.f32 %v3152_v4, %v3151_v2  ;;  %v3313_v2 = vld [vmem:[%s4961_s10 + $0x228] sm:$0xff]  ;;  %v3248_v4 = vld [vmem:[%s4961_s10 + $0x20] sm:$0xff] }
0x194c   : > { %3482 = vmatprep.subr.mxu1 %v3313_v2  ;;  %3412 = vmatpush1.msra.mxu0 %v3248_v4  ;;  %v3357_v61 = vld [vmem:[%s4961_s10 + $0x388] sm:$0xff]  ;;  %v3356_v0 = vld [vmem:[%s4961_s10 + $0x380] sm:$0xff]  ;;  %v3291_v2 = vld [vmem:[%s4961_s10 + $0x178] sm:$0xff] }
0x194d   : > { %3154 = vadd.xlane.f32.xlu0 %v3153_v7  ;;  %v3312_v7 = vld [vmem:[%s4961_s10 + $0x220] sm:$0xff]  ;;  %3413 = vmatprep.subr.mxu0 %v3247_v12  ;;  %v3355_v4 = vld [vmem:[%s4961_s10 + $0x378] sm:$0xff]  ;;  %v3354_v12 = vld [vmem:[%s4961_s10 + $0x370] sm:$0xff] }
0x194e   : > { %3483 = vmatpush1.msra.mxu1 %v3312_v7  ;;  %3414 = vmatpush1.msra.mxu0 %v3246_v19  ;;  %v3290_v7 = vld [vmem:[%s4961_s10 + $0x170] sm:$0xff]  ;;  %v3353_v19 = vld [vmem:[%s4961_s10 + $0x368] sm:$0xff] }
0x194f   : > { %3484 = vmatprep.subr.mxu1 %v3311_v10  ;;  %3415 = vmatprep.subr.mxu0 %v3245_v9  ;;  %v3289_v10 = vld [vmem:[%s4961_s10 + $0x168] sm:$0xff]  ;;  %v3352_v9 = vld [vmem:[%s4961_s10 + $0x360] sm:$0xff] }
0x1950   : > { %3485 = vmatpush1.msra.mxu1 %v3310_v8  ;;  %3416 = vmatpush1.msra.mxu0 %v3244_v21  ;;  %v3288_v8 = vld [vmem:[%s4961_s10 + $0x160] sm:$0xff]  ;;  %v3351_v21 = vld [vmem:[%s4961_s10 + $0x358] sm:$0xff] }
0x1951   : > { %3486 = vmatprep.subr.mxu1 %v3309_v56  ;;  %3417 = vmatprep.subr.mxu0 %v3307_v13  ;;  %v3287_v56 = vld [vmem:[%s4961_s10 + $0x158] sm:$0xff]  ;;  %v3350_v13 = vld [vmem:[%s4961_s10 + $0x350] sm:$0xff] }
0x1952   : > { %3487 = vmatpush1.msra.mxu1 %v3308_v11  ;;  %3418 = vmatpush2.msra.mxu0 %v3306_v18  ;;  %v3286_v11 = vld [vmem:[%s4961_s10 + $0x150] sm:$0xff]  ;;  %v3349_v18 = vld [vmem:[%s4961_s10 + $0x348] sm:$0xff] }
0x1953   : > { %3488 = vmatprep.subr.mxu1 %v3371_v60  ;;  %3419 = vmatprep.subr.mxu0 %v3305_v1  ;;  %v3285_v60 = vld [vmem:[%s4961_s10 + $0x148] sm:$0xff]  ;;  %v3348_v1 = vld [vmem:[%s4961_s10 + $0x340] sm:$0xff] }
0x1954   : > { %3489 = vmatpush2.msra.mxu1 %v3370_v58  ;;  %3420 = vmatpush2.msra.mxu0 %v3304_v16  ;;  %v3284_v58 = vld [vmem:[%s4961_s10 + $0x140] sm:$0xff]  ;;  %v3347_v16 = vld [vmem:[%s4961_s10 + $0x338] sm:$0xff] }
0x1955   : > { %3490 = vmatprep.subr.mxu1 %v3369_v17  ;;  %3421 = vmatprep.subr.mxu0 %v3303_v35  ;;  %v3283_v17 = vld [vmem:[%s4961_s10 + $0x138] sm:$0xff] }
0x1956   : > { %3491 = vmatpush2.msra.mxu1 %v3368_v15  ;;  %3422 = vmatpush2.msra.mxu0 %v3302_v42  ;;  %v3282_v15 = vld [vmem:[%s4961_s10 + $0x130] sm:$0xff] }
0x1957   : > { %3492 = vmatprep.subr.mxu1 %v3367_v36  ;;  %3423 = vmatprep.subr.mxu0 %v3301_v47  ;;  %v3890_v47 = vld [vmem:[%s4955_s21 + $0x82] ss:$8 sm:$0xf] }
0x1958   : > { %3493 = vmatpush2.msra.mxu1 %v3366_v44  ;;  %3424 = vmatpush2.msra.mxu0 %v3300_v37  ;;  %v3889_v44 = vld [vmem:[%s4955_s21 + $0x81] ss:$8 sm:$0xf] }
0x1959   : > { %3494 = vmatprep.subr.mxu1 %v3365_v55  ;;  %3425 = vmatprep.subr.mxu0 %v3299_v23  ;;  %v3194_v55 = vrot.slane %v3889_v44, %v5432_v48  ;;  %v3190_v37 = vrot.slane %v3889_v44, %v5430_v46  ;;  %v3186_v23 = vrot.slane %v3889_v44, %v5427_v28 }
0x195a   : > { %3495 = vmatpush2.msra.mxu1 %v3364_v38  ;;  %3426 = vmatpush2.msra.mxu0 %v3298_v41  ;;  %v3198_v38 = vrot.slane %v3889_v44, %v5435_v30  ;;  %v3215_v41 = vrot.slane %v3890_v47, %v5430_v46 }
0x195b   : > { %3496 = vmatprep.subr.mxu1 %v3363_v40  ;;  %3427 = vmatprep.subr.mxu0 %v3297_v49  ;;  %v3211_v49 = vrot.slane %v3890_v47, %v5427_v28 }
0x195c   : > { %3497 = vmatpush2.msra.mxu1 %v3362_v45  ;;  %3428 = vmatpush2.msra.mxu0 %v3296_v29  ;;  %v3223_v45 = vrot.slane %v3890_v47, %v5435_v30 }
0x195d   : > { %3498 = vmatprep.subr.mxu1 %v3361_v50  ;;  %3429 = vmatprep.subr.mxu0 %v3295_v53  ;;  %v3219_v50 = vrot.slane %v3890_v47, %v5432_v48 }
0x195e   : > { %3499 = vmatpush2.msra.mxu1 %v3360_v51  ;;  %3430 = vmatpush2.msra.mxu0 %v3294_v6 }
0x195f   : > { %3500 = vmatprep.subr.mxu1 %v3359_v54  ;;  %3431 = vmatprep.subr.mxu0 %v3293_v59 }
0x1960   : > { %3501 = vmatpush2.msra.mxu1 %v3358_v57  ;;  %3432 = vmatpush2.msra.mxu0 %v3292_v62 }
0x1961   : > { %3502 = vmatprep.subr.mxu1 %v3357_v61  ;;  %3433 = vmatprep.subr.mxu0 %v3291_v2 }
0x1962   : > { %3503 = vmatpush2.msra.mxu1 %v3356_v0  ;;  %3434 = vmatpush2.msra.mxu0 %v3290_v7 }
0x1963   : > { %3504 = vmatprep.subr.mxu1 %v3355_v4  ;;  %3435 = vmatprep.subr.mxu0 %v3289_v10  ;;  %v3891_v10 = vld [vmem:[%s4955_s21 + $0x83] ss:$8 sm:$0x3] }
0x1964   : > { %3505 = vmatpush2.msra.mxu1 %v3354_v12  ;;  %3436 = vmatpush2.msra.mxu0 %v3288_v8  ;;  %v3382_v8 = vrot.slane %v3891_v10, %v5430_v46 }
0x1965   : > { %3506 = vmatprep.subr.mxu1 %v3353_v19  ;;  %3437 = vmatprep.subr.mxu0 %v3287_v56  ;;  %v3378_v19 = vrot.slane %v3891_v10, %v5427_v28 }
0x1966   : > { %3507 = vmatpush2.msra.mxu1 %v3352_v9  ;;  %3438 = vmatpush2.msra.mxu0 %v3286_v11 }
0x1967   : > { %3508 = vmatprep.subr.mxu1 %v3351_v21  ;;  %3439 = vmatprep.subr.mxu0 %v3285_v60 }
0x1968   : > { %3509 = vmatpush2.msra.mxu1 %v3350_v13  ;;  %3440 = vmatpush2.msra.mxu0 %v3284_v58 }
0x1969   : > { %3510 = vmatprep.subr.mxu1 %v3349_v18  ;;  %3441 = vmatprep.subr.mxu0 %v3283_v17 }
0x196a   : > { %3511 = vmatpush2.msra.mxu1 %v3348_v1  ;;  %3442 = vmatpush2.msra.mxu0 %v3282_v15 }
0x196b   : > { %3512 = vmatprep.subr.mxu1 %v3347_v16 }
0x19d6   : > { %v3155_v14 = vpop.xlane.xlu0 %3154 }
0x19d7   : > { %v3157_v20 = vmul.f32 0.001953125, %v3155_v14  ;;  %v3346_v14 = vld [vmem:[%s4961_s10 + $0x330] sm:$0xff] }
0x19d8   : > { %3513 = vmatpush2.msra.mxu1 %v3346_v14 }
0x19d9   : > { %v5529_v22 = vsub.f32 %v5439_v52, %v3157_v20  ;;  %v5532_v24 = vsub.f32 %v5442_v5, %v3157_v20  ;;  %v5535_v25 = vsub.f32 %v5444_v39, %v3157_v20  ;;  %v5538_v26 = vsub.f32 %v5452_v43, %v3157_v20  ;;  %v3281_v20 = vld [vmem:[%s4961_s10 + $0x128] sm:$0xff] }
0x19da   : > { %3443 = vmatprep.subr.mxu0 %v3281_v20 }
0x19db   : > { %v3162_v3 = vmul.f32 %v5529_v22, %v5529_v22  ;;  %v3163_v27 = vmul.f32 %v5532_v24, %v5532_v24  ;;  %v3164_v52 = vmul.f32 %v5535_v25, %v5535_v25  ;;  %v3165_v5 = vmul.f32 %v5538_v26, %v5538_v26 }
0x19dd   : > { %v3166_v39 = vsel %vm3146_vm9, %v3162_v3, 0.0  ;;  %v3167_v43 = vsel %vm3146_vm9, %v3163_v27, 0.0  ;;  %v3169_v31 = vsel %vm3146_vm9, %v3164_v52, 0.0  ;;  %v3171_v33 = vsel %vm3146_vm9, %v3165_v5, 0.0  ;;  %v3345_v3 = vld [vmem:[%s4961_s10 + $0x328] sm:$0xff]  ;;  %v3280_v27 = vld [vmem:[%s4961_s10 + $0x120] sm:$0xff] }
0x19de   : > { %v3168_v63 = vadd.f32 %v3167_v43, %v3166_v39  ;;  %v3344_v52 = vld [vmem:[%s4961_s10 + $0x320] sm:$0xff]  ;;  %v3279_v5 = vld [vmem:[%s4961_s10 + $0x118] sm:$0xff]  ;;  %3514 = vmatprep.subr.mxu1 %v3345_v3  ;;  %v3278_v43 = vld [vmem:[%s4961_s10 + $0x110] sm:$0xff]  ;;  %3444 = vmatpush2.msra.mxu0 %v3280_v27 }
0x19df   : > { %v3343_v39 = vld [vmem:[%s4961_s10 + $0x318] sm:$0xff]  ;;  %3515 = vmatpush2.msra.mxu1 %v3344_v52  ;;  %3445 = vmatprep.subr.mxu0 %v3279_v5 }
0x19e0   : > { %v3170_v32 = vadd.f32 %v3169_v31, %v3168_v63  ;;  %v3342_v63 = vld [vmem:[%s4961_s10 + $0x310] sm:$0xff]  ;;  %v3277_v31 = vld [vmem:[%s4961_s10 + $0x108] sm:$0xff]  ;;  %3516 = vmatprep.subr.mxu1 %v3343_v39  ;;  %3446 = vmatpush2.msra.mxu0 %v3278_v43 }
0x19e1   : > { %3517 = vmatpush2.msra.mxu1 %v3342_v63  ;;  %3447 = vmatprep.subr.mxu0 %v3277_v31  ;;  %v3585_v63 = vld [vmem:[%s4955_s21 + $0x88] sm:$0x80]  ;;  %v3587_v31 = vld [vmem:[%s4955_s21 + $0xa8] sm:$0x7] }
0x19e2   : > { %v3172_v34 = vadd.f32 %v3171_v33, %v3170_v32  ;;  %v3341_v32 = vld [vmem:[%s4961_s10 + $0x308] sm:$0xff]  ;;  %v3276_v33 = vld [vmem:[%s4961_s10 + $0x100] sm:$0xff] }
0x19e3   : > { %3518 = vmatprep.subr.mxu1 %v3341_v32  ;;  %3448 = vmatpush2.msra.mxu0 %v3276_v33  ;;  %v3597_v32 = vrot.slane %v3585_v63, 7  ;;  %v3598_v33 = vrot.slane %v3587_v31, 7 }
0x19e4   : > { %3173 = vadd.xlane.f32.xlu0 %v3172_v34  ;;  %v3340_v34 = vld [vmem:[%s4961_s10 + $0x300] sm:$0xff]  ;;  %s3894_s10 = sshll.u32 %s4794_s28, 1 }
0x19e5   : > { %3519 = vmatpush2.msra.mxu1 %v3340_v34  ;;  %v3584_v34 = vld [vmem:[%s4955_s21 + $0x80] sm:$0x80]  ;;  %v3599_v44 = vsel %vm3593_vm14, %v3597_v32, %v3598_v33  ;;  %s3673_s29 = scalar_lea.vmem %s5664_s7, %s3894_s10 }
0x19e6   : > { %3632 = vmatprep.subr.mxu0 %v3599_v44 }
0x1a6d   : > { %v3174_v35 = vpop.xlane.xlu0 %3173 }
0x1a6e   : > { %v3175_v36 = vmul.f32 0.001953125, %v3174_v35  ;;  %v3586_v35 = vld [vmem:[%s4955_s21 + $0xa0] sm:$0x7] }
0x1a70   : > { %v3176_v42 = vadd.f32 1e-05, %v3175_v36  ;;  %v3594_v36 = vrot.slane %v3584_v34, 7 }
0x1a72   : > { %4533 = vrsqrt.f32 %v3176_v42  ;;  %v3595_v42 = vrot.slane %v3586_v35, 7 }
0x1a74   : > { %v3596_v47 = vsel %vm3593_vm14, %v3594_v36, %v3595_v42 }
0x1a7f   : > { %v4534_v40 = vpop.eup %4533 }
0x1a80   : > { %v3179_v29 = vmul.f32 %v4534_v40, %v5532_v24  ;;  %v3181_v51 = vmul.f32 %v4534_v40, %v5538_v26  ;;  %v3178_v53 = vmul.f32 %v4534_v40, %v5529_v22  ;;  %v3180_v54 = vmul.f32 %v4534_v40, %v5535_v25  ;;  %v3893_v40 = vld [vmem:[%s4955_s21 + $0x85] ss:$8 sm:$0x3] }
0x1a82   : > { %v3204_v6 = vmul.f32 %v3190_v37, %v3179_v29  ;;  %v3206_v57 = vmul.f32 %v3198_v38, %v3181_v51  ;;  %v3203_v59 = vmul.f32 %v3186_v23, %v3178_v53  ;;  %v3205_v61 = vmul.f32 %v3194_v55, %v3180_v54  ;;  %v3892_v23 = vld [vmem:[%s4955_s21 + $0x84] ss:$8 sm:$0x3] }
0x1a83   : > { %v3573_v29 = vrot.slane %v3893_v40, %v5430_v46  ;;  %v3569_v53 = vrot.slane %v3893_v40, %v5427_v28 }
0x1a84   : > { %v3229_v62 = vadd.f32 %v3215_v41, %v3204_v6  ;;  %v3231_v0 = vadd.f32 %v3223_v45, %v3206_v57  ;;  %v3228_v2 = vadd.f32 %v3211_v49, %v3203_v59  ;;  %v3230_v30 = vadd.f32 %v3219_v50, %v3205_v61 }
0x1a85   : > { %v3560_v41 = vrot.slane %v3892_v23, %v5430_v46  ;;  %v3556_v45 = vrot.slane %v3892_v23, %v5427_v28 }
0x1a86   : > { %vm3233_vm10 = vcmp.gt.f32.partialorder %v3229_v62, 0.0  ;;  %v3237_v4 = vmul.f32 0.01, %v3229_v62  ;;  %vm3235_vm11 = vcmp.gt.f32.partialorder %v3231_v0, 0.0  ;;  %v3239_v48 = vmul.f32 0.01, %v3231_v0 }
0x1a87   : > { %vm3232_vm12 = vcmp.gt.f32.partialorder %v3228_v2, 0.0  ;;  %v3236_v24 = vmul.f32 0.01, %v3228_v2  ;;  %vm3234_vm13 = vcmp.gt.f32.partialorder %v3230_v30, 0.0  ;;  %v3238_v26 = vmul.f32 0.01, %v3230_v30 }
0x1a88   : > { %v3241_v22 = vsel %vm3233_vm10, %v3229_v62, %v3237_v4  ;;  %v3243_v7 = vsel %vm3235_vm11, %v3231_v0, %v3239_v48 }
0x1a89   : > { %3449 = vmatprep.mubr.f32.mxu0 %v3241_v22  ;;  %3520 = vmatprep.mubr.f32.mxu1 %v3243_v7  ;;  %v3240_v25 = vsel %vm3232_vm12, %v3228_v2, %v3236_v24  ;;  %v3242_v12 = vsel %vm3234_vm13, %v3230_v30, %v3238_v26  ;;  %v3588_v30 = vld [vmem:[%s4955_s21 + $0x86] ss:$0 sm:$0xff] }
0x1a8a   : > { %3450 = vmatmul.mubr.f32.vlgmr.msra.gmra.mxu0 %v3240_v25  ;;  %3521 = vmatmul.mubr.f32.vlgmr.msra.gmra.mxu1 %v3242_v12 }
0x1a8b   : > { %3633 = vmatpush1.xpose.msra.mxu0 %v3596_v47 }
0x1b4a   : > { %v3451_v9 = vpop.f32.mrf.mxu0  ;;  %v3522_v56 = vpop.f32.mrf.mxu1 }
0x1b4b   : > { %v3452_v21 = vadd.f32 %v3451_v9, %v3378_v19 }
0x1b4c   : > { %v3453_v11 = vpop.f32.mrf.mxu0  ;;  %v3524_v18 = vpop.f32.mrf.mxu1 }
0x1b4d   : > { %v3523_v13 = vadd.f32 %v3522_v56, %v3452_v21  ;;  %v3454_v60 = vadd.f32 %v3453_v11, %v3382_v8 }
0x1b4f   : > { %v3525_v58 = vadd.f32 %v3524_v18, %v3454_v60  ;;  %v3531_v1 = vsel %vm3146_vm9, %v3523_v13, 0.0 }
0x1b51   : > { %v3532_v17 = vsel %vm3146_vm9, %v3525_v58, 0.0 }
0x1b52   : > { %v3533_v16 = vadd.f32 %v3532_v17, %v3531_v1 }
0x1b54   : > { %3534 = vadd.xlane.f32.xlu1 %v3533_v16 }
0x1bdd   : > { %v3535_v15 = vpop.xlane.xlu1 %3534 }
0x1bde   : > { %v3537_v14 = vmul.f32 0.00390625, %v3535_v15 }
0x1be0   : > { %v3538_v20 = vsub.f32 %v3523_v13, %v3537_v14  ;;  %v3539_v3 = vsub.f32 %v3525_v58, %v3537_v14 }
0x1be2   : > { %v3540_v27 = vmul.f32 %v3538_v20, %v3538_v20  ;;  %v3541_v52 = vmul.f32 %v3539_v3, %v3539_v3 }
0x1be4   : > { %v3542_v5 = vsel %vm3146_vm9, %v3540_v27, 0.0  ;;  %v3543_v39 = vsel %vm3146_vm9, %v3541_v52, 0.0 }
0x1be5   : > { %v3544_v43 = vadd.f32 %v3543_v39, %v3542_v5 }
0x1be7   : > { %3545 = vadd.xlane.f32.xlu1 %v3544_v43 }
0x1c70   : > { %v3546_v55 = vpop.xlane.xlu1 %3545 }
0x1c71   : > { %v3547_v37 = vmul.f32 0.00390625, %v3546_v55 }
0x1c73   : > { %v3548_v38 = vadd.f32 1e-05, %v3547_v37 }
0x1c75   : > { %4535 = vrsqrt.f32 %v3548_v38 }
0x1c82   : > { %v4536_v49 = vpop.eup %4535 }
0x1c83   : > { %v3551_v50 = vmul.f32 %v4536_v49, %v3539_v3  ;;  %v3550_v51 = vmul.f32 %v4536_v49, %v3538_v20 }
0x1c85   : > { %v3564_v54 = vmul.f32 %v3560_v41, %v3551_v50  ;;  %v3563_v6 = vmul.f32 %v3556_v45, %v3550_v51 }
0x1c87   : > { %v3577_v57 = vadd.f32 %v3573_v29, %v3564_v54  ;;  %v3576_v59 = vadd.f32 %v3569_v53, %v3563_v6 }
0x1c89   : > { %vm3579_vm15 = vcmp.gt.f32.partialorder %v3577_v57, 0.0  ;;  %v3581_v61 = vmul.f32 0.01, %v3577_v57  ;;  %vm3578_vm0 = vcmp.gt.f32.partialorder %v3576_v59, 0.0  ;;  %v3580_v62 = vmul.f32 0.01, %v3576_v59 }
0x1c8b   : > { %v3583_v0 = vsel %vm3579_vm15, %v3577_v57, %v3581_v61  ;;  %v3582_v2 = vsel %vm3578_vm0, %v3576_v59, %v3580_v62 }
0x1c8c   : > { %3666 = vmatprep.mubr.f32.mxu0 %v3583_v0 }
0x1c8d   : > { %3667 = vmatmul.mubr.f32.vlgmr.msra.gmra.mxu0 %v3582_v2 }
0x1d4d   : > { %v3668_v4 = vpop.f32.mrf.mxu0 }
0x1d4e   : > { %v3669_v28 = vadd.f32 %v3668_v4, %v3588_v30 }
0x1d4f   : > { %v3670_v46 = vpop.f32.mrf.mxu0 }
0x1d50   : > { %3675 = vst.msk [vmem:[%s3673_s29] sm:$0x3] %vm3674_vm1, %v3669_v28 }
0x1d51 PF: > { %p19_p1 = scmp.ge.s32.totalorder %s4820_s11, 15   ;;  %s5686_s24 = smov %s4705_s25 }
0x1d52   : > { %s5687_s25 = smov %s4709_s26  ;;  %s5688_s26 = smov %s4843_s19 }
0x1d53   : > { %s5689_s27 = smov %s4820_s11  ;;  %21 = sbr.rel (!%p19_p1) target bundleno = 5 (0x5), region = 119 }
0x1d58   :  { %3687 = vsyncpa [#allocation5], 1 }
0x1d59   :  { %3689 = vsyncpa [#allocation5 + $0x1], 1 }
0x1d5a   :  { %3690 = vsyncpa [#allocation7], 1 }
0x1d5b   :  { %3691 = vsyncpa [#allocation10], 1 }
0x1d5c   :  { %3693 = vsyncpa [#allocation10 + $0x1], 1 }

</bundles_post_ra>
